<compile_context>
chip_gen: v7x
topology: tpu7x:2x2x1
jax: 0.10.0
libtpu: 0.0.40
codegen_flags: <defaults>
</compile_context>

<pallas_src>
import functools

import numpy as np
import jax
import jax.numpy as jnp
from jax.experimental import pallas as pl
from jax.experimental.pallas import tpu as pltpu


# ----------------------------------------------------------------------------
# Vectorized (jit-friendly) construction of per-ROI 1-D interpolation factors.
# Exactly reproduces torchvision roi_align bilinear sampling
# (aligned=False, spatial_scale=1.0, sampling_ratio=-1) along one axis.
# ----------------------------------------------------------------------------
def _roi_align_factors(start, extent, pooled, size, max_grid):
    """start, extent: (N,) f32. Returns (N, pooled, size) interpolation matrices."""
    # samples per bin, clamped to the static bound (consistent sum & divisor either way)
    g = jnp.clip(jnp.ceil(extent / pooled), 1.0, float(max_grid))
    binsz = extent / pooled
    p = jnp.arange(pooled, dtype=jnp.float32)
    i = jnp.arange(max_grid, dtype=jnp.float32)
    # sample coordinates, (N, P, G)
    c = (start[:, None, None]
         + p[None, :, None] * binsz[:, None, None]
         + (i[None, None, :] + 0.5) * (binsz / g)[:, None, None])
    valid = (c >= -1.0) & (c <= float(size)) & (i[None, None, :] < g[:, None, None])
    cc = jnp.clip(c, 0.0, float(size - 1))
    j = jnp.arange(size, dtype=jnp.float32)
    # tent weights reproduce torchvision's clamped bilinear weights exactly
    w = jnp.maximum(0.0, 1.0 - jnp.abs(cc[..., None] - j))          # (N, P, G, S)
    w = jnp.where(valid[..., None], w, 0.0)
    return jnp.sum(w, axis=2) / g[:, None, None]                    # (N, P, S)


def _adaptive_avg_pool_matrix(out_size, in_size):
    P = np.zeros((out_size, in_size), dtype=np.float32)
    for o in range(out_size):
        lo = (o * in_size) // out_size
        hi = -(-((o + 1) * in_size) // out_size)  # ceil
        P[o, lo:hi] = 1.0 / (hi - lo)
    return P


# ----------------------------------------------------------------------------
# Pallas kernel: the (K, PO) interpolation operand never touches HBM.
#   e_ref, f_ref : (10, PO)      grid-constant 0/1 expansion matrices
#   feat_ref     : (nb, C, K)    flattened (W-padded) feature maps, K = H*Wp
#   at_ref       : (nb, H, 10)   per-ROI row (y) factors, both ROI sets stacked
#   bt_ref       : (nb, Wp, 10)  per-ROI col (x) factors, both ROI sets stacked
#   out_ref      : (nb, C, PO)   cols 0..24 = pooled 7x7 ROI, 25..49 = 5x5 ROI
# ----------------------------------------------------------------------------
def _roi_head_kernel(e_ref, f_ref, feat_ref, at_ref, bt_ref, out_ref):
    nb = feat_ref.shape[0]
    h = at_ref.shape[1]
    wp = bt_ref.shape[1]
    po = out_ref.shape[2]
    e = e_ref[...]
    f = f_ref[...]

    def body(i, carry):
        # Expand the tiny per-ROI 1-D factors to one value per output column via 0/1
        # selection matmuls (exact under HIGHEST; negligible FLOPs).
        ahat = jnp.dot(at_ref[i], e, preferred_element_type=jnp.float32,
                       precision=jax.lax.Precision.HIGHEST)              # (H, PO)
        bhat = jnp.dot(bt_ref[i], f, preferred_element_type=jnp.float32,
                       precision=jax.lax.Precision.HIGHEST)              # (Wp, PO)
        # Kronecker / outer-product interpolation operand, built on the VPU in VMEM.
        # Wp is 8-aligned, so this reshape is layout-preserving (no relayout).
        m = (ahat[:, None, :] * bhat[None, :, :]).reshape(h * wp, po)    # (K, PO)
        # One MXU matmul per ROI.
        out_ref[i] = jnp.dot(
            feat_ref[i].astype(jnp.float32), m,
            preferred_element_type=jnp.float32,
            precision=jax.lax.Precision.HIGHEST,  # TODO(synk): relax to HIGH once verified
        ).astype(out_ref.dtype)
        return carry

    jax.lax.fori_loop(0, nb, body, 0)


def linear_head_forward(features, roi_f, width=28, roi_spatial=7, rois_per_step=16):
    """features: (N, C, 1, H, W), roi_f: (N, 8). Returns ((N,C,5,5), (N,C,5,5)). jit-able."""
    N, C = features.shape[0], features.shape[1]
    H, W = features.shape[-2], features.shape[-1]
    P1 = roi_spatial          # 7
    P2 = roi_spatial - 2      # 5
    n_roi_cols = 2 * P2 * P2  # 50
    PO = 64                   # output columns padded to a 64-lane slot

    # features.squeeze(2) / features.squeeze(): both give NCHW here (no other unit dims).
    feats = jnp.squeeze(features, axis=2)                                   # (N, C, H, W)
    Wp = -(-W // 8) * 8
    if Wp != W:
        feats = jnp.pad(feats, ((0, 0), (0, 0), (0, 0), (0, Wp - W)))
    K = H * Wp
    feat_flat = feats.reshape(N, C, K)                                      # keep features.dtype

    # Box scaling exactly as in the module.
    w_sf = width / 1920.0
    h_sf = width / 1080.0
    r = roi_f.astype(jnp.float32)
    x1a, y1a, x2a, y2a = r[:, 0] * w_sf, r[:, 1] * h_sf, r[:, 2] * w_sf, r[:, 3] * h_sf
    x1b, y1b, x2b, y2b = r[:, 4] * w_sf, r[:, 5] * h_sf, r[:, 6] * w_sf, r[:, 7] * h_sf

    # Static samples-per-bin bounds: in-frame 1920x1080 boxes map to extents <= width on
    # either axis; allow 2x out-of-frame margin.  _roi_align_factors clamps g to this bound.
    gy1 = max(1, int(np.ceil(2.0 * max(H, width) / P1)))
    gx1 = max(1, int(np.ceil(2.0 * max(W, width) / P1)))
    gy2 = max(1, int(np.ceil(2.0 * max(H, width) / P2)))
    gx2 = max(1, int(np.ceil(2.0 * max(W, width) / P2)))

    A1 = _roi_align_factors(y1a, jnp.maximum(y2a - y1a, 1.0), P1, H, gy1)   # (N, 7, H)
    B1 = _roi_align_factors(x1a, jnp.maximum(x2a - x1a, 1.0), P1, W, gx1)   # (N, 7, W)
    A2 = _roi_align_factors(y1b, jnp.maximum(y2b - y1b, 1.0), P2, H, gy2)   # (N, 5, H)
    B2 = _roi_align_factors(x1b, jnp.maximum(x2b - x1b, 1.0), P2, W, gx2)   # (N, 5, W)

    # Fold AdaptiveAvgPool2d(P2) into the 7x7 factors (exact linear rewrite of pool(A1 F B1^T)).
    Pp = jnp.asarray(_adaptive_avg_pool_matrix(P2, P1))                     # (5, 7)
    A1e = jnp.einsum('op,nph->noh', Pp, A1)                                 # (N, 5, H)
    B1e = jnp.einsum('op,npw->now', Pp, B1)                                 # (N, 5, W)

    # Stack both ROI sets (10 factor rows per axis) and transpose so the small (10-wide)
    # contraction dim is the lane dim of cheap kernel inputs (~2.5 KB/ROI total).
    At = jnp.transpose(jnp.concatenate([A1e, A2], axis=1), (0, 2, 1))       # (N, H, 10)
    B_all = jnp.concatenate([B1e, B2], axis=1)                              # (N, 10, W)
    if Wp != W:
        B_all = jnp.pad(B_all, ((0, 0), (0, 0), (0, Wp - W)))
    Bt = jnp.transpose(B_all, (0, 2, 1))                                    # (N, Wp, 10)

    # Grid-constant 0/1 expansion matrices: output column j = s*25 + p*5 + q selects
    # factor row (s, p) from At and (s, q) from Bt.  Columns >= 50 are zero (lane pad).
    E_np = np.zeros((2 * P2, PO), np.float32)
    F_np = np.zeros((2 * P2, PO), np.float32)
    for s in range(2):
        for p in range(P2):
            for q in range(P2):
                j = s * P2 * P2 + p * P2 + q
                E_np[s * P2 + p, j] = 1.0
                F_np[s * P2 + q, j] = 1.0
    E = jnp.asarray(E_np)
    F = jnp.asarray(F_np)

    # ROIs per grid step: amortize the ~0.35us/step overhead but keep >= 2 grid steps so
    # ("parallel",) can use both v7x TensorCores.  VMEM/step at nb=16 is ~3-4 MiB, far
    # under the 16 MiB (v5e) / 32 MiB (v6e, v7x) scoped defaults and the 32 MiB set below.
    nb = int(max(1, min(rois_per_step, -(-N // 2))))
    n_pad = -(-N // nb) * nb
    if n_pad != N:
        pad = n_pad - N
        feat_flat = jnp.pad(feat_flat, ((0, pad), (0, 0), (0, 0)))
        At = jnp.pad(At, ((0, pad), (0, 0), (0, 0)))
        Bt = jnp.pad(Bt, ((0, pad), (0, 0), (0, 0)))

    out_dtype = features.dtype
    flops_per_roi = (2 * H * (2 * P2) * PO + 2 * Wp * (2 * P2) * PO   # factor expansion
                     + H * Wp * PO                                     # VPU outer product
                     + 2 * C * K * PO)                                 # main MXU matmul
    cost = pl.CostEstimate(
        flops=int(n_pad * flops_per_roi),
        transcendentals=0,
        bytes_accessed=int(feat_flat.size * jnp.dtype(feat_flat.dtype).itemsize
                           + (At.size + Bt.size + E.size + F.size) * 4
                           + n_pad * C * PO * jnp.dtype(out_dtype).itemsize),
    )

    grid_spec = pltpu.PrefetchScalarGridSpec(
        num_scalar_prefetch=0,
        grid=(n_pad // nb,),
        in_specs=[
            pl.BlockSpec((2 * P2, PO), lambda g: (0, 0)),          # E (grid-constant)
            pl.BlockSpec((2 * P2, PO), lambda g: (0, 0)),          # F (grid-constant)
            pl.BlockSpec((nb, C, K), lambda g: (g, 0, 0)),         # features
            pl.BlockSpec((nb, H, 2 * P2), lambda g: (g, 0, 0)),    # row (y) factors
            pl.BlockSpec((nb, Wp, 2 * P2), lambda g: (g, 0, 0)),   # col (x) factors
        ],
        out_specs=pl.BlockSpec((nb, C, PO), lambda g: (g, 0, 0)),
    )

    out = pl.pallas_call(
        _roi_head_kernel,
        out_shape=jax.ShapeDtypeStruct((n_pad, C, PO), out_dtype),
        grid_spec=grid_spec,
        compiler_params=pltpu.CompilerParams(
            dimension_semantics=("parallel",),        # ROIs fully independent
            vmem_limit_bytes=32 * 1024 * 1024,
        ),
        cost_estimate=cost,
    )(E, F, feat_flat, At, Bt)

    out = out[:N]
    o1 = out[:, :, :P2 * P2].reshape(N, C, P2, P2)
    o2 = out[:, :, P2 * P2:n_roi_cols].reshape(N, C, P2, P2)
    return o1, o2


# ----------------------------------------------------------------------------
# Independent numpy reference (direct per-sample bilinear roi_align + avg pool)
# ----------------------------------------------------------------------------
def _bilinear_2d(feat, y, x):
    C, H, W = feat.shape
    if y < -1.0 or y > H or x < -1.0 or x > W:
        return np.zeros(C)
    y = max(y, 0.0)
    x = max(x, 0.0)
    y_low = int(np.floor(y))
    x_low = int(np.floor(x))
    if y_low >= H - 1:
        y_high = y_low = H - 1
        y = float(y_low)
    else:
        y_high = y_low + 1
    if x_low >= W - 1:
        x_high = x_low = W - 1
        x = float(x_low)
    else:
        x_high = x_low + 1
    ly, lx = y - y_low, x - x_low
    hy, hx = 1.0 - ly, 1.0 - lx
    return (hy * hx * feat[:, y_low, x_low] + hy * lx * feat[:, y_low, x_high] +
            ly * hx * feat[:, y_high, x_low] + ly * lx * feat[:, y_high, x_high])


def _roi_align_ref(feat, box, pooled):
    C, H, W = feat.shape
    x1, y1, x2, y2 = [float(v) for v in box]
    roi_w = max(x2 - x1, 1.0)
    roi_h = max(y2 - y1, 1.0)
    bh, bw = roi_h / pooled, roi_w / pooled
    gh = max(int(np.ceil(roi_h / pooled)), 1)
    gw = max(int(np.ceil(roi_w / pooled)), 1)
    out = np.zeros((C, pooled, pooled))
    for ph in range(pooled):
        for pw in range(pooled):
            acc = np.zeros(C)
            for iy in range(gh):
                y = y1 + ph * bh + (iy + 0.5) * bh / gh
                for ix in range(gw):
                    x = x1 + pw * bw + (ix + 0.5) * bw / gw
                    acc += _bilinear_2d(feat, y, x)
            out[:, ph, pw] = acc / (gh * gw)
    return out


def _adaptive_pool_ref(x, out_size):
    C, H, W = x.shape
    out = np.zeros((C, out_size, out_size))
    for a in range(out_size):
        h0, h1 = (a * H) // out_size, -(-((a + 1) * H) // out_size)
        for b in range(out_size):
            w0, w1 = (b * W) // out_size, -(-((b + 1) * W) // out_size)
            out[:, a, b] = x[:, h0:h1, w0:w1].mean(axis=(1, 2))
    return out


if __name__ == "__main__":
    N, C, H, W = 2, 8, 28, 28
    width, roi_spatial = 28, 7

    key = jax.random.PRNGKey(0)
    kf, kr = jax.random.split(key)
    features = jax.random.normal(kf, (N, C, 1, H, W), jnp.float32)
    # roi_f columns: (x1, y1, x2, y2, x1', y1', x2', y2') in 1920x1080 pixel coords
    lo = jnp.array([100., 100., 900., 600., 150., 120., 1000., 650.], jnp.float32)
    hi = jnp.array([800., 500., 1900., 1060., 850., 520., 1900., 1060.], jnp.float32)
    roi_f = lo + (hi - lo) * jax.random.uniform(kr, (N, 8), jnp.float32)

    fwd = jax.jit(functools.partial(linear_head_forward,
                                    width=width, roi_spatial=roi_spatial))
    o1, o2 = fwd(features, roi_f)
    o1, o2 = jax.block_until_ready(o1), jax.block_until_ready(o2)

    # Reference check
    feats_np = np.asarray(jnp.squeeze(features, axis=2), dtype=np.float64)
    roi_np = np.asarray(roi_f, dtype=np.float32)
    w_sf, h_sf = width / 1920.0, width / 1080.0
    ref1 = np.zeros((N, C, 5, 5))
    ref2 = np.zeros((N, C, 5, 5))
    for n in range(N):
        b1 = np.array([roi_np[n, 0] * w_sf, roi_np[n, 1] * h_sf,
                       roi_np[n, 2] * w_sf, roi_np[n, 3] * h_sf], dtype=np.float32)
        b2 = np.array([roi_np[n, 4] * w_sf, roi_np[n, 5] * h_sf,
                       roi_np[n, 6] * w_sf, roi_np[n, 7] * h_sf], dtype=np.float32)
        r1 = _roi_align_ref(feats_np[n], b1, 7)
        ref1[n] = _adaptive_pool_ref(r1, 5)
        ref2[n] = _roi_align_ref(feats_np[n], b2, 5)

    np.testing.assert_allclose(np.asarray(o1), ref1, rtol=1e-3, atol=1e-3)
    np.testing.assert_allclose(np.asarray(o2), ref2, rtol=1e-3, atol=1e-3)
    print("KERNEL_OK")
</pallas_src>

<mosaic_0001>
module attributes {stable_mosaic.version = 11 : i64} {
  func.func @_roi_head_kernel(%arg0: i32, %arg1: memref<10x64xf32, #tpu.memory_space<vmem>>, %arg2: memref<10x64xf32, #tpu.memory_space<vmem>>, %arg3: memref<1x8x896xf32, #tpu.memory_space<vmem>>, %arg4: memref<1x28x10xf32, #tpu.memory_space<vmem>>, %arg5: memref<1x32x10xf32, #tpu.memory_space<vmem>>, %arg6: memref<1x8x64xf32, #tpu.memory_space<vmem>>) attributes {dimension_semantics = [#tpu.dimension_semantics<parallel>], iteration_bounds = array<i64: 2>, scalar_prefetch = 0 : i64, scratch_operands = 0 : i64, tpu.core_type = #tpu.core_type<tc>, window_params = [{pipeline_mode = #tpu.pipeline_mode<synchronous>, transform_indices = @transform_0, window_bounds = array<i64: 10, 64>}, {pipeline_mode = #tpu.pipeline_mode<synchronous>, transform_indices = @transform_1, window_bounds = array<i64: 10, 64>}, {transform_indices = @transform_2, window_bounds = array<i64: 1, 8, 896>}, {transform_indices = @transform_3, window_bounds = array<i64: 1, 28, 10>}, {transform_indices = @transform_4, window_bounds = array<i64: 1, 32, 10>}, {transform_indices = @transform_5, window_bounds = array<i64: 1, 8, 64>}]} {
    %c0 = arith.constant 0 : index
    %c0_0 = arith.constant 0 : index
    %0 = vector.load %arg1[%c0, %c0_0] : memref<10x64xf32, #tpu.memory_space<vmem>>, vector<10x64xf32>
    %c0_1 = arith.constant 0 : index
    %c0_2 = arith.constant 0 : index
    %1 = vector.load %arg2[%c0_1, %c0_2] : memref<10x64xf32, #tpu.memory_space<vmem>>, vector<10x64xf32>
    %c0_i32 = arith.constant 0 : i32
    %2 = arith.index_cast %c0_i32 : i32 to index
    %c0_3 = arith.constant 0 : index
    %c0_4 = arith.constant 0 : index
    %3 = vector.load %arg4[%2, %c0_3, %c0_4] : memref<1x28x10xf32, #tpu.memory_space<vmem>>, vector<1x28x10xf32>
    %4 = vector.shape_cast %3 : vector<1x28x10xf32> to vector<28x10xf32>
    %cst = arith.constant dense<0.000000e+00> : vector<28x64xf32>
    %5 = tpu.matmul %4, %0, %cst {dimension_numbers = #tpu.dot_dimension_numbers<[1], [0], [0], [1], [0, 0, 1, 1], [], []>, precision = #tpu.contract_precision<fp32>} : vector<28x10xf32>, vector<10x64xf32>, vector<28x64xf32> -> vector<28x64xf32>
    %6 = arith.index_cast %c0_i32 : i32 to index
    %c0_5 = arith.constant 0 : index
    %c0_6 = arith.constant 0 : index
    %7 = vector.load %arg5[%6, %c0_5, %c0_6] : memref<1x32x10xf32, #tpu.memory_space<vmem>>, vector<1x32x10xf32>
    %8 = vector.shape_cast %7 : vector<1x32x10xf32> to vector<32x10xf32>
    %cst_7 = arith.constant dense<0.000000e+00> : vector<32x64xf32>
    %9 = tpu.matmul %8, %1, %cst_7 {dimension_numbers = #tpu.dot_dimension_numbers<[1], [0], [0], [1], [0, 0, 1, 1], [], []>, precision = #tpu.contract_precision<fp32>} : vector<32x10xf32>, vector<10x64xf32>, vector<32x64xf32> -> vector<32x64xf32>
    %10 = vector.shape_cast %5 : vector<28x64xf32> to vector<28x1x64xf32>
    %11 = vector.shape_cast %9 : vector<32x64xf32> to vector<1x32x64xf32>
    %12 = vector.broadcast %10 : vector<28x1x64xf32> to vector<28x32x64xf32>
    %13 = vector.broadcast %11 : vector<1x32x64xf32> to vector<28x32x64xf32>
    %14 = arith.mulf %12, %13 : vector<28x32x64xf32>
    %15 = vector.shape_cast %14 : vector<28x32x64xf32> to vector<896x64xf32>
    %16 = arith.index_cast %c0_i32 : i32 to index
    %c0_8 = arith.constant 0 : index
    %c0_9 = arith.constant 0 : index
    %17 = vector.load %arg3[%16, %c0_8, %c0_9] : memref<1x8x896xf32, #tpu.memory_space<vmem>>, vector<1x8x896xf32>
    %18 = vector.shape_cast %17 : vector<1x8x896xf32> to vector<8x896xf32>
    %cst_10 = arith.constant dense<0.000000e+00> : vector<8x64xf32>
    %19 = tpu.matmul %18, %15, %cst_10 {dimension_numbers = #tpu.dot_dimension_numbers<[1], [0], [0], [1], [0, 0, 1, 1], [], []>, precision = #tpu.contract_precision<fp32>} : vector<8x896xf32>, vector<896x64xf32>, vector<8x64xf32> -> vector<8x64xf32>
    %20 = arith.index_cast %c0_i32 : i32 to index
    %c0_11 = arith.constant 0 : index
    %c0_12 = arith.constant 0 : index
    %21 = vector.load %arg6[%20, %c0_11, %c0_12] : memref<1x8x64xf32, #tpu.memory_space<vmem>>, vector<1x8x64xf32>
    %22 = vector.shape_cast %21 : vector<1x8x64xf32> to vector<8x64xf32>
    %23 = vector.shape_cast %19 : vector<8x64xf32> to vector<1x8x64xf32>
    tpu.vector_store %arg6[%20, %c0_11, %c0_12], %23 {strides = array<i32>} : memref<1x8x64xf32, #tpu.memory_space<vmem>>, vector<1x8x64xf32>,
    %c1_i32 = arith.constant 1 : i32
    return
  }
  func.func @transform_0(%arg0: i32) -> (i32, i32) {
    %c0_i32 = arith.constant 0 : i32
    %c0_i32_0 = arith.constant 0 : i32
    %c0_i32_1 = arith.constant 0 : i32
    return %c0_i32, %c0_i32_0 : i32, i32
  }
  func.func @transform_1(%arg0: i32) -> (i32, i32) {
    %c0_i32 = arith.constant 0 : i32
    %c0_i32_0 = arith.constant 0 : i32
    %c0_i32_1 = arith.constant 0 : i32
    return %c0_i32, %c0_i32_0 : i32, i32
  }
  func.func @transform_2(%arg0: i32) -> (i32, i32, i32) {
    %c0_i32 = arith.constant 0 : i32
    %c0_i32_0 = arith.constant 0 : i32
    %c0_i32_1 = arith.constant 0 : i32
    return %arg0, %c0_i32, %c0_i32_0 : i32, i32, i32
  }
  func.func @transform_3(%arg0: i32) -> (i32, i32, i32) {
    %c0_i32 = arith.constant 0 : i32
    %c0_i32_0 = arith.constant 0 : i32
    %c0_i32_1 = arith.constant 0 : i32
    return %arg0, %c0_i32, %c0_i32_0 : i32, i32, i32
  }
  func.func @transform_4(%arg0: i32) -> (i32, i32, i32) {
    %c0_i32 = arith.constant 0 : i32
    %c0_i32_0 = arith.constant 0 : i32
    %c0_i32_1 = arith.constant 0 : i32
    return %arg0, %c0_i32, %c0_i32_0 : i32, i32, i32
  }
  func.func @transform_5(%arg0: i32) -> (i32, i32, i32) {
    %c0_i32 = arith.constant 0 : i32
    %c0_i32_0 = arith.constant 0 : i32
    %c0_i32_1 = arith.constant 0 : i32
    return %arg0, %c0_i32, %c0_i32_0 : i32, i32, i32
  }
}

</mosaic_0001>

<bundles_post_ra>
// kernel: linear_head_forward.1
= control target key start
LH: loop header
LB: loop body
LE: loop exit
PB: predicated region body
PF: predicated region fallthrough
CT: control target
= control target key end

     0   :  { %s7246_s18 = smov 0   ;;  %s9802_s0 = inlined_call_operand.vmem [shape: f32[10,64], index: 0, kind: input, shape index: {}]   ;;  %s9803_s1 = inlined_call_operand.vmem [shape: f32[10,64], index: 1, kind: input, shape index: {}]   ;;  %s9804_s2 = inlined_call_operand.vmem [shape: f32[2,8,896], index: 2, kind: input, shape index: {}]   ;;  %s9805_s3 = inlined_call_operand.vmem [shape: f32[2,28,10], index: 3, kind: input, shape index: {}]   ;;  %s9806_s4 = inlined_call_operand.vmem [shape: f32[2,32,10], index: 4, kind: input, shape index: {}]   ;;  %s9807_s5 = inlined_call_operand.vmem [shape: f32[2,8,64], index: 5, kind: output, shape index: {}]  }
   0x1 LB: > { %s5223_s19 = sadd.s32 4294967295, %s7210_s18   ;;  %p5227_p0 = scmp.ge.s32.totalorder %s7210_s18, 1  ;;  %s7210_s18 = sphi %s7246_s18, %s15_s18  }
   0x2   : > { %p207_p1 = scmp.lt.s32.totalorder %s7210_s18, 3 }
   0x4   : > { %p208_p2 = pnand %p5227_p0, %p207_p1 }
   0x6   : > { %211 = sbr.rel (%p208_p2) target bundleno = 966 (0x3c6), region = 40 }
   0xd   : > { %v263_v0 = vld [vmem:[%s9802_s0] sm:$0xff]  ;;  %v264_v1 = vld [vmem:[%s9802_s0 + $0x8] sm:$0x3]  ;;  %vm284_vm0 = vcmask 1041408   ;;  %p244_p3 = scmp.lt.s32.totalorder %s5223_s19, 1  ;;  %vm271_vm1 = vcmask 80896  }
   0xe   : > { %v265_v2 = vld [vmem:[%s9803_s1] sm:$0xff]  ;;  %v286_v3 = vsel %vm284_vm0, %v264_v1, 0  ;;  %v289_v4 = vand.u32 4294901760, %v263_v0  ;;  %v266_v5 = vld [vmem:[%s9803_s1 + $0x8] sm:$0x3]  ;;  %vm7214_vm2 = vmmov 0  }
   0xf   : > { %v896_v6 = vand.u32 4294901760, %v265_v2  ;;  %v292_v7 = vand.u32 4294901760, %v286_v3  ;;  %v893_v8 = vsel %vm284_vm0, %v266_v5, 0  ;;  %s10893_s19 = smov (!%p244_p3, %s5223_s19), 1  ;;  %vm5144_vm3 = vcmask 523264  }
  0x10   : > { %v899_v9 = vand.u32 4294901760, %v893_v8  ;;  %v7268_v10 = vsub.f32 %v263_v0, %v289_v4  ;;  %s5236_s28 = sshll.u32 %s10893_s19, 5  ;;  %s7191_s10 = smul.u32 56, %s10893_s19 }
  0x11   : > { %v7270_v11 = vsub.f32 %v265_v2, %v896_v6  ;;  %v7272_v12 = vpack.c.bf16 %v292_v7, %v289_v4  ;;  %v7275_v13 = vsub.f32 %v286_v3, %v292_v7  ;;  %s253_s6 = scalar_lea.vmem %s9805_s3, %s5236_s28  ;;  %s7286_s9 = scalar_lea.vmem %s9806_s4, %s5236_s28 }
  0x12   : > { %v7277_v14 = vpack.c.bf16 %v899_v9, %v896_v6  ;;  %v398_v15 = vand.u32 4294901760, %v7268_v10  ;;  %v267_v16 = vld [vmem:[%s253_s6] sm:$0xff]  ;;  %v268_v19 = vld [vmem:[%s253_s6 + $0x8] sm:$0xff]  ;;  %v7292_v21 = vsub.f32 %v893_v8, %v899_v9  ;;  %v269_v27 = vld [vmem:[%s253_s6 + $0x10] sm:$0xff]  ;;  %s7457_s13 = scalar_lea.vmem %s9804_s2, %s7191_s10  ;;  %s5233_s14 = sshll.u32 %s10893_s19, 3 }
  0x13   : > { %6373 = vmatprep.subr.bf16.mxu0 %v7272_v12  ;;  %v405_v17 = vand.u32 4294901760, %v7275_v13  ;;  %v876_v18 = vld [vmem:[%s7286_s9] sm:$0xff]  ;;  %v1005_v20 = vand.u32 4294901760, %v7270_v11  ;;  %v273_v22 = vsel %vm271_vm1, %v267_v16, 0  ;;  %v276_v25 = vsel %vm271_vm1, %v268_v19, 0  ;;  %v877_v26 = vld [vmem:[%s7286_s9 + $0x8] sm:$0xff]  ;;  %s262_s17 = scalar_lea.vmem %s9807_s5, %s5233_s14 }
  0x14   : > { %6375 = vmatpush3.bf16.msra.mxu0 %v7272_v12  ;;  %6397 = vmatprep.subr.bf16.mxu1 %v7277_v14  ;;  %v399_v23 = vsub.f32 %v7268_v10, %v398_v15  ;;  %v881_v24 = vsel %vm271_vm1, %v876_v18, 0  ;;  %v878_v28 = vld [vmem:[%s7286_s9 + $0x10] sm:$0xff]  ;;  %v7305_v29 = vand.u32 4294901760, %v273_v22  ;;  %v7312_v32 = vand.u32 4294901760, %v276_v25  ;;  %v270_v33 = vld [vmem:[%s253_s6 + $0x18] sm:$0xf] }
  0x15   : > { %6399 = vmatpush3.bf16.msra.mxu1 %v7277_v14  ;;  %v406_v30 = vsub.f32 %v7275_v13, %v405_v17  ;;  %v7310_v31 = vand.u32 4294901760, %v881_v24  ;;  %v884_v35 = vsel %vm271_vm1, %v877_v26, 0  ;;  %v279_v36 = vsel %vm271_vm1, %v269_v27, 0  ;;  %v879_v46 = vld [vmem:[%s7286_s9 + $0x18] sm:$0xff] }
  0x16   : > { %v400_v34 = vand.u32 4294901760, %v399_v23  ;;  %v887_v37 = vsel %vm271_vm1, %v878_v28, 0  ;;  %v7318_v38 = vsub.f32 %v273_v22, %v7305_v29  ;;  %v7324_v41 = vsub.f32 %v276_v25, %v7312_v32 }
  0x17   : > { %v407_v39 = vand.u32 4294901760, %v406_v30  ;;  %v7321_v40 = vsub.f32 %v881_v24, %v7310_v31  ;;  %v7326_v42 = vand.u32 4294901760, %v884_v35  ;;  %v7328_v43 = vand.u32 4294901760, %v279_v36 }
  0x18   : > { %v7330_v44 = vand.u32 4294901760, %v887_v37  ;;  %v282_v45 = vsel %vm271_vm1, %v270_v33, 0  ;;  %v357_v47 = vand.u32 4294901760, %v7318_v38  ;;  %v367_v50 = vand.u32 4294901760, %v7324_v41 }
  0x19   : > { %v6376_v48 = vpack.c.bf16 %v407_v39, %v400_v34  ;;  %v964_v49 = vand.u32 4294901760, %v7321_v40  ;;  %v7338_v51 = vsub.f32 %v884_v35, %v7326_v42  ;;  %v7341_v52 = vsub.f32 %v279_v36, %v7328_v43  ;;  %v1912_v39 = vld [vmem:[%s7457_s13 + $0x10] sm:$0xff] }
  0x1a   : > { %v7344_v53 = vsub.f32 %v887_v37, %v7330_v44  ;;  %v7346_v54 = vand.u32 4294901760, %v282_v45  ;;  %v358_v55 = vsub.f32 %v7318_v38, %v357_v47  ;;  %v368_v57 = vsub.f32 %v7324_v41, %v367_v50 }
  0x1b   : > { %6377 = vmatprep.subr.bf16.mxu0 %v6376_v48  ;;  %v965_v56 = vsub.f32 %v7321_v40, %v964_v49  ;;  %v890_v58 = vsel %vm271_vm1, %v879_v46, 0  ;;  %v974_v59 = vand.u32 4294901760, %v7338_v51  ;;  %v377_v60 = vand.u32 4294901760, %v7341_v52 }
  0x1c   : > { %v984_v61 = vand.u32 4294901760, %v7344_v53  ;;  %v7362_v62 = vsub.f32 %v282_v45, %v7346_v54  ;;  %v359_v63 = vand.u32 4294901760, %v358_v55  ;;  %v369_v1 = vand.u32 4294901760, %v368_v57 }
  0x1d   : > { %v966_v0 = vand.u32 4294901760, %v965_v56  ;;  %v7364_v2 = vand.u32 4294901760, %v890_v58  ;;  %v975_v3 = vsub.f32 %v7338_v51, %v974_v59  ;;  %v378_v4 = vsub.f32 %v7341_v52, %v377_v60 }
  0x1e   : > { %v985_v5 = vsub.f32 %v7344_v53, %v984_v61  ;;  %v387_v6 = vand.u32 4294901760, %v7362_v62  ;;  %6046 = vmatprep.mubr.f32.mxu0 %v359_v63  ;;  %v1006_v8 = vsub.f32 %v7270_v11, %v1005_v20  ;;  %v1012_v9 = vand.u32 4294901760, %v7292_v21 }
  0x1f   : > { %6106 = vmatprep.mubr.f32.mxu1 %v966_v0  ;;  %v7377_v7 = vsub.f32 %v890_v58, %v7364_v2  ;;  %v6380_v16 = vpack.c.bf16 %v7275_v13, %v7268_v10  ;;  %6047 = vmatmul.mubr.f32.vlgmr.msra.gmra.mrb[0].mxu0 %v369_v1  ;;  %v976_v18 = vand.u32 4294901760, %v975_v3  ;;  %v379_v19 = vand.u32 4294901760, %v378_v4  ;;  %v1911_v10 = vld [vmem:[%s7457_s13 + $0x8] sm:$0xff] }
  0x20   : > { %v986_v22 = vand.u32 4294901760, %v985_v5  ;;  %v388_v23 = vsub.f32 %v7362_v62, %v387_v6  ;;  %6379 = vmatpush3.bf16.msra.mxu0 %v6376_v48  ;;  %v1007_v25 = vand.u32 4294901760, %v1006_v8  ;;  %v1013_v26 = vsub.f32 %v7292_v21, %v1012_v9 }
  0x21   : > { %v994_v24 = vand.u32 4294901760, %v7377_v7  ;;  %6107 = vmatmul.mubr.f32.vlgmr.msra.gmra.mrb[0].mxu1 %v976_v18  ;;  %6049 = vmatprep.mubr.f32.mxu0 %v379_v19  ;;  %v6404_v35 = vpack.c.bf16 %v7292_v21, %v7270_v11  ;;  %v6388_v21 = vpack.c.bf16 %v405_v17, %v398_v15  ;;  %v6412_v36 = vpack.c.bf16 %v1012_v9, %v1005_v20  ;;  %v1913_v11 = vld [vmem:[%s7457_s13 + $0x18] sm:$0xff] }
  0x22   : > { %v389_v27 = vand.u32 4294901760, %v388_v23  ;;  %6109 = vmatprep.mubr.f32.mxu1 %v986_v22  ;;  %v1014_v30 = vand.u32 4294901760, %v1013_v26  ;;  %6381 = vmatprep.subr.bf16.mxu0 %v6380_v16  ;;  %v7463_v13 = vand.u32 4294901760, %v1913_v11 }
  0x23   : > { %v995_v28 = vsub.f32 %v7377_v7, %v994_v24 }
  0x24   : > { %6050 = vmatmul.mubr.f32.gmra.mrb[2].mxu0 %v389_v27  ;;  %v6400_v34 = vpack.c.bf16 %v1014_v30, %v1007_v25  ;;  %10202 = vst [vmem:[#allocation3_spill] sm:$0xff] %v7463_v13  ;;  %v7469_v15 = vsub.f32 %v1913_v11, %v7463_v13 }
  0x25   : > { %v996_v33 = vand.u32 4294901760, %v995_v28  ;;  %6056 = vmatprep.mubr.f32.mxu0 %v7305_v29 }
  0x26   : > { %6401 = vmatprep.subr.bf16.mxu1 %v6400_v34  ;;  %10204 = vst [vmem:[#allocation5_spill] sm:$0xff] %v7469_v15  ;;  %v9809_v20 = vand.u32 4294901760, %v7469_v15 }
  0x27   : > { %6110 = vmatmul.mubr.f32.gmra.mrb[2].mxu1 %v996_v33 }
  0x28   : > { %6403 = vmatpush3.bf16.msra.mxu1 %v6400_v34  ;;  %6116 = vmatprep.mubr.f32.mxu1 %v7310_v31 }
  0x29   : > { %6057 = vmatmul.mubr.f32.vlgmr.msra.gmra.mrb[0].mxu0 %v7312_v32  ;;  %6405 = vmatprep.subr.bf16.mxu1 %v6404_v35 }
  0x2a   : > { %6383 = vmatpush3.bf16.msra.mxu0 %v6380_v16  ;;  %6059 = vmatprep.mubr.f32.mxu0 %v7328_v43 }
  0x2b   : > { %6117 = vmatmul.mubr.f32.vlgmr.msra.gmra.mrb[0].mxu1 %v7326_v42  ;;  %6385 = vmatprep.subr.bf16.mxu0 %v7272_v12 }
  0x2c   : > { %6119 = vmatprep.mubr.f32.mxu1 %v7330_v44  ;;  %6407 = vmatpush3.bf16.msra.mxu1 %v6404_v35 }
  0x2d   : > { %6060 = vmatmul.mubr.f32.gmra.mrb[2].mxu0 %v7346_v54  ;;  %6409 = vmatprep.subr.bf16.mxu1 %v7277_v14 }
  0x2e   : > { %6066 = vmatprep.mubr.f32.mxu0 %v7318_v38  ;;  %v1910_v38 = vld [vmem:[%s7457_s13] sm:$0xff] }
  0x2f   : > { %6120 = vmatmul.mubr.f32.gmra.mrb[2].mxu1 %v7364_v2 }
  0x30   : > { %6126 = vmatprep.mubr.f32.mxu1 %v7321_v40  ;;  %v7481_v40 = vand.u32 4294901760, %v1910_v38 }
  0x31   : > { %6067 = vmatmul.mubr.f32.vlgmr.msra.gmra.mrb[0].mxu0 %v7324_v41  ;;  %v7483_v41 = vand.u32 4294901760, %v1912_v39 }
  0x32   : > { %6387 = vmatpush3.bf16.msra.mxu0 %v7272_v12  ;;  %6069 = vmatprep.mubr.f32.mxu0 %v7341_v52  ;;  %10205 = vst [vmem:[#allocation6_spill] sm:$0xff] %v7481_v40  ;;  %v7486_v45 = vsub.f32 %v1910_v38, %v7481_v40 }
  0x33   : > { %6127 = vmatmul.mubr.f32.vlgmr.msra.gmra.mrb[0].mxu1 %v7338_v51  ;;  %6389 = vmatprep.subr.bf16.mxu0 %v6388_v21  ;;  %10206 = vst [vmem:[#allocation7_spill] sm:$0xff] %v7483_v41  ;;  %v7489_v46 = vsub.f32 %v1912_v39, %v7483_v41 }
  0x34   : > { %6129 = vmatprep.mubr.f32.mxu1 %v7344_v53  ;;  %6411 = vmatpush3.bf16.msra.mxu1 %v7277_v14  ;;  %10207 = vst [vmem:[#allocation8_spill] sm:$0xff] %v7486_v45 }
  0x35   : > { %6070 = vmatmul.mubr.f32.gmra.mrb[2].mxu0 %v7362_v62  ;;  %6413 = vmatprep.subr.bf16.mxu1 %v6412_v36  ;;  %10208 = vst [vmem:[#allocation9_spill] sm:$0xff] %v7489_v46 }
  0x36   : > { %6076 = vmatprep.mubr.f32.mxu0 %v357_v47 }
  0x37   : > { %6130 = vmatmul.mubr.f32.gmra.mrb[2].mxu1 %v7377_v7 }
  0x38   : > { %6136 = vmatprep.mubr.f32.mxu1 %v964_v49  ;;  %v9810_v49 = vand.u32 4294901760, %v7486_v45 }
  0x39   : > { %6077 = vmatmul.mubr.f32.vlgmr.msra.gmra.mrb[0].mxu0 %v367_v50  ;;  %v9808_v50 = vand.u32 4294901760, %v7489_v46 }
  0x3a   : > { %6391 = vmatpush3.bf16.msra.mxu0 %v6388_v21  ;;  %6079 = vmatprep.mubr.f32.mxu0 %v377_v60  ;;  %v7498_v52 = vsub.f32 %v7486_v45, %v9810_v49 }
  0x3b   : > { %6137 = vmatmul.mubr.f32.vlgmr.msra.gmra.mrb[0].mxu1 %v974_v59  ;;  %6393 = vmatprep.subr.bf16.mxu0 %v7272_v12 }
  0x3c   : > { %6139 = vmatprep.mubr.f32.mxu1 %v984_v61  ;;  %6415 = vmatpush3.bf16.msra.mxu1 %v6412_v36 }
  0x3d   : > { %6080 = vmatmul.mubr.f32.gmra.mrb[2].mxu0 %v387_v6  ;;  %6417 = vmatprep.subr.bf16.mxu1 %v7277_v14 }
  0x3e   : > { %6086 = vmatprep.mubr.f32.mxu0 %v7305_v29 }
  0x3f   : > { %6140 = vmatmul.mubr.f32.gmra.mrb[2].mxu1 %v994_v24 }
  0x40   : > { %6146 = vmatprep.mubr.f32.mxu1 %v7310_v31 }
  0x41   : > { %6087 = vmatmul.mubr.f32.vlgmr.msra.gmra.mrb[0].mxu0 %v7312_v32 }
  0x42   : > { %6395 = vmatpush3.bf16.msra.mxu0 %v7272_v12  ;;  %6089 = vmatprep.mubr.f32.mxu0 %v7328_v43  ;;  %v7461_v12 = vand.u32 4294901760, %v1911_v10 }
  0x43   : > { %6147 = vmatmul.mubr.f32.vlgmr.msra.gmra.mrb[0].mxu1 %v7326_v42 }
  0x44   : > { %6149 = vmatprep.mubr.f32.mxu1 %v7330_v44  ;;  %6419 = vmatpush3.bf16.msra.mxu1 %v7277_v14  ;;  %10201 = vst [vmem:[#allocation2_spill] sm:$0xff] %v7461_v12  ;;  %v7466_v14 = vsub.f32 %v1911_v10, %v7461_v12 }
  0x45   : > { %6090 = vmatmul.mubr.f32.gmra.mrb[2].mxu0 %v7346_v54 }
  0x46   : > { %6096 = vmatprep.mubr.f32.mxu0 %v7305_v29  ;;  %10203 = vst [vmem:[#allocation4_spill] sm:$0xff] %v7466_v14  ;;  %v9811_v17 = vand.u32 4294901760, %v7466_v14 }
  0x47   : > { %6150 = vmatmul.mubr.f32.gmra.mrb[2].mxu1 %v7364_v2 }
  0x48   : > { %6156 = vmatprep.mubr.f32.mxu1 %v7310_v31  ;;  %v2016_v29 = vsub.f32 %v7466_v14, %v9811_v17  ;;  %v2878_v31 = vsub.f32 %v7469_v15, %v9809_v20 }
  0x49   : > { %6097 = vmatmul.mubr.f32.vlgmr.msra.gmra.mrb[0].mxu0 %v7312_v32 }
  0x4a   : > { %6099 = vmatprep.mubr.f32.mxu0 %v7328_v43  ;;  %v2017_v32 = vand.u32 4294901760, %v2016_v29  ;;  %v2879_v37 = vand.u32 4294901760, %v2878_v31 }
  0x4b   : > { %6157 = vmatmul.mubr.f32.vlgmr.msra.gmra.mrb[0].mxu1 %v7326_v42  ;;  %v7212_v42 = vmov 1966171168  }
  0x4c   : > { %6159 = vmatprep.mubr.f32.mxu1 %v7330_v44  ;;  %v1489_v43 = vunpack.c.l.s4 %v7212_v42  ;;  %v1491_v44 = vlaneseq }
  0x4d   : > { %6100 = vmatmul.mubr.f32.gmra.mrb[2].mxu0 %v7346_v54  ;;  %v7503_v54 = vsub.f32 %v7489_v46, %v9808_v50 }
  0x4e   : > { %2880 = vmatprep.mubr.f32.mxu0 %v2879_v37  ;;  %v1490_v47 = vunpack.c.0.s8 %v1489_v43  ;;  %v1492_v48 = vshrl.u32 %v1491_v44, 7 }
  0x4f   : > { %6160 = vmatmul.mubr.f32.gmra.mrb[2].mxu1 %v7364_v2 }
  0x50   : > { %2018 = vmatprep.mubr.f32.mxu1 %v2017_v32  ;;  %v7493_v51 = vsub.s32 %v1490_v47, %v1492_v48  ;;  %v7506_v58 = vsub.s32 0, %v1492_v48 }
 0x11c   : > { %v6098_v53 = vpop.f32.mrb[0].mxu0 }
 0x11d   : > { %v1536_v55 = vcombine.high %v6098_v53, %v6098_v53  ;;  %v1543_v56 = vrot.slane %v6098_v53, %v7493_v51  ;;  %v854_v57 = vpop.f32.mrb[1].mxu0 }
 0x11e   : > { %v7508_v59 = vpop.f32.mrb[0].mxu1  ;;  %v1487_v60 = vcombine.high %v854_v57, %v854_v57  ;;  %v1494_v61 = vrot.slane %v854_v57, %v7493_v51 }
 0x11f   : > { %10209 = vst [vmem:[#allocation10_spill] sm:$0xff] %v7508_v59  ;;  %v1550_v62 = vrot.slane %v1536_v55, %v7493_v51  ;;  %v1551_v63 = vcombine.high %v1543_v56, %v1543_v56  ;;  %v1559_v0 = vrot.slane %v1543_v56, %v7493_v51  ;;  %v7513_v1 = vpop.f32.mrb[1].mxu1 }
 0x120   : > { %10210 = vst [vmem:[#allocation11_spill] sm:$0xff] %v7513_v1  ;;  %v1501_v3 = vrot.slane %v1487_v60, %v7493_v51  ;;  %v1502_v4 = vcombine.high %v1494_v61, %v1494_v61  ;;  %v1510_v5 = vrot.slane %v1494_v61, %v7493_v51  ;;  %v6101_v6 = vpop.f32.mrb[2].mxu0 }
 0x121   : > { %v1552_v8 = vcombine.high %v1550_v62, %v1550_v62  ;;  %v1566_v9 = vrot.slane %v1550_v62, %v7493_v51  ;;  %v1573_v16 = vrot.slane %v1551_v63, %v7493_v51  ;;  %v1581_v18 = vcombine.high %v1559_v0, %v1559_v0  ;;  %v866_v19 = vpop.f32.mrb[3].mxu0 }
 0x122   : > { %v7522_v22 = vrot.slane %v1559_v0, %v7506_v58  ;;  %v1503_v23 = vcombine.high %v1501_v3, %v1501_v3  ;;  %v1517_v24 = vrot.slane %v1501_v3, %v7493_v51  ;;  %v1524_v25 = vrot.slane %v1502_v4, %v7493_v51  ;;  %v7526_v26 = vpop.f32.mrb[2].mxu1 }
 0x123   : > { %10211 = vst [vmem:[#allocation12_spill] sm:$0xff] %v7526_v26  ;;  %v1580_v27 = vrot.slane %v1552_v8, %v7493_v51  ;;  %v1582_v28 = vcombine.high %v1566_v9, %v1566_v9  ;;  %v1583_v30 = vcombine.high %v1573_v16, %v1573_v16  ;;  %v7530_v33 = vrot.slane %v1573_v16, %v7506_v58  ;;  %v7532_v34 = vpop.f32.mrb[3].mxu1 }
 0x124   : > { %10212 = vst [vmem:[#allocation13_spill] sm:$0xff] %v7532_v34  ;;  %v7535_v35 = vrot.slane %v1581_v18, %v7506_v58  ;;  %v7538_v21 = vrot.slane %v1566_v9, %v7506_v58  ;;  %v1531_v36 = vrot.slane %v1503_v23, %v7493_v51  ;;  %v1532_v10 = vcombine.high %v1510_v5, %v1510_v5 }
 0x125   : > { %v1584_v11 = vcombine.high %v1580_v27, %v1580_v27  ;;  %v7542_v29 = vrot.slane %v1583_v30, %v7506_v58  ;;  %v7545_v31 = vrot.slane %v1580_v27, %v7506_v58  ;;  %v7548_v32 = vrot.slane %v1582_v28, %v7506_v58 }
 0x126   : > { %v1533_v37 = vcombine.high %v1517_v24, %v1517_v24  ;;  %v1534_v38 = vcombine.high %v1524_v25, %v1524_v25  ;;  %v1535_v39 = vcombine.high %v1531_v36, %v1531_v36  ;;  %v7551_v42 = vrot.slane %v1510_v5, %v7506_v58 }
 0x127   : > { %v7554_v43 = vrot.slane %v1584_v11, %v7506_v58  ;;  %v7557_v44 = vrot.slane %v1524_v25, %v7506_v58  ;;  %v7560_v47 = vrot.slane %v1532_v10, %v7506_v58  ;;  %v7563_v48 = vrot.slane %v1517_v24, %v7506_v58 }
 0x128   : > { %v7566_v53 = vrot.slane %v1534_v38, %v7506_v58  ;;  %v7569_v55 = vrot.slane %v1531_v36, %v7506_v58  ;;  %v7572_v56 = vrot.slane %v1533_v37, %v7506_v58  ;;  %v7575_v57 = vrot.slane %v1535_v39, %v7506_v58 }
 0x129   : > { %v1640_v60 = vrot.slane %v6101_v6, %v7493_v51  ;;  %v1585_v61 = vcombine.high %v866_v19, %v866_v19  ;;  %v1592_v62 = vrot.slane %v866_v19, %v7493_v51  ;;  %v1846_v63 = vmul.f32 %v7538_v21, %v7513_v1 }
 0x12a   : > { %v1847_v0 = vmul.f32 %v7508_v59, %v7538_v21  ;;  %v1814_v3 = vmul.f32 %v7563_v48, %v7513_v1  ;;  %v1815_v4 = vmul.f32 %v7508_v59, %v7563_v48  ;;  %v1830_v5 = vmul.f32 %v7522_v22, %v7513_v1 }
 0x12b   : > { %v1641_v8 = vcombine.high %v1640_v60, %v1640_v60  ;;  %v1648_v6 = vrot.slane %v1640_v60, %v7493_v51  ;;  %v1599_v9 = vrot.slane %v1585_v61, %v7493_v51  ;;  %v1600_v16 = vcombine.high %v1592_v62, %v1592_v62 }
 0x12c   : > { %v1608_v18 = vrot.slane %v1592_v62, %v7493_v51  ;;  %v2828_v19 = vand.u32 4294901760, %v1846_v63  ;;  %v2831_v23 = vand.u32 4294901760, %v1847_v0  ;;  %v1966_v24 = vand.u32 4294901760, %v1814_v3 }
 0x12d   : > { %v1655_v25 = vrot.slane %v1641_v8, %v7493_v51  ;;  %v1656_v27 = vcombine.high %v1648_v6, %v1648_v6  ;;  %v7594_v28 = vrot.slane %v1648_v6, %v7506_v58  ;;  %v1601_v30 = vcombine.high %v1599_v9, %v1599_v9 }
 0x12e   : > { %v1615_v36 = vrot.slane %v1599_v9, %v7493_v51  ;;  %v1622_v10 = vrot.slane %v1600_v16, %v7493_v51  ;;  %v1630_v11 = vcombine.high %v1608_v18, %v1608_v18  ;;  %v7599_v37 = vrot.slane %v1608_v18, %v7506_v58 }
 0x12f   : > { %10213 = vst [vmem:[#allocation14_spill] sm:$0xff] %v7594_v28  ;;  %v1657_v38 = vcombine.high %v1655_v25, %v1655_v25  ;;  %v7602_v39 = vrot.slane %v1655_v25, %v7506_v58  ;;  %v7605_v60 = vrot.slane %v1656_v27, %v7506_v58  ;;  %v1629_v61 = vrot.slane %v1601_v30, %v7493_v51 }
 0x130   : > { %10214 = vst [vmem:[#allocation15_spill] sm:$0xff] %v7599_v37  ;;  %v1631_v62 = vcombine.high %v1615_v36, %v1615_v36  ;;  %v1632_v8 = vcombine.high %v1622_v10, %v1622_v10  ;;  %v7609_v6 = vrot.slane %v1622_v10, %v7506_v58  ;;  %v7612_v9 = vrot.slane %v1630_v11, %v7506_v58 }
 0x131   : > { %10215 = vst [vmem:[#allocation16_spill] sm:$0xff] %v7602_v39  ;;  %10216 = vst [vmem:[#allocation17_spill] sm:$0xff] %v7605_v60  ;;  %v7615_v16 = vrot.slane %v1657_v38, %v7506_v58  ;;  %v1633_v18 = vcombine.high %v1629_v61, %v1629_v61  ;;  %v7618_v25 = vrot.slane %v1615_v36, %v7506_v58  ;;  %v1969_v36 = vand.u32 4294901760, %v1815_v4 }
 0x132   : > { %10217 = vst [vmem:[#allocation18_spill] sm:$0xff] %v7609_v6  ;;  %10218 = vst [vmem:[#allocation19_spill] sm:$0xff] %v7612_v9  ;;  %v7621_v27 = vrot.slane %v1629_v61, %v7506_v58  ;;  %v7624_v51 = vrot.slane %v1632_v8, %v7506_v58  ;;  %v7627_v30 = vrot.slane %v1631_v62, %v7506_v58  ;;  %v2780_v8 = vand.u32 4294901760, %v1830_v5 }
 0x133   : > { %10219 = vst [vmem:[#allocation20_spill] sm:$0xff] %v7615_v16  ;;  %10220 = vst [vmem:[#allocation21_spill] sm:$0xff] %v7618_v25  ;;  %v7629_v10 = vpack.c.bf16 %v2831_v23, %v2828_v19  ;;  %v7631_v11 = vsub.f32 %v1846_v63, %v2828_v19  ;;  %v7634_v38 = vrot.slane %v1633_v18, %v7506_v58 }
 0x134   : > { %10221 = vst [vmem:[#allocation22_spill] sm:$0xff] %v7621_v27  ;;  %10222 = vst [vmem:[#allocation23_spill] sm:$0xff] %v7624_v51  ;;  %v7636_v50 = vsub.f32 %v1847_v0, %v2831_v23  ;;  %v7638_v20 = vsub.f32 %v1814_v3, %v1966_v24  ;;  %v1831_v61 = vmul.f32 %v7508_v59, %v7522_v22 }
 0x135   : > { %10223 = vst [vmem:[#allocation24_spill] sm:$0xff] %v7627_v30  ;;  %10224 = vst [vmem:[#allocation25_spill] sm:$0xff] %v7629_v10  ;;  %6613 = vmatprep.subr.bf16.mxu0 %v7629_v10  ;;  %v1798_v62 = vmul.f32 %v7551_v42, %v7513_v1  ;;  %v1799_v63 = vmul.f32 %v7508_v59, %v7551_v42  ;;  %v7647_v19 = vpack.c.bf16 %v1969_v36, %v1966_v24 }
 0x136   : > { %10225 = vst [vmem:[#allocation26_spill] sm:$0xff] %v7631_v11  ;;  %10226 = vst [vmem:[#allocation27_spill] sm:$0xff] %v7634_v38  ;;  %v7649_v58 = vsub.f32 %v1815_v4, %v1969_v36  ;;  %v1848_v0 = vmul.f32 %v7538_v21, %v7532_v34  ;;  %v1849_v3 = vmul.f32 %v7526_v26, %v7538_v21  ;;  %v2783_v23 = vand.u32 4294901760, %v1831_v61 }
 0x137   : > { %10227 = vst [vmem:[#allocation28_spill] sm:$0xff] %v7636_v50  ;;  %10228 = vst [vmem:[#allocation29_spill] sm:$0xff] %v7638_v20  ;;  %v7655_v18 = vsub.f32 %v1830_v5, %v2780_v8  ;;  %v1918_v49 = vand.u32 4294901760, %v1798_v62  ;;  %v1921_v17 = vand.u32 4294901760, %v1799_v63  ;;  %6421 = vmatprep.subr.bf16.mxu1 %v7647_v19  ;;  %v1816_v24 = vmul.f32 %v7563_v48, %v7532_v34 }
 0x138   : > { %10229 = vst [vmem:[#allocation30_spill] sm:$0xff] %v7647_v19  ;;  %10230 = vst [vmem:[#allocation31_spill] sm:$0xff] %v7649_v58  ;;  %v2834_v7 = vand.u32 4294901760, %v1848_v0  ;;  %v2837_v2 = vand.u32 4294901760, %v1849_v3  ;;  %v1817_v4 = vmul.f32 %v7526_v26, %v7563_v48  ;;  %v7662_v36 = vpack.c.bf16 %v2783_v23, %v2780_v8 }
 0x139   : > { %10231 = vst [vmem:[#allocation32_spill] sm:$0xff] %v7655_v18  ;;  %v7664_v10 = vsub.f32 %v1831_v61, %v2783_v23  ;;  %v7666_v21 = vpack.c.bf16 %v1921_v17, %v1918_v49  ;;  %v7668_v5 = vsub.f32 %v1798_v62, %v1918_v49  ;;  %v7670_v16 = vsub.f32 %v1799_v63, %v1921_v17 }
 0x13a   : > { %10232 = vst [vmem:[#allocation33_spill] sm:$0xff] %v7662_v36  ;;  %v7672_v60 = vpack.c.bf16 %v2837_v2, %v2834_v7  ;;  %v7674_v39 = vsub.f32 %v1848_v0, %v2834_v7  ;;  %v7676_v28 = vsub.f32 %v1849_v3, %v2837_v2  ;;  %6615 = vmatpush3.bf16.msra.mxu0 %v7662_v36  ;;  %v1972_v48 = vand.u32 4294901760, %v1816_v24 }
 0x13b   : > { %10233 = vst [vmem:[#allocation34_spill] sm:$0xff] %v7664_v10  ;;  %10234 = vst [vmem:[#allocation35_spill] sm:$0xff] %v7666_v21  ;;  %6423 = vmatpush3.bf16.msra.mxu1 %v7666_v21  ;;  %v1975_v8 = vand.u32 4294901760, %v1817_v4  ;;  %v1832_v61 = vmul.f32 %v7522_v22, %v7532_v34  ;;  %v1833_v49 = vmul.f32 %v7526_v26, %v7522_v22 }
 0x13c   : > { %10235 = vst [vmem:[#allocation36_spill] sm:$0xff] %v7668_v5  ;;  %10236 = vst [vmem:[#allocation37_spill] sm:$0xff] %v7670_v16  ;;  %6617 = vmatprep.subr.bf16.mxu0 %v7672_v60  ;;  %v1800_v17 = vmul.f32 %v7551_v42, %v7532_v34  ;;  %v1801_v2 = vmul.f32 %v7526_v26, %v7551_v42  ;;  %v1850_v7 = vmul.f32 %v7545_v31, %v7513_v1 }
 0x13d   : > { %10237 = vst [vmem:[#allocation38_spill] sm:$0xff] %v7672_v60  ;;  %10238 = vst [vmem:[#allocation39_spill] sm:$0xff] %v7674_v39  ;;  %v1851_v62 = vmul.f32 %v7508_v59, %v7545_v31  ;;  %v7693_v63 = vpack.c.bf16 %v1975_v8, %v1972_v48  ;;  %v7695_v0 = vsub.f32 %v1816_v24, %v1972_v48  ;;  %v2786_v22 = vand.u32 4294901760, %v1832_v61 }
 0x13e   : > { %10239 = vst [vmem:[#allocation40_spill] sm:$0xff] %v7676_v28  ;;  %v7697_v3 = vsub.f32 %v1817_v4, %v1975_v8  ;;  %v2789_v23 = vand.u32 4294901760, %v1833_v49  ;;  %v1924_v60 = vand.u32 4294901760, %v1800_v17  ;;  %v1927_v36 = vand.u32 4294901760, %v1801_v2 }
 0x13f   : > { %10240 = vst [vmem:[#allocation41_spill] sm:$0xff] %v7693_v63  ;;  %10241 = vst [vmem:[#allocation42_spill] sm:$0xff] %v7695_v0  ;;  %v2840_v21 = vand.u32 4294901760, %v1850_v7  ;;  %6425 = vmatprep.subr.bf16.mxu1 %v7693_v63  ;;  %v7700_v42 = vsub.f32 %v1832_v61, %v2786_v22  ;;  %v2843_v45 = vand.u32 4294901760, %v1851_v62  ;;  %v1818_v19 = vmul.f32 %v7569_v55, %v7513_v1 }
 0x140   : > { %10242 = vst [vmem:[#allocation43_spill] sm:$0xff] %v7697_v3  ;;  %v1819_v51 = vmul.f32 %v7508_v59, %v7569_v55  ;;  %v7706_v24 = vpack.c.bf16 %v2789_v23, %v2786_v22  ;;  %v7708_v4 = vsub.f32 %v1833_v49, %v2789_v23  ;;  %v7710_v48 = vpack.c.bf16 %v1927_v36, %v1924_v60 }
 0x141   : > { %10243 = vst [vmem:[#allocation44_spill] sm:$0xff] %v7700_v42  ;;  %v7712_v8 = vsub.f32 %v1800_v17, %v1924_v60  ;;  %v7714_v41 = vsub.f32 %v1801_v2, %v1927_v36  ;;  %v7716_v63 = vpack.c.bf16 %v2843_v45, %v2840_v21  ;;  %v7718_v61 = vsub.f32 %v1850_v7, %v2840_v21 }
 0x142   : > { %10244 = vst [vmem:[#allocation45_spill] sm:$0xff] %v7706_v24  ;;  %10245 = vst [vmem:[#allocation46_spill] sm:$0xff] %v7708_v4  ;;  %v7720_v38 = vsub.f32 %v1851_v62, %v2843_v45  ;;  %6619 = vmatpush3.bf16.msra.mxu0 %v7706_v24  ;;  %6427 = vmatpush3.bf16.msra.mxu1 %v7710_v48  ;;  %v1978_v22 = vand.u32 4294901760, %v1818_v19  ;;  %v1981_v9 = vand.u32 4294901760, %v1819_v51 }
 0x143   : > { %10246 = vst [vmem:[#allocation47_spill] sm:$0xff] %v7710_v48  ;;  %10247 = vst [vmem:[#allocation48_spill] sm:$0xff] %v7712_v8  ;;  %v1834_v49 = vmul.f32 %v7530_v33, %v7513_v1  ;;  %v1835_v60 = vmul.f32 %v7508_v59, %v7530_v33  ;;  %6621 = vmatprep.subr.bf16.mxu0 %v7716_v63  ;;  %v1802_v36 = vmul.f32 %v7557_v44, %v7513_v1 }
 0x144   : > { %10248 = vst [vmem:[#allocation49_spill] sm:$0xff] %v7714_v41  ;;  %10249 = vst [vmem:[#allocation50_spill] sm:$0xff] %v7716_v63  ;;  %v1803_v45 = vmul.f32 %v7508_v59, %v7557_v44  ;;  %v1852_v21 = vmul.f32 %v7545_v31, %v7532_v34  ;;  %v1853_v17 = vmul.f32 %v7526_v26, %v7545_v31 }
 0x145   : > { %10250 = vst [vmem:[#allocation51_spill] sm:$0xff] %v7718_v61  ;;  %10251 = vst [vmem:[#allocation52_spill] sm:$0xff] %v7720_v38  ;;  %v7737_v2 = vpack.c.bf16 %v1981_v9, %v1978_v22  ;;  %v7739_v7 = vsub.f32 %v1818_v19, %v1978_v22  ;;  %v7741_v62 = vsub.f32 %v1819_v51, %v1981_v9  ;;  %v2792_v23 = vand.u32 4294901760, %v1834_v49 }
 0x146   : > { %v2795_v63 = vand.u32 4294901760, %v1835_v60  ;;  %v1930_v24 = vand.u32 4294901760, %v1802_v36  ;;  %v1933_v48 = vand.u32 4294901760, %v1803_v45  ;;  %v2846_v30 = vand.u32 4294901760, %v1852_v21 }
 0x147   : > { %10252 = vst [vmem:[#allocation53_spill] sm:$0xff] %v7737_v2  ;;  %10253 = vst [vmem:[#allocation54_spill] sm:$0xff] %v7739_v7  ;;  %6429 = vmatprep.subr.bf16.mxu1 %v7737_v2  ;;  %v7744_v6 = vsub.f32 %v1834_v49, %v2792_v23  ;;  %v2849_v27 = vand.u32 4294901760, %v1853_v17  ;;  %v1820_v37 = vmul.f32 %v7569_v55, %v7532_v34 }
 0x148   : > { %10254 = vst [vmem:[#allocation55_spill] sm:$0xff] %v7741_v62  ;;  %v1821_v31 = vmul.f32 %v7526_v26, %v7569_v55  ;;  %v7750_v19 = vpack.c.bf16 %v2795_v63, %v2792_v23  ;;  %v7752_v9 = vsub.f32 %v1835_v60, %v2795_v63  ;;  %v7754_v51 = vpack.c.bf16 %v1933_v48, %v1930_v24 }
 0x149   : > { %10255 = vst [vmem:[#allocation56_spill] sm:$0xff] %v7744_v6  ;;  %v7756_v22 = vsub.f32 %v1802_v36, %v1930_v24  ;;  %v7758_v25 = vsub.f32 %v1803_v45, %v1933_v48  ;;  %v7760_v2 = vpack.c.bf16 %v2849_v27, %v2846_v30  ;;  %v7762_v49 = vsub.f32 %v1852_v21, %v2846_v30 }
 0x14a   : > { %10256 = vst [vmem:[#allocation57_spill] sm:$0xff] %v7750_v19  ;;  %10257 = vst [vmem:[#allocation58_spill] sm:$0xff] %v7752_v9  ;;  %v7764_v14 = vsub.f32 %v1853_v17, %v2849_v27  ;;  %6623 = vmatpush3.bf16.msra.mxu0 %v7750_v19  ;;  %6431 = vmatpush3.bf16.msra.mxu1 %v7754_v51  ;;  %v1984_v55 = vand.u32 4294901760, %v1820_v37  ;;  %v1987_v23 = vand.u32 4294901760, %v1821_v31 }
 0x14b   : > { %10258 = vst [vmem:[#allocation59_spill] sm:$0xff] %v7754_v51  ;;  %10259 = vst [vmem:[#allocation60_spill] sm:$0xff] %v7756_v22  ;;  %v1836_v63 = vmul.f32 %v7530_v33, %v7532_v34  ;;  %v1837_v24 = vmul.f32 %v7526_v26, %v7530_v33  ;;  %6625 = vmatprep.subr.bf16.mxu0 %v7760_v2  ;;  %v1804_v30 = vmul.f32 %v7557_v44, %v7532_v34 }
 0x14c   : > { %10260 = vst [vmem:[#allocation61_spill] sm:$0xff] %v7758_v25  ;;  %10261 = vst [vmem:[#allocation62_spill] sm:$0xff] %v7760_v2  ;;  %v1805_v27 = vmul.f32 %v7526_v26, %v7557_v44  ;;  %v1854_v48 = vmul.f32 %v7548_v32, %v7513_v1  ;;  %v1855_v60 = vmul.f32 %v7508_v59, %v7548_v32 }
 0x14d   : > { %10262 = vst [vmem:[#allocation63_spill] sm:$0xff] %v7762_v49  ;;  %10263 = vst [vmem:[#allocation64_spill] sm:$0xff] %v7764_v14  ;;  %v7781_v36 = vpack.c.bf16 %v1987_v23, %v1984_v55  ;;  %v7783_v45 = vsub.f32 %v1820_v37, %v1984_v55  ;;  %v7785_v21 = vsub.f32 %v1821_v31, %v1987_v23  ;;  %v2798_v33 = vand.u32 4294901760, %v1836_v63 }
 0x14e   : > { %v2801_v17 = vand.u32 4294901760, %v1837_v24  ;;  %v1936_v2 = vand.u32 4294901760, %v1804_v30  ;;  %v1939_v19 = vand.u32 4294901760, %v1805_v27  ;;  %v2852_v51 = vand.u32 4294901760, %v1854_v48 }
 0x14f   : > { %10264 = vst [vmem:[#allocation65_spill] sm:$0xff] %v7781_v36  ;;  %10265 = vst [vmem:[#allocation66_spill] sm:$0xff] %v7783_v45  ;;  %6433 = vmatprep.subr.bf16.mxu1 %v7781_v36  ;;  %v7788_v44 = vsub.f32 %v1836_v63, %v2798_v33  ;;  %v2855_v40 = vand.u32 4294901760, %v1855_v60  ;;  %v1822_v13 = vmul.f32 %v7572_v56, %v7513_v1 }
 0x150   : > { %10266 = vst [vmem:[#allocation67_spill] sm:$0xff] %v7785_v21  ;;  %v1823_v46 = vmul.f32 %v7508_v59, %v7572_v56  ;;  %v7794_v37 = vpack.c.bf16 %v2801_v17, %v2798_v33  ;;  %v7796_v31 = vsub.f32 %v1837_v24, %v2801_v17  ;;  %v7798_v55 = vpack.c.bf16 %v1939_v19, %v1936_v2 }
 0x151   : > { %10267 = vst [vmem:[#allocation68_spill] sm:$0xff] %v7788_v44  ;;  %v7800_v23 = vsub.f32 %v1804_v30, %v1936_v2  ;;  %v7802_v21 = vsub.f32 %v1805_v27, %v1939_v19  ;;  %v7804_v36 = vpack.c.bf16 %v2855_v40, %v2852_v51  ;;  %v7806_v63 = vsub.f32 %v1854_v48, %v2852_v51 }
 0x152   : > { %10268 = vst [vmem:[#allocation69_spill] sm:$0xff] %v7794_v37  ;;  %10269 = vst [vmem:[#allocation70_spill] sm:$0xff] %v7796_v31  ;;  %v7808_v44 = vsub.f32 %v1855_v60, %v2855_v40  ;;  %6627 = vmatpush3.bf16.msra.mxu0 %v7794_v37  ;;  %6435 = vmatpush3.bf16.msra.mxu1 %v7798_v55  ;;  %v1990_v33 = vand.u32 4294901760, %v1822_v13  ;;  %v1993_v45 = vand.u32 4294901760, %v1823_v46 }
 0x153   : > { %10270 = vst [vmem:[#allocation71_spill] sm:$0xff] %v7798_v55  ;;  %10271 = vst [vmem:[#allocation72_spill] sm:$0xff] %v7800_v23  ;;  %v1838_v24 = vmul.f32 %v7535_v35, %v7513_v1  ;;  %v1839_v2 = vmul.f32 %v7508_v59, %v7535_v35  ;;  %6629 = vmatprep.subr.bf16.mxu0 %v7804_v36  ;;  %v1806_v19 = vmul.f32 %v7560_v47, %v7513_v1 }
 0x154   : > { %10272 = vst [vmem:[#allocation73_spill] sm:$0xff] %v7802_v21  ;;  %10273 = vst [vmem:[#allocation74_spill] sm:$0xff] %v7804_v36  ;;  %v1807_v40 = vmul.f32 %v7508_v59, %v7560_v47  ;;  %v1856_v51 = vmul.f32 %v7548_v32, %v7532_v34  ;;  %v1857_v30 = vmul.f32 %v7526_v26, %v7548_v32 }
 0x155   : > { %10274 = vst [vmem:[#allocation75_spill] sm:$0xff] %v7806_v63  ;;  %10275 = vst [vmem:[#allocation76_spill] sm:$0xff] %v7808_v44  ;;  %v7825_v27 = vpack.c.bf16 %v1993_v45, %v1990_v33  ;;  %v7827_v48 = vsub.f32 %v1822_v13, %v1990_v33  ;;  %v7829_v60 = vsub.f32 %v1823_v46, %v1993_v45  ;;  %v2804_v17 = vand.u32 4294901760, %v1838_v24 }
 0x156   : > { %v2807_v36 = vand.u32 4294901760, %v1839_v2  ;;  %v1942_v37 = vand.u32 4294901760, %v1806_v19  ;;  %v1945_v55 = vand.u32 4294901760, %v1807_v40  ;;  %v2858_v44 = vand.u32 4294901760, %v1856_v51 }
 0x157   : > { %10276 = vst [vmem:[#allocation77_spill] sm:$0xff] %v7825_v27  ;;  %10277 = vst [vmem:[#allocation78_spill] sm:$0xff] %v7827_v48  ;;  %6437 = vmatprep.subr.bf16.mxu1 %v7825_v27  ;;  %v7832_v63 = vsub.f32 %v1838_v24, %v2804_v17  ;;  %v2861_v21 = vand.u32 4294901760, %v1857_v30  ;;  %v1824_v23 = vmul.f32 %v7572_v56, %v7532_v34 }
 0x158   : > { %10278 = vst [vmem:[#allocation79_spill] sm:$0xff] %v7829_v60  ;;  %v1825_v32 = vmul.f32 %v7526_v26, %v7572_v56  ;;  %v7838_v13 = vpack.c.bf16 %v2807_v36, %v2804_v17  ;;  %v7840_v46 = vsub.f32 %v1839_v2, %v2807_v36  ;;  %v7842_v45 = vpack.c.bf16 %v1945_v55, %v1942_v37 }
 0x159   : > { %10279 = vst [vmem:[#allocation80_spill] sm:$0xff] %v7832_v63  ;;  %v7844_v33 = vsub.f32 %v1806_v19, %v1942_v37  ;;  %v7846_v60 = vsub.f32 %v1807_v40, %v1945_v55  ;;  %v7848_v27 = vpack.c.bf16 %v2861_v21, %v2858_v44  ;;  %v7850_v24 = vsub.f32 %v1856_v51, %v2858_v44 }
 0x15a   : > { %10280 = vst [vmem:[#allocation81_spill] sm:$0xff] %v7838_v13  ;;  %10281 = vst [vmem:[#allocation82_spill] sm:$0xff] %v7840_v46  ;;  %v7852_v63 = vsub.f32 %v1857_v30, %v2861_v21  ;;  %6631 = vmatpush3.bf16.msra.mxu0 %v7838_v13  ;;  %6439 = vmatpush3.bf16.msra.mxu1 %v7842_v45  ;;  %v1996_v56 = vand.u32 4294901760, %v1824_v23  ;;  %v1999_v17 = vand.u32 4294901760, %v1825_v32 }
 0x15b   : > { %10282 = vst [vmem:[#allocation83_spill] sm:$0xff] %v7842_v45  ;;  %10283 = vst [vmem:[#allocation84_spill] sm:$0xff] %v7844_v33  ;;  %v1840_v36 = vmul.f32 %v7535_v35, %v7532_v34  ;;  %v1841_v37 = vmul.f32 %v7526_v26, %v7535_v35  ;;  %6633 = vmatprep.subr.bf16.mxu0 %v7848_v27  ;;  %v1808_v44 = vmul.f32 %v7560_v47, %v7532_v34 }
 0x15c   : > { %10284 = vst [vmem:[#allocation85_spill] sm:$0xff] %v7846_v60  ;;  %10285 = vst [vmem:[#allocation86_spill] sm:$0xff] %v7848_v27  ;;  %v1809_v21 = vmul.f32 %v7526_v26, %v7560_v47  ;;  %v1858_v55 = vmul.f32 %v7554_v43, %v7513_v1  ;;  %v1859_v2 = vmul.f32 %v7508_v59, %v7554_v43 }
 0x15d   : > { %10286 = vst [vmem:[#allocation87_spill] sm:$0xff] %v7850_v24  ;;  %10287 = vst [vmem:[#allocation88_spill] sm:$0xff] %v7852_v63  ;;  %v7869_v19 = vpack.c.bf16 %v1999_v17, %v1996_v56  ;;  %v7871_v40 = vsub.f32 %v1824_v23, %v1996_v56  ;;  %v7873_v51 = vsub.f32 %v1825_v32, %v1999_v17  ;;  %v2810_v35 = vand.u32 4294901760, %v1840_v36 }
 0x15e   : > { %v2813_v30 = vand.u32 4294901760, %v1841_v37  ;;  %v1948_v27 = vand.u32 4294901760, %v1808_v44  ;;  %v1951_v13 = vand.u32 4294901760, %v1809_v21  ;;  %v2864_v45 = vand.u32 4294901760, %v1858_v55 }
 0x15f   : > { %10288 = vst [vmem:[#allocation89_spill] sm:$0xff] %v7869_v19  ;;  %10289 = vst [vmem:[#allocation90_spill] sm:$0xff] %v7871_v40  ;;  %6441 = vmatprep.subr.bf16.mxu1 %v7869_v19  ;;  %v7876_v47 = vsub.f32 %v1840_v36, %v2810_v35  ;;  %v2867_v63 = vand.u32 4294901760, %v1859_v2  ;;  %v1826_v24 = vmul.f32 %v7575_v57, %v7513_v1 }
 0x160   : > { %10290 = vst [vmem:[#allocation91_spill] sm:$0xff] %v7873_v51  ;;  %v1827_v60 = vmul.f32 %v7508_v59, %v7575_v57  ;;  %v7882_v23 = vpack.c.bf16 %v2813_v30, %v2810_v35  ;;  %v7884_v32 = vsub.f32 %v1841_v37, %v2813_v30  ;;  %v7886_v56 = vpack.c.bf16 %v1951_v13, %v1948_v27 }
 0x161   : > { %10291 = vst [vmem:[#allocation92_spill] sm:$0xff] %v7876_v47  ;;  %v7888_v17 = vsub.f32 %v1808_v44, %v1948_v27  ;;  %v7890_v51 = vsub.f32 %v1809_v21, %v1951_v13  ;;  %v7892_v19 = vpack.c.bf16 %v2867_v63, %v2864_v45  ;;  %v7894_v36 = vsub.f32 %v1858_v55, %v2864_v45 }
 0x162   : > { %10292 = vst [vmem:[#allocation93_spill] sm:$0xff] %v7882_v23  ;;  %10293 = vst [vmem:[#allocation94_spill] sm:$0xff] %v7884_v32  ;;  %v7896_v47 = vsub.f32 %v1859_v2, %v2867_v63  ;;  %6635 = vmatpush3.bf16.msra.mxu0 %v7882_v23  ;;  %6443 = vmatpush3.bf16.msra.mxu1 %v7886_v56  ;;  %v2002_v35 = vand.u32 4294901760, %v1826_v24  ;;  %v2005_v40 = vand.u32 4294901760, %v1827_v60 }
 0x163   : > { %10294 = vst [vmem:[#allocation95_spill] sm:$0xff] %v7886_v56  ;;  %10295 = vst [vmem:[#allocation96_spill] sm:$0xff] %v7892_v19  ;;  %v1842_v37 = vmul.f32 %v7542_v29, %v7513_v1  ;;  %v1843_v27 = vmul.f32 %v7508_v59, %v7542_v29  ;;  %6637 = vmatprep.subr.bf16.mxu0 %v7892_v19  ;;  %v1810_v13 = vmul.f32 %v7566_v53, %v7513_v1 }
 0x164   : > { %10296 = vst [vmem:[#allocation97_spill] sm:$0xff] %v7894_v36  ;;  %10297 = vst [vmem:[#allocation98_spill] sm:$0xff] %v7896_v47  ;;  %v1811_v63 = vmul.f32 %v7508_v59, %v7566_v53  ;;  %v1860_v45 = vmul.f32 %v7554_v43, %v7532_v34  ;;  %v1861_v44 = vmul.f32 %v7526_v26, %v7554_v43 }
 0x165   : > { %v7913_v21 = vpack.c.bf16 %v2005_v40, %v2002_v35  ;;  %v7915_v55 = vsub.f32 %v1826_v24, %v2002_v35  ;;  %v7917_v2 = vsub.f32 %v1827_v60, %v2005_v40  ;;  %v2816_v30 = vand.u32 4294901760, %v1842_v37 }
 0x166   : > { %v2819_v19 = vand.u32 4294901760, %v1843_v27  ;;  %v1954_v23 = vand.u32 4294901760, %v1810_v13  ;;  %v1957_v56 = vand.u32 4294901760, %v1811_v63  ;;  %v2870_v1 = vand.u32 4294901760, %v1860_v45 }
 0x167   : > { %10298 = vst [vmem:[#allocation99_spill] sm:$0xff] %v7913_v21  ;;  %10299 = vst [vmem:[#allocation100_spill] sm:$0xff] %v7917_v2  ;;  %6445 = vmatprep.subr.bf16.mxu1 %v7913_v21  ;;  %v7920_v59 = vsub.f32 %v1842_v37, %v2816_v30  ;;  %v2873_v47 = vand.u32 4294901760, %v1861_v44  ;;  %v1828_v36 = vmul.f32 %v7575_v57, %v7532_v34 }
 0x168   : > { %v1829_v43 = vmul.f32 %v7526_v26, %v7575_v57  ;;  %v7926_v24 = vpack.c.bf16 %v2819_v19, %v2816_v30  ;;  %v7928_v60 = vsub.f32 %v1843_v27, %v2819_v19  ;;  %v7930_v40 = vpack.c.bf16 %v1957_v56, %v1954_v23 }
 0x169   : > { %10300 = vst [vmem:[#allocation101_spill] sm:$0xff] %v7920_v59  ;;  %v7932_v35 = vsub.f32 %v1810_v13, %v1954_v23  ;;  %v7934_v2 = vsub.f32 %v1811_v63, %v1957_v56  ;;  %v7936_v21 = vpack.c.bf16 %v2873_v47, %v2870_v1  ;;  %v7938_v37 = vsub.f32 %v1860_v45, %v2870_v1 }
 0x16a   : > { %10301 = vst [vmem:[#allocation102_spill] sm:$0xff] %v7926_v24  ;;  %10302 = vst [vmem:[#allocation103_spill] sm:$0xff] %v7928_v60  ;;  %v7940_v59 = vsub.f32 %v1861_v44, %v2873_v47  ;;  %6639 = vmatpush3.bf16.msra.mxu0 %v7926_v24  ;;  %6447 = vmatpush3.bf16.msra.mxu1 %v7930_v40  ;;  %v2008_v57 = vand.u32 4294901760, %v1828_v36  ;;  %v2011_v30 = vand.u32 4294901760, %v1829_v43  ;;  %v9923_v27 = vand.u32 4294901760, %v7638_v20 }
 0x16b   : > { %10303 = vst [vmem:[#allocation104_spill] sm:$0xff] %v7930_v40  ;;  %10304 = vst [vmem:[#allocation105_spill] sm:$0xff] %v7936_v21  ;;  %v1844_v19 = vmul.f32 %v7542_v29, %v7532_v34  ;;  %v1845_v23 = vmul.f32 %v7526_v26, %v7542_v29  ;;  %6641 = vmatprep.subr.bf16.mxu0 %v7936_v21  ;;  %v1812_v1 = vmul.f32 %v7566_v53, %v7532_v34 }
 0x16c   : > { %10305 = vst [vmem:[#allocation106_spill] sm:$0xff] %v7938_v37  ;;  %10306 = vst [vmem:[#allocation107_spill] sm:$0xff] %v7940_v59  ;;  %v1813_v47 = vmul.f32 %v7526_v26, %v7566_v53  ;;  %v6676_v56 = vpack.c.bf16 %v7636_v50, %v7631_v11  ;;  %v7956_v13 = vpack.c.bf16 %v2011_v30, %v2008_v57  ;;  %v9929_v26 = vand.u32 4294901760, %v7649_v58 }
 0x16d   : > { %v7958_v63 = vsub.f32 %v1828_v36, %v2008_v57  ;;  %v7960_v45 = vsub.f32 %v1829_v43, %v2011_v30  ;;  %v2822_v29 = vand.u32 4294901760, %v1844_v19  ;;  %v2825_v44 = vand.u32 4294901760, %v1845_v23 }
 0x16e   : > { %10307 = vst [vmem:[#allocation108_spill] sm:$0xff] %v7956_v13  ;;  %v1960_v21 = vand.u32 4294901760, %v1812_v1  ;;  %v1963_v24 = vand.u32 4294901760, %v1813_v47  ;;  %v2145_v40 = vsub.f32 %v7638_v20, %v9923_v27  ;;  %6449 = vmatprep.subr.bf16.mxu1 %v7956_v13  ;;  %v6678_v36 = vpack.c.bf16 %v7664_v10, %v7655_v18 }
 0x16f   : > { %v7966_v53 = vsub.f32 %v1844_v19, %v2822_v29  ;;  %v9928_v43 = vand.u32 4294901760, %v7668_v5  ;;  %v7972_v57 = vpack.c.bf16 %v2825_v44, %v2822_v29  ;;  %v7974_v30 = vsub.f32 %v1845_v23, %v2825_v44 }
 0x170   : > { %v7976_v34 = vpack.c.bf16 %v1963_v24, %v1960_v21  ;;  %v7978_v50 = vsub.f32 %v1812_v1, %v1960_v21  ;;  %v7980_v27 = vsub.f32 %v1813_v47, %v1963_v24  ;;  %v2146_v13 = vand.u32 4294901760, %v2145_v40 }
 0x171   : > { %10308 = vst [vmem:[#allocation109_spill] sm:$0xff] %v7966_v53  ;;  %10309 = vst [vmem:[#allocation110_spill] sm:$0xff] %v7972_v57  ;;  %v2152_v19 = vsub.f32 %v7649_v58, %v9929_v26  ;;  %v2033_v10 = vsub.f32 %v7668_v5, %v9928_v43  ;;  %6643 = vmatpush3.bf16.msra.mxu0 %v7972_v57  ;;  %v9934_v23 = vand.u32 4294901760, %v7670_v16  ;;  %v9935_v24 = vand.u32 4294901760, %v7695_v0 }
 0x172   : > { %10310 = vst [vmem:[#allocation111_spill] sm:$0xff] %v7974_v30  ;;  %10311 = vst [vmem:[#allocation112_spill] sm:$0xff] %v7976_v34  ;;  %6451 = vmatpush3.bf16.msra.mxu1 %v7976_v34  ;;  %v6680_v21 = vpack.c.bf16 %v7676_v28, %v7674_v39  ;;  %v9938_v40 = vand.u32 4294901760, %v7697_v3  ;;  %6677 = vmatprep.subr.bf16.mxu0 %v6676_v56  ;;  %v6682_v29 = vpack.c.bf16 %v7708_v4, %v7700_v42 }
 0x173   : > { %v2153_v1 = vand.u32 4294901760, %v2152_v19  ;;  %v2034_v47 = vand.u32 4294901760, %v2033_v10  ;;  %v2040_v43 = vsub.f32 %v7670_v16, %v9934_v23  ;;  %v2159_v26 = vsub.f32 %v7695_v0, %v9935_v24 }
 0x174   : > { %v2166_v57 = vsub.f32 %v7697_v3, %v9938_v40  ;;  %v10312_v19 = vand.u32 4294901760, %v7498_v52  ;;  %v10313_v44 = vand.u32 4294901760, %v7503_v54  ;;  %v10314_v34 = vand.u32 4294901760, %v7712_v8 }
 0x175   : > { %v6452_v10 = vpack.c.bf16 %v2153_v1, %v2146_v13  ;;  %v6684_v24 = vpack.c.bf16 %v7720_v38, %v7718_v61  ;;  %v9942_v4 = vand.u32 4294901760, %v7739_v7  ;;  %v2041_v40 = vand.u32 4294901760, %v2040_v43 }
 0x176   : > { %2024 = vmatmul.mubr.f32.vlgmr.msra.gmra.mrb[4].mxu1 %v10312_v19  ;;  %2886 = vmatmul.mubr.f32.vlgmr.msra.gmra.mrb[4].mxu0 %v10313_v44  ;;  %v2047_v23 = vsub.f32 %v7712_v8, %v10314_v34  ;;  %v2160_v42 = vand.u32 4294901760, %v2159_v26  ;;  %v2167_v56 = vand.u32 4294901760, %v2166_v57  ;;  %v10315_v13 = vand.u32 4294901760, %v7714_v41 }
 0x177   : > { %6679 = vmatpush3.bf16.msra.mxu0 %v6678_v36  ;;  %2254 = vmatprep.mubr.f32.mxu1 %v7461_v12  ;;  %v2173_v34 = vsub.f32 %v7739_v7, %v9942_v4  ;;  %v9941_v1 = vand.u32 4294901760, %v7741_v62  ;;  %v6686_v36 = vpack.c.bf16 %v7752_v9, %v7744_v6  ;;  %v6454_v26 = vpack.c.bf16 %v2041_v40, %v2034_v47  ;;  %v10316_v40 = vld [vmem:[#allocation66_spill] sm:$0xff]  ;;  %v10318_v4 = vld [vmem:[#allocation68_spill] sm:$0xff] }
 0x178   : > { %v2054_v52 = vsub.f32 %v7714_v41, %v10315_v13  ;;  %6453 = vmatprep.subr.bf16.mxu1 %v6452_v10  ;;  %6681 = vmatprep.subr.bf16.mxu0 %v6680_v21  ;;  %v2048_v54 = vand.u32 4294901760, %v2047_v23  ;;  %v6456_v43 = vpack.c.bf16 %v2167_v56, %v2160_v42  ;;  %v9943_v44 = vand.u32 4294901760, %v7756_v22  ;;  %v10317_v56 = vld [vmem:[#allocation67_spill] sm:$0xff] }
 0x179   : > { %3253 = vmatprep.mubr.f32.mxu0 %v7469_v15  ;;  %v2174_v19 = vand.u32 4294901760, %v2173_v34  ;;  %v2180_v23 = vsub.f32 %v7741_v62, %v9941_v1  ;;  %v9947_v21 = vand.u32 4294901760, %v7758_v25  ;;  %v6688_v10 = vpack.c.bf16 %v7764_v14, %v7762_v49  ;;  %6455 = vmatpush3.bf16.msra.mxu1 %v6454_v26 }
 0x17a   : > { %v2055_v57 = vand.u32 4294901760, %v2054_v52  ;;  %v2061_v42 = vsub.f32 %v7756_v22, %v9943_v44  ;;  %v9954_v47 = vand.u32 4294901760, %v10316_v40  ;;  %v9955_v52 = vand.u32 4294901760, %v10317_v56  ;;  %6457 = vmatprep.subr.bf16.mxu1 %v6456_v43 }
 0x17b   : > { %6683 = vmatpush3.bf16.msra.mxu0 %v6682_v29  ;;  %v2181_v34 = vand.u32 4294901760, %v2180_v23  ;;  %v2068_v1 = vsub.f32 %v7758_v25, %v9947_v21  ;;  %v6690_v26 = vpack.c.bf16 %v7796_v31, %v10318_v4  ;;  %v10319_v29 = vld [vmem:[#allocation72_spill] sm:$0xff]  ;;  %v10321_v31 = vld [vmem:[#allocation75_spill] sm:$0xff] }
 0x17c   : > { %v6458_v13 = vpack.c.bf16 %v2055_v57, %v2048_v54  ;;  %6685 = vmatprep.subr.bf16.mxu0 %v6684_v24  ;;  %v9958_v54 = vand.u32 4294901760, %v10319_v29  ;;  %v2062_v57 = vand.u32 4294901760, %v2061_v42  ;;  %v2187_v44 = vsub.f32 %v10316_v40, %v9954_v47  ;;  %v10320_v24 = vld [vmem:[#allocation73_spill] sm:$0xff]  ;;  %v10322_v4 = vld [vmem:[#allocation76_spill] sm:$0xff] }
 0x17d   : > { %v2194_v43 = vsub.f32 %v10317_v56, %v9955_v52  ;;  %v9960_v23 = vand.u32 4294901760, %v10320_v24  ;;  %v6460_v15 = vpack.c.bf16 %v2181_v34, %v2174_v19  ;;  %v2069_v12 = vand.u32 4294901760, %v2068_v1  ;;  %v10323_v34 = vld [vmem:[#allocation79_spill] sm:$0xff] }
 0x17e   : > { %v2075_v21 = vsub.f32 %v10319_v29, %v9958_v54  ;;  %v6692_v14 = vpack.c.bf16 %v10322_v4, %v10321_v31  ;;  %6459 = vmatpush3.bf16.msra.mxu1 %v6458_v13  ;;  %v2188_v42 = vand.u32 4294901760, %v2187_v44  ;;  %v9961_v52 = vand.u32 4294901760, %v7827_v48  ;;  %v10324_v54 = vld [vmem:[#allocation80_spill] sm:$0xff] }
 0x17f   : > { %6687 = vmatpush3.bf16.msra.mxu0 %v6686_v36  ;;  %v2195_v49 = vand.u32 4294901760, %v2194_v43  ;;  %v2082_v47 = vsub.f32 %v10320_v24, %v9960_v23  ;;  %6461 = vmatprep.subr.bf16.mxu1 %v6460_v15  ;;  %v6462_v19 = vpack.c.bf16 %v2069_v12, %v2062_v57  ;;  %v9964_v9 = vand.u32 4294901760, %v10323_v34  ;;  %v10325_v12 = vld [vmem:[#allocation85_spill] sm:$0xff]  ;;  %v10327_v57 = vld [vmem:[#allocation88_spill] sm:$0xff]  ;;  %v10328_v23 = vld [vmem:[#allocation90_spill] sm:$0xff] }
 0x180   : > { %6689 = vmatprep.subr.bf16.mxu0 %v6688_v10  ;;  %v2076_v1 = vand.u32 4294901760, %v2075_v21  ;;  %v6694_v29 = vpack.c.bf16 %v7840_v46, %v10324_v54  ;;  %v2201_v36 = vsub.f32 %v7827_v48, %v9961_v52  ;;  %v9965_v44 = vand.u32 4294901760, %v7844_v33  ;;  %v10326_v21 = vld [vmem:[#allocation87_spill] sm:$0xff] }
 0x181   : > { %v6464_v4 = vpack.c.bf16 %v2195_v49, %v2188_v42  ;;  %v2083_v13 = vand.u32 4294901760, %v2082_v47  ;;  %v2208_v15 = vsub.f32 %v10323_v34, %v9964_v9  ;;  %v9966_v10 = vand.u32 4294901760, %v10325_v12  ;;  %v10329_v52 = vld [vmem:[#allocation91_spill] sm:$0xff] }
 0x182   : > { %v6696_v43 = vpack.c.bf16 %v10327_v57, %v10326_v21  ;;  %v9968_v31 = vand.u32 4294901760, %v10328_v23  ;;  %6463 = vmatpush3.bf16.msra.mxu1 %v6462_v19  ;;  %v2202_v47 = vand.u32 4294901760, %v2201_v36  ;;  %v2089_v42 = vsub.f32 %v7844_v33, %v9965_v44  ;;  %v10332_v21 = vld [vmem:[#allocation98_spill] sm:$0xff] }
 0x183   : > { %6691 = vmatpush3.bf16.msra.mxu0 %v6690_v26  ;;  %v6466_v49 = vpack.c.bf16 %v2083_v13, %v2076_v1  ;;  %v9969_v46 = vand.u32 4294901760, %v10329_v52  ;;  %6465 = vmatprep.subr.bf16.mxu1 %v6464_v4  ;;  %v2209_v9 = vand.u32 4294901760, %v2208_v15  ;;  %v2096_v54 = vsub.f32 %v10325_v12, %v9966_v10  ;;  %v10330_v26 = vld [vmem:[#allocation92_spill] sm:$0xff]  ;;  %v10331_v10 = vld [vmem:[#allocation97_spill] sm:$0xff] }
 0x184   : > { %6693 = vmatprep.subr.bf16.mxu0 %v6692_v14  ;;  %v2215_v19 = vsub.f32 %v10328_v23, %v9968_v31  ;;  %v6698_v1 = vpack.c.bf16 %v7884_v32, %v10330_v26  ;;  %v2090_v13 = vand.u32 4294901760, %v2089_v42  ;;  %v9972_v4 = vand.u32 4294901760, %v7888_v17 }
 0x185   : > { %v2222_v36 = vsub.f32 %v10329_v52, %v9969_v46  ;;  %v9976_v14 = vand.u32 4294901760, %v7890_v51  ;;  %v6468_v15 = vpack.c.bf16 %v2209_v9, %v2202_v47  ;;  %v2097_v44 = vand.u32 4294901760, %v2096_v54  ;;  %v10333_v54 = vld [vmem:[#allocation100_spill] sm:$0xff] }
 0x186   : > { %v2216_v57 = vand.u32 4294901760, %v2215_v19  ;;  %v6700_v12 = vpack.c.bf16 %v10332_v21, %v10331_v10  ;;  %6467 = vmatpush3.bf16.msra.mxu1 %v6466_v49  ;;  %v2103_v42 = vsub.f32 %v7888_v17, %v9972_v4  ;;  %v9974_v32 = vand.u32 4294901760, %v7915_v55  ;;  %v10334_v19 = vld [vmem:[#allocation101_spill] sm:$0xff] }
 0x187   : > { %6695 = vmatpush3.bf16.msra.mxu0 %v6694_v29  ;;  %v2223_v31 = vand.u32 4294901760, %v2222_v36  ;;  %v2110_v46 = vsub.f32 %v7890_v51, %v9976_v14  ;;  %6469 = vmatprep.subr.bf16.mxu1 %v6468_v15  ;;  %v6470_v9 = vpack.c.bf16 %v2097_v44, %v2090_v13  ;;  %v9973_v47 = vand.u32 4294901760, %v10333_v54 }
 0x188   : > { %6697 = vmatprep.subr.bf16.mxu0 %v6696_v43  ;;  %v6702_v49 = vpack.c.bf16 %v7928_v60, %v10334_v19  ;;  %v9975_v29 = vand.u32 4294901760, %v7932_v35  ;;  %v2104_v21 = vand.u32 4294901760, %v2103_v42  ;;  %v2229_v4 = vsub.f32 %v7915_v55, %v9974_v32 }
 0x189   : > { %v6472_v36 = vpack.c.bf16 %v2223_v31, %v2216_v57  ;;  %v2111_v10 = vand.u32 4294901760, %v2110_v46  ;;  %v2236_v15 = vsub.f32 %v10333_v54, %v9973_v47  ;;  %v9977_v43 = vand.u32 4294901760, %v7934_v2 }
 0x18a   : > { %v2117_v44 = vsub.f32 %v7932_v35, %v9975_v29  ;;  %v6704_v13 = vpack.c.bf16 %v7940_v59, %v7938_v37  ;;  %6471 = vmatpush3.bf16.msra.mxu1 %v6470_v9  ;;  %v2230_v46 = vand.u32 4294901760, %v2229_v4  ;;  %v9980_v57 = vand.u32 4294901760, %v7958_v63 }
 0x18b   : > { %6699 = vmatpush3.bf16.msra.mxu0 %v6698_v1  ;;  %v6474_v31 = vpack.c.bf16 %v2111_v10, %v2104_v21  ;;  %v9981_v42 = vand.u32 4294901760, %v7960_v45  ;;  %6473 = vmatprep.subr.bf16.mxu1 %v6472_v36  ;;  %v2237_v47 = vand.u32 4294901760, %v2236_v15  ;;  %v2124_v29 = vsub.f32 %v7934_v2, %v9977_v43  ;;  %v10335_v15 = vld [vmem:[#allocation28_spill] sm:$0xff] }
 0x18c   : > { %6701 = vmatprep.subr.bf16.mxu0 %v6700_v12  ;;  %v2118_v32 = vand.u32 4294901760, %v2117_v44  ;;  %v6706_v14 = vpack.c.bf16 %v7974_v30, %v7966_v53  ;;  %v2243_v10 = vsub.f32 %v7958_v63, %v9980_v57  ;;  %v9984_v1 = vand.u32 4294901760, %v7978_v50 }
 0x18d   : > { %v2250_v21 = vsub.f32 %v7960_v45, %v9981_v42  ;;  %v9987_v12 = vand.u32 4294901760, %v7980_v27  ;;  %v6476_v4 = vpack.c.bf16 %v2237_v47, %v2230_v46  ;;  %v2125_v9 = vand.u32 4294901760, %v2124_v29 }
 0x18e   : > { %v9986_v36 = vand.u32 4294901760, %v7631_v11  ;;  %v9985_v44 = vand.u32 4294901760, %v10335_v15  ;;  %6475 = vmatpush3.bf16.msra.mxu1 %v6474_v31  ;;  %v2244_v43 = vand.u32 4294901760, %v2243_v10  ;;  %v2131_v57 = vsub.f32 %v7978_v50, %v9984_v1  ;;  %v10352_v15 = vld [vmem:[#allocation76_spill] sm:$0xff] }
 0x18f   : > { %6703 = vmatpush3.bf16.msra.mxu0 %v6702_v49  ;;  %v2251_v30 = vand.u32 4294901760, %v2250_v21  ;;  %v2138_v42 = vsub.f32 %v7980_v27, %v9987_v12  ;;  %6477 = vmatprep.subr.bf16.mxu1 %v6476_v4  ;;  %v6478_v53 = vpack.c.bf16 %v2125_v9, %v2118_v32  ;;  %v6484_v49 = vpack.c.bf16 %v7649_v58, %v7638_v20  ;;  %v10336_v21 = vld [vmem:[#allocation34_spill] sm:$0xff] }
 0x190   : > { %6705 = vmatprep.subr.bf16.mxu0 %v6704_v13  ;;  %v6740_v47 = vpack.c.bf16 %v9985_v44, %v9986_v36  ;;  %v9989_v29 = vand.u32 4294901760, %v7655_v18  ;;  %v2132_v46 = vand.u32 4294901760, %v2131_v57  ;;  %v9988_v1 = vand.u32 4294901760, %v10336_v21  ;;  %v10337_v36 = vld [vmem:[#allocation44_spill] sm:$0xff]  ;;  %v10351_v18 = vld [vmem:[#allocation75_spill] sm:$0xff]  ;;  %v10353_v21 = vld [vmem:[#allocation85_spill] sm:$0xff] }
 0x191   : > { %v6480_v31 = vpack.c.bf16 %v2251_v30, %v2244_v43  ;;  %v2139_v10 = vand.u32 4294901760, %v2138_v42  ;;  %v6486_v4 = vpack.c.bf16 %v7670_v16, %v7668_v5  ;;  %v9990_v32 = vand.u32 4294901760, %v7674_v39  ;;  %v10338_v30 = vld [vmem:[#allocation46_spill] sm:$0xff] }
 0x192   : > { %v6488_v9 = vpack.c.bf16 %v7697_v3, %v7695_v0  ;;  %6479 = vmatpush3.bf16.msra.mxu1 %v6478_v53  ;;  %v9999_v12 = vand.u32 4294901760, %v10337_v36  ;;  %v9998_v43 = vand.u32 4294901760, %v10338_v30  ;;  %v6490_v57 = vpack.c.bf16 %v7714_v41, %v7712_v8  ;;  %v10339_v53 = vld [vmem:[#allocation9_spill] sm:$0xff]  ;;  %v10345_v36 = vld [vmem:[#allocation68_spill] sm:$0xff]  ;;  %v10346_v30 = vld [vmem:[#allocation70_spill] sm:$0xff] }
 0x193   : > { %6707 = vmatpush3.bf16.msra.mxu0 %v6706_v14  ;;  %v6482_v44 = vpack.c.bf16 %v2139_v10, %v2132_v46  ;;  %6481 = vmatprep.subr.bf16.mxu1 %v6480_v31  ;;  %v6742_v42 = vpack.c.bf16 %v9988_v1, %v9989_v29  ;;  %v6492_v13 = vpack.c.bf16 %v7741_v62, %v7739_v7  ;;  %v10340_v14 = vand.u32 4294901760, %v7676_v28  ;;  %v10342_v31 = vld [vmem:[#allocation63_spill] sm:$0xff]  ;;  %v10343_v28 = vld [vmem:[#allocation72_spill] sm:$0xff] }
 0x194   : > { %6741 = vmatprep.subr.bf16.mxu0 %v6740_v47  ;;  %v6494_v10 = vpack.c.bf16 %v7758_v25, %v7756_v22  ;;  %v6746_v1 = vpack.c.bf16 %v9998_v43, %v9999_v12  ;;  %v6496_v29 = vpack.c.bf16 %v10317_v56, %v10316_v40  ;;  %v10349_v47 = vand.u32 4294901760, %v7718_v61  ;;  %v1915_v8 = vld [vmem:[%s7457_s13 + $0x28] sm:$0xff] }
 0x195   : > { %v6744_v46 = vpack.c.bf16 %v10340_v14, %v9990_v32  ;;  %v10341_v32 = vld [vmem:[#allocation58_spill] sm:$0xff]  ;;  %v10356_v39 = vand.u32 4294901760, %v10342_v31  ;;  %v10361_v43 = vand.u32 4294901760, %v10351_v18  ;;  %v10368_v31 = vld [vmem:[#allocation97_spill] sm:$0xff]  ;;  %v10436_v0 = vld [vmem:[#allocation23_spill] sm:$0xff] }
 0x196   : > { %3256 = vmatmul.mubr.f32.vlgmr.msra.gmra.mrb[6].mxu0 %v10339_v53  ;;  %6483 = vmatpush3.bf16.msra.mxu1 %v6482_v44  ;;  %v10350_v53 = vand.u32 4294901760, %v7720_v38 }
 0x197   : > { %6743 = vmatpush3.bf16.msra.mxu0 %v6742_v42  ;;  %6485 = vmatprep.subr.bf16.mxu1 %v6484_v49  ;;  %v10344_v42 = vld [vmem:[#allocation64_spill] sm:$0xff]  ;;  %v10347_v49 = vld [vmem:[#allocation3_spill] sm:$0xff] }
 0x198   : > { %6745 = vmatprep.subr.bf16.mxu0 %v6744_v46  ;;  %3530 = vmatprep.mubr.f32.mxu0 %v10347_v49  ;;  %v10348_v46 = vld [vmem:[#allocation6_spill] sm:$0xff]  ;;  %v6748_v14 = vpack.c.bf16 %v10350_v53, %v10349_v47  ;;  %v10354_v49 = vand.u32 4294901760, %v7744_v6  ;;  %v10355_v53 = vand.u32 4294901760, %v10341_v32  ;;  %v10357_v44 = vand.u32 4294901760, %v10344_v42  ;;  %v10374_v42 = vld [vmem:[#allocation13_spill] sm:$0xff] }
 0x199   : > { %2256 = vmatmul.mubr.f32.vlgmr.msra.gmra.mrb[6].mxu1 %v10348_v46  ;;  %v10362_v32 = vand.u32 4294901760, %v10352_v15  ;;  %v10364_v6 = vld [vmem:[#allocation82_spill] sm:$0xff] }
 0x19a   : > { %6487 = vmatpush3.bf16.msra.mxu1 %v6486_v4  ;;  %v6750_v47 = vpack.c.bf16 %v10355_v53, %v10354_v49  ;;  %v6752_v11 = vpack.c.bf16 %v10357_v44, %v10356_v39  ;;  %v10359_v4 = vand.u32 4294901760, %v10346_v30  ;;  %v10363_v53 = vld [vmem:[#allocation80_spill] sm:$0xff]  ;;  %v10365_v44 = vld [vmem:[#allocation87_spill] sm:$0xff]  ;;  %v10372_v30 = vld [vmem:[#allocation10_spill] sm:$0xff]  ;;  %v10377_v25 = vand.u32 4294901760, %v10364_v6 }
 0x19b   : > { %6747 = vmatpush3.bf16.msra.mxu0 %v6746_v1  ;;  %6489 = vmatprep.subr.bf16.mxu1 %v6488_v9  ;;  %v10358_v1 = vand.u32 4294901760, %v10345_v36  ;;  %v6756_v49 = vpack.c.bf16 %v10362_v32, %v10361_v43  ;;  %v10367_v32 = vld [vmem:[#allocation94_spill] sm:$0xff]  ;;  %v10375_v9 = vld [vmem:[#allocation12_spill] sm:$0xff]  ;;  %v10378_v46 = vand.u32 4294901760, %v10365_v44 }
 0x19c   : > { %6749 = vmatprep.subr.bf16.mxu0 %v6748_v14  ;;  %v10360_v14 = vld [vmem:[#allocation4_spill] sm:$0xff]  ;;  %v8541_v20 = vmul.f32 %v10375_v9, %v10436_v0 }
 0x19d   : > { %v6754_v12 = vpack.c.bf16 %v10359_v4, %v10358_v1  ;;  %2391 = vmatprep.mubr.f32.mxu1 %v10360_v14  ;;  %v10366_v4 = vld [vmem:[#allocation88_spill] sm:$0xff]  ;;  %v10371_v1 = vld [vmem:[#allocation98_spill] sm:$0xff] }
 0x19e   : > { %6491 = vmatpush3.bf16.msra.mxu1 %v6490_v57  ;;  %v10369_v57 = vld [vmem:[#allocation11_spill] sm:$0xff]  ;;  %v10379_v56 = vand.u32 4294901760, %v10366_v4 }
 0x19f   : > { %6751 = vmatpush3.bf16.msra.mxu0 %v6750_v47  ;;  %6493 = vmatprep.subr.bf16.mxu1 %v6492_v13  ;;  %v10370_v47 = vld [vmem:[#allocation21_spill] sm:$0xff]  ;;  %v10373_v13 = vld [vmem:[#allocation15_spill] sm:$0xff]  ;;  %v8496_v16 = vmul.f32 %v10436_v0, %v10369_v57 }
 0x1a0   : > { %6753 = vmatprep.subr.bf16.mxu0 %v6752_v11  ;;  %v8239_v15 = vmul.f32 %v10370_v47, %v10369_v57  ;;  %v8244_v36 = vmul.f32 %v10372_v30, %v10370_v47  ;;  %v8248_v11 = vmul.f32 %v10373_v13, %v10369_v57  ;;  %v8252_v18 = vmul.f32 %v10372_v30, %v10373_v13 }
 0x1a1   : > { %v8257_v43 = vmul.f32 %v10370_v47, %v10374_v42  ;;  %v8261_v38 = vmul.f32 %v10375_v9, %v10370_v47  ;;  %v8265_v61 = vmul.f32 %v10373_v13, %v10374_v42  ;;  %v8272_v40 = vmul.f32 %v10375_v9, %v10373_v13 }
 0x1a2   : > { %6495 = vmatpush3.bf16.msra.mxu1 %v6494_v10  ;;  %v10376_v47 = vand.u32 4294901760, %v10363_v53  ;;  %v6760_v39 = vpack.c.bf16 %v10379_v56, %v10378_v46  ;;  %v10380_v62 = vand.u32 4294901760, %v8239_v15  ;;  %v10381_v13 = vand.u32 4294901760, %v8244_v36  ;;  %v10394_v46 = vld [vmem:[#allocation22_spill] sm:$0xff] }
 0x1a3   : > { %6755 = vmatpush3.bf16.msra.mxu0 %v6754_v12  ;;  %6497 = vmatprep.subr.bf16.mxu1 %v6496_v29  ;;  %v10384_v6 = vand.u32 4294901760, %v8252_v18  ;;  %v10386_v12 = vand.u32 4294901760, %v10330_v26  ;;  %v10387_v10 = vand.u32 4294901760, %v10367_v32  ;;  %v8319_v56 = vmul.f32 %v10394_v46, %v10369_v57  ;;  %v10405_v26 = vld [vmem:[#allocation109_spill] sm:$0xff] }
 0x1a4   : > { %6757 = vmatprep.subr.bf16.mxu0 %v6756_v49  ;;  %v6758_v22 = vpack.c.bf16 %v10377_v25, %v10376_v47  ;;  %v8288_v29 = vpack.c.bf16 %v10381_v13, %v10380_v62  ;;  %v10383_v49 = vand.u32 4294901760, %v8248_v11  ;;  %v10388_v62 = vand.u32 4294901760, %v8257_v43 }
 0x1a5   : > { %v6762_v4 = vpack.c.bf16 %v10387_v10, %v10386_v12  ;;  %v10389_v13 = vand.u32 4294901760, %v8261_v38  ;;  %v10393_v47 = vand.u32 4294901760, %v10371_v1  ;;  %v8339_v12 = vmul.f32 %v10394_v46, %v10374_v42 }
 0x1a6   : > { %10382 = vst [vmem:[#allocation100_spill] sm:$0xff] %v8288_v29  ;;  %v8294_v25 = vpack.c.bf16 %v10384_v6, %v10383_v49  ;;  %v10391_v6 = vpack.c.bf16 %v10320_v24, %v10343_v28  ;;  %v10392_v49 = vand.u32 4294901760, %v10368_v31  ;;  %v10397_v31 = vand.u32 4294901760, %v8265_v61 }
 0x1a7   : > { %v8307_v44 = vpack.c.bf16 %v10389_v13, %v10388_v62  ;;  %6759 = vmatpush3.bf16.msra.mxu0 %v6758_v22  ;;  %v8323_v62 = vmul.f32 %v10372_v30, %v10394_v46  ;;  %v10395_v13 = vpack.c.bf16 %v10323_v34, %v7827_v48  ;;  %v10036_v22 = vand.u32 4294901760, %v8319_v56 }
 0x1a8   : > { %10385 = vst [vmem:[#allocation4_spill] sm:$0xff] %v8294_v25  ;;  %6499 = vmatpush3.bf16.msra.mxu1 %v10391_v6  ;;  %v6764_v10 = vpack.c.bf16 %v10393_v47, %v10392_v49  ;;  %6761 = vmatprep.subr.bf16.mxu0 %v6760_v39  ;;  %v10396_v6 = vld [vmem:[#allocation18_spill] sm:$0xff]  ;;  %v10398_v39 = vand.u32 4294901760, %v8272_v40  ;;  %v8354_v34 = vmul.f32 %v10375_v9, %v10394_v46  ;;  %v10403_v46 = vand.u32 4294901760, %v10334_v19 }
 0x1a9   : > { %10390 = vst [vmem:[#allocation11_spill] sm:$0xff] %v8307_v44  ;;  %6501 = vmatprep.subr.bf16.mxu1 %v10395_v13  ;;  %v8331_v47 = vmul.f32 %v10396_v6, %v10369_v57  ;;  %v8335_v49 = vmul.f32 %v10372_v30, %v10396_v6  ;;  %v10035_v32 = vand.u32 4294901760, %v8323_v62  ;;  %v10400_v48 = vpack.c.bf16 %v10353_v21, %v7844_v33 }
 0x1aa   : > { %v8346_v13 = vpack.c.bf16 %v10398_v39, %v10397_v31  ;;  %v10402_v39 = vpack.c.bf16 %v10329_v52, %v10328_v23  ;;  %v10404_v1 = vand.u32 4294901760, %v7928_v60  ;;  %v10411_v21 = vand.u32 4294901760, %v7938_v37 }
 0x1ab   : > { %6763 = vmatpush3.bf16.msra.mxu0 %v6762_v4  ;;  %v8364_v31 = vpack.c.bf16 %v10035_v32, %v10036_v22  ;;  %v10407_v4 = vand.u32 4294901760, %v8335_v49  ;;  %v10409_v22 = vld [vmem:[#allocation111_spill] sm:$0xff]  ;;  %v10413_v32 = vand.u32 4294901760, %v8339_v12  ;;  %v10414_v24 = vand.u32 4294901760, %v8354_v34 }
 0x1ac   : > { %10399 = vst [vmem:[#allocation21_spill] sm:$0xff] %v8346_v13  ;;  %6503 = vmatpush3.bf16.msra.mxu1 %v10400_v48  ;;  %6765 = vmatprep.subr.bf16.mxu0 %v6764_v10  ;;  %v6766_v53 = vpack.c.bf16 %v10404_v1, %v10403_v46  ;;  %v10406_v48 = vand.u32 4294901760, %v8331_v47  ;;  %v8384_v10 = vmul.f32 %v10396_v6, %v10374_v42  ;;  %v10410_v1 = vld [vmem:[#allocation24_spill] sm:$0xff]  ;;  %v10076_v58 = vand.u32 4294901760, %v8496_v16 }
 0x1ad   : > { %10401 = vst [vmem:[#allocation15_spill] sm:$0xff] %v8364_v31  ;;  %6505 = vmatprep.subr.bf16.mxu1 %v10402_v39  ;;  %v8388_v39 = vmul.f32 %v10375_v9, %v10396_v6  ;;  %v8392_v46 = vmul.f32 %v10410_v1, %v10369_v57  ;;  %v8402_v60 = vpack.c.bf16 %v10414_v24, %v10413_v32  ;;  %v10416_v6 = vld [vmem:[#allocation19_spill] sm:$0xff] }
 0x1ae   : > { %v8378_v33 = vpack.c.bf16 %v10407_v4, %v10406_v48  ;;  %v10412_v48 = vand.u32 4294901760, %v7940_v59  ;;  %v8406_v19 = vmul.f32 %v10372_v30, %v10410_v1  ;;  %v8410_v52 = vmul.f32 %v10416_v6, %v10369_v57 }
 0x1af   : > { %10415 = vst [vmem:[#allocation22_spill] sm:$0xff] %v8402_v60  ;;  %v10417_v37 = vpack.c.bf16 %v7890_v51, %v7888_v17  ;;  %6767 = vmatpush3.bf16.msra.mxu0 %v6766_v53  ;;  %v8420_v32 = vmul.f32 %v10372_v30, %v10416_v6  ;;  %v10418_v59 = vpack.c.bf16 %v10333_v54, %v7915_v55 }
 0x1b0   : > { %10408 = vst [vmem:[#allocation13_spill] sm:$0xff] %v8378_v33  ;;  %v6768_v4 = vpack.c.bf16 %v10412_v48, %v10411_v21  ;;  %v8429_v53 = vmul.f32 %v10410_v1, %v10374_v42  ;;  %v8433_v24 = vmul.f32 %v10375_v9, %v10410_v1  ;;  %v10419_v48 = vand.u32 4294901760, %v10405_v26 }
 0x1b1   : > { %6507 = vmatpush3.bf16.msra.mxu1 %v10417_v37  ;;  %v10420_v21 = vand.u32 4294901760, %v10409_v22  ;;  %v10424_v37 = vand.u32 4294901760, %v8392_v46  ;;  %v10425_v7 = vand.u32 4294901760, %v8406_v19  ;;  %v10056_v1 = vand.u32 4294901760, %v8420_v32 }
 0x1b2   : > { %6509 = vmatprep.subr.bf16.mxu1 %v10418_v59  ;;  %6769 = vmatprep.subr.bf16.mxu0 %v6768_v4  ;;  %v10421_v59 = vand.u32 4294901760, %v8384_v10  ;;  %v10422_v4 = vand.u32 4294901760, %v8388_v39  ;;  %v10427_v26 = vpack.c.bf16 %v7934_v2, %v7932_v35 }
 0x1b3   : > { %v6770_v28 = vpack.c.bf16 %v10420_v21, %v10419_v48  ;;  %v8449_v41 = vpack.c.bf16 %v10425_v7, %v10424_v37  ;;  %v10059_v21 = vand.u32 4294901760, %v8429_v53  ;;  %v10429_v7 = vpack.c.bf16 %v7960_v45, %v7958_v63  ;;  %v10432_v37 = vld [vmem:[#allocation27_spill] sm:$0xff] }
 0x1b4   : > { %v8443_v23 = vpack.c.bf16 %v10422_v4, %v10421_v59  ;;  %v8459_v59 = vmul.f32 %v10416_v6, %v10374_v42  ;;  %v8463_v4 = vmul.f32 %v10375_v9, %v10416_v6  ;;  %v8477_v48 = vmul.f32 %v10432_v37, %v10369_v57 }
 0x1b5   : > { %10426 = vst [vmem:[#allocation24_spill] sm:$0xff] %v8449_v41  ;;  %6511 = vmatpush3.bf16.msra.mxu1 %v10427_v26  ;;  %6771 = vmatpush3.bf16.msra.mxu0 %v6770_v28  ;;  %v10430_v28 = vand.u32 4294901760, %v8410_v52  ;;  %v10433_v6 = vand.u32 4294901760, %v8433_v24  ;;  %v8508_v3 = vmul.f32 %v10432_v37, %v10374_v42 }
 0x1b6   : > { %10423 = vst [vmem:[#allocation18_spill] sm:$0xff] %v8443_v23  ;;  %10428 = vst [vmem:[#allocation19_spill] sm:$0xff] %v8463_v4  ;;  %6513 = vmatprep.subr.bf16.mxu1 %v10429_v7  ;;  %6805 = vmatprep.subr.bf16.mxu0 %v8288_v29  ;;  %v10435_v29 = vld [vmem:[#allocation7_spill] sm:$0xff]  ;;  %v10439_v7 = vld [vmem:[#allocation30_spill] sm:$0xff] }
 0x1b7   : > { %v8473_v26 = vpack.c.bf16 %v10056_v1, %v10430_v28  ;;  %v8483_v22 = vpack.c.bf16 %v10433_v6, %v10059_v21  ;;  %v8491_v28 = vmul.f32 %v10372_v30, %v10432_v37  ;;  %v10437_v6 = vpack.c.bf16 %v7980_v27, %v7978_v50 }
 0x1b8   : > { %3532 = vmatmul.mubr.f32.vlgmr.msra.gmra.mrb[8].mxu0 %v10435_v29  ;;  %v8504_v21 = vmul.f32 %v10372_v30, %v10436_v0  ;;  %v10440_v1 = vand.u32 4294901760, %v8459_v59  ;;  %v10441_v29 = vand.u32 4294901760, %v8463_v4  ;;  %v8525_v30 = vmul.f32 %v10375_v9, %v10432_v37  ;;  %v10447_v37 = vld [vmem:[#allocation35_spill] sm:$0xff] }
 0x1b9   : > { %10431 = vst [vmem:[#allocation113_spill] sm:$0xff] %v8473_v26  ;;  %10434 = vst [vmem:[#allocation27_spill] sm:$0xff] %v8483_v22  ;;  %6515 = vmatpush3.bf16.msra.mxu1 %v10437_v6  ;;  %6807 = vmatpush3.bf16.msra.mxu0 %v8294_v25  ;;  %v10070_v6 = vand.u32 4294901760, %v8491_v28  ;;  %v8519_v25 = vand.u32 4294901760, %v1915_v8  ;;  %v10445_v4 = vand.u32 4294901760, %v8477_v48  ;;  %v10080_v9 = vand.u32 4294901760, %v8541_v20 }
 0x1ba   : > { %10438 = vst [vmem:[#allocation23_spill] sm:$0xff] %v8504_v21  ;;  %6517 = vmatprep.subr.bf16.mxu1 %v10439_v7  ;;  %6809 = vmatprep.subr.bf16.mxu0 %v8307_v44  ;;  %v8516_v5 = vpack.c.bf16 %v10441_v29, %v10440_v1  ;;  %v10444_v7 = vld [vmem:[#allocation8_spill] sm:$0xff]  ;;  %v8537_v1 = vmul.f32 %v10436_v0, %v10374_v42  ;;  %v10448_v44 = vand.u32 4294901760, %v8504_v21  ;;  %v10453_v21 = vand.u32 4294901760, %v10360_v14 }
 0x1bb   : > { %10443 = vst [vmem:[#allocation115_spill] sm:$0xff] %v8519_v25  ;;  %v8533_v29 = vpack.c.bf16 %v10070_v6, %v10445_v4  ;;  %v10079_v4 = vand.u32 4294901760, %v8525_v30  ;;  %v10450_v6 = vld [vmem:[#allocation41_spill] sm:$0xff] }
 0x1bc   : > { %10442 = vst [vmem:[#allocation114_spill] sm:$0xff] %v8516_v5  ;;  %2394 = vmatmul.mubr.f32.vlgmr.msra.gmra.mrb[8].mxu1 %v10444_v7  ;;  %v8549_v7 = vpack.c.bf16 %v10448_v44, %v10076_v58  ;;  %v10081_v0 = vand.u32 4294901760, %v8537_v1  ;;  %v8565_v44 = vsub.f32 %v1915_v8, %v8519_v25 }
 0x1bd   : > { %10446 = vst [vmem:[#allocation116_spill] sm:$0xff] %v8533_v29  ;;  %6519 = vmatpush3.bf16.msra.mxu1 %v10447_v37  ;;  %6811 = vmatpush3.bf16.msra.mxu0 %v8346_v13  ;;  %v10451_v37 = vand.u32 4294901760, %v8508_v3 }
 0x1be   : > { %10449 = vst [vmem:[#allocation117_spill] sm:$0xff] %v8549_v7  ;;  %6521 = vmatprep.subr.bf16.mxu1 %v10450_v6  ;;  %6813 = vmatprep.subr.bf16.mxu0 %v8364_v31  ;;  %10454 = vst [vmem:[#allocation119_spill] sm:$0xff] %v8565_v44  ;;  %v8571_v58 = vpack.c.bf16 %v10080_v9, %v10081_v0  ;;  %v10456_v31 = vld [vmem:[#allocation47_spill] sm:$0xff]  ;;  %v10086_v6 = vand.u32 4294901760, %v8565_v44  ;;  %v10460_v0 = vld [vmem:[#allocation65_spill] sm:$0xff] }
 0x1bf   : > { %v8560_v13 = vpack.c.bf16 %v10079_v4, %v10451_v37  ;;  %2498 = vmatprep.mubr.f32.mxu1 %v10453_v21  ;;  %v1914_v37 = vld [vmem:[%s7457_s13 + $0x20] sm:$0xff]  ;;  %v10457_v4 = vld [vmem:[#allocation53_spill] sm:$0xff]  ;;  %v10459_v21 = vld [vmem:[#allocation59_spill] sm:$0xff] }
 0x1c0   : > { %10455 = vst [vmem:[#allocation120_spill] sm:$0xff] %v8571_v58  ;;  %v3740_v8 = vsub.f32 %v8565_v44, %v10086_v6  ;;  %v8582_v14 = vand.u32 4294901760, %v1914_v37 }
 0x1c1   : > { %10452 = vst [vmem:[#allocation118_spill] sm:$0xff] %v8560_v13  ;;  %6523 = vmatpush3.bf16.msra.mxu1 %v10456_v31  ;;  %6815 = vmatpush3.bf16.msra.mxu0 %v8378_v33  ;;  %v10461_v33 = vand.u32 4294901760, %v7888_v17  ;;  %v10464_v31 = vand.u32 4294901760, %v7915_v55  ;;  %v10469_v17 = vld [vmem:[#allocation71_spill] sm:$0xff]  ;;  %v10473_v55 = vld [vmem:[#allocation77_spill] sm:$0xff] }
 0x1c2   : > { %6525 = vmatprep.subr.bf16.mxu1 %v10457_v4  ;;  %6817 = vmatprep.subr.bf16.mxu0 %v8402_v60  ;;  %10458 = vst [vmem:[#allocation121_spill] sm:$0xff] %v8582_v14  ;;  %v3741_v9 = vand.u32 4294901760, %v3740_v8  ;;  %v10462_v60 = vand.u32 4294901760, %v7890_v51  ;;  %v8595_v6 = vsub.f32 %v1914_v37, %v8582_v14  ;;  %v10466_v8 = vand.u32 4294901760, %v7932_v35  ;;  %v10530_v14 = vld [vmem:[#allocation31_spill] sm:$0xff] }
 0x1c3   : > { %v10471_v51 = vand.u32 4294901760, %v7960_v45  ;;  %v10474_v35 = vand.u32 4294901760, %v7978_v50  ;;  %v10479_v45 = vand.u32 4294901760, %v8239_v15  ;;  %v10480_v50 = vand.u32 4294901760, %v8244_v36 }
 0x1c4   : > { %3742 = vmatprep.mubr.f32.mxu0 %v3741_v9  ;;  %v8592_v4 = vpack.c.bf16 %v10462_v60, %v10461_v33  ;;  %10463 = vst [vmem:[#allocation122_spill] sm:$0xff] %v8595_v6  ;;  %v10470_v33 = vand.u32 4294901760, %v7958_v63  ;;  %v10478_v63 = vld [vmem:[#allocation89_spill] sm:$0xff] }
 0x1c5   : > { %6527 = vmatpush3.bf16.msra.mxu1 %v10459_v21  ;;  %6819 = vmatpush3.bf16.msra.mxu0 %v8443_v23  ;;  %v10465_v21 = vand.u32 4294901760, %v10333_v54  ;;  %v10091_v54 = vand.u32 4294901760, %v8595_v6  ;;  %v8633_v37 = vsub.f32 %v8239_v15, %v10479_v45  ;;  %v10488_v45 = vand.u32 4294901760, %v8265_v61 }
 0x1c6   : > { %6529 = vmatprep.subr.bf16.mxu1 %v10460_v0  ;;  %6821 = vmatprep.subr.bf16.mxu0 %v8449_v41  ;;  %v10467_v41 = vand.u32 4294901760, %v7934_v2  ;;  %v8615_v60 = vpack.c.bf16 %v10471_v51, %v10470_v33  ;;  %v10475_v2 = vand.u32 4294901760, %v7980_v27  ;;  %v8638_v27 = vsub.f32 %v8244_v36, %v10480_v50  ;;  %v10573_v0 = vld [vmem:[#allocation55_spill] sm:$0xff] }
 0x1c7   : > { %v8601_v23 = vpack.c.bf16 %v10465_v21, %v10464_v31  ;;  %v10477_v31 = vld [vmem:[#allocation83_spill] sm:$0xff]  ;;  %v10482_v21 = vand.u32 4294901760, %v8248_v11  ;;  %v10484_v33 = vand.u32 4294901760, %v8252_v18  ;;  %v8666_v50 = vsub.f32 %v8265_v61, %v10488_v45 }
 0x1c8   : > { %v8607_v9 = vpack.c.bf16 %v10467_v41, %v10466_v8  ;;  %10472 = vst [vmem:[#allocation124_spill] sm:$0xff] %v8615_v60  ;;  %v8623_v41 = vpack.c.bf16 %v10475_v2, %v10474_v35  ;;  %10481 = vst [vmem:[#allocation126_spill] sm:$0xff] %v8638_v27  ;;  %v10486_v35 = vand.u32 4294901760, %v8257_v43  ;;  %v10487_v2 = vand.u32 4294901760, %v8261_v38  ;;  %v10591_v60 = vld [vmem:[#allocation78_spill] sm:$0xff] }
 0x1c9   : > { %6531 = vmatpush3.bf16.msra.mxu1 %v10469_v17  ;;  %6823 = vmatpush3.bf16.msra.mxu0 %v8473_v26  ;;  %v8643_v8 = vsub.f32 %v8248_v11, %v10482_v21  ;;  %v8648_v51 = vsub.f32 %v8252_v18, %v10484_v33  ;;  %v3746_v11 = vsub.f32 %v8595_v6, %v10091_v54  ;;  %v10489_v18 = vand.u32 4294901760, %v8272_v40 }
 0x1ca   : > { %10468 = vst [vmem:[#allocation123_spill] sm:$0xff] %v8607_v9  ;;  %6533 = vmatprep.subr.bf16.mxu1 %v10473_v55  ;;  %6825 = vmatprep.subr.bf16.mxu0 %v8483_v22  ;;  %10476 = vst [vmem:[#allocation125_spill] sm:$0xff] %v8623_v41  ;;  %v8653_v15 = vsub.f32 %v8257_v43, %v10486_v35  ;;  %v8658_v36 = vsub.f32 %v8261_v38, %v10487_v2  ;;  %v10490_v43 = vand.u32 4294901760, %v8319_v56  ;;  %v10491_v38 = vld [vmem:[#allocation95_spill] sm:$0xff] }
 0x1cb   : > { %10483 = vst [vmem:[#allocation127_spill] sm:$0xff] %v8643_v8  ;;  %10485 = vst [vmem:[#allocation128_spill] sm:$0xff] %v8648_v51  ;;  %v8671_v21 = vsub.f32 %v8272_v40, %v10489_v18  ;;  %v10492_v35 = vand.u32 4294901760, %v8323_v62  ;;  %v10493_v61 = vand.u32 4294901760, %v8331_v47  ;;  %v10495_v40 = vand.u32 4294901760, %v8335_v49  ;;  %v10525_v22 = vld [vmem:[#allocation19_spill] sm:$0xff] }
 0x1cc   : > { %v8676_v33 = vsub.f32 %v8319_v56, %v10490_v43  ;;  %v10496_v56 = vld [vmem:[#allocation99_spill] sm:$0xff]  ;;  %v10497_v43 = vand.u32 4294901760, %v8339_v12  ;;  %v10592_v9 = vand.u32 4294901760, %v10591_v60 }
 0x1cd   : > { %6535 = vmatpush3.bf16.msra.mxu1 %v10477_v31  ;;  %6827 = vmatpush3.bf16.msra.mxu0 %v8516_v5  ;;  %v8683_v2 = vsub.f32 %v8323_v62, %v10492_v35  ;;  %v8688_v45 = vsub.f32 %v8331_v47, %v10493_v61  ;;  %v8693_v18 = vsub.f32 %v8335_v49, %v10495_v40  ;;  %v10499_v62 = vand.u32 4294901760, %v8354_v34  ;;  %v10560_v31 = vld [vmem:[#allocation43_spill] sm:$0xff] }
 0x1ce   : > { %6537 = vmatprep.subr.bf16.mxu1 %v10478_v63  ;;  %6829 = vmatprep.subr.bf16.mxu0 %v8533_v29  ;;  %v8700_v54 = vsub.f32 %v8339_v12, %v10497_v43  ;;  %v10501_v47 = vand.u32 4294901760, %v8384_v10  ;;  %v10503_v49 = vand.u32 4294901760, %v8388_v39  ;;  %v10507_v43 = vand.u32 4294901760, %v8406_v19 }
 0x1cf   : > { %10494 = vst [vmem:[#allocation129_spill] sm:$0xff] %v8688_v45  ;;  %v8705_v35 = vsub.f32 %v8354_v34, %v10499_v62  ;;  %v6868_v62 = vpack.c.bf16 %v8638_v27, %v8633_v37  ;;  %v10523_v29 = vand.u32 4294901760, %v8459_v59  ;;  %v6874_v63 = vpack.c.bf16 %v8671_v21, %v8666_v50 }
 0x1d0   : > { %10498 = vst [vmem:[#allocation130_spill] sm:$0xff] %v8700_v54  ;;  %v8710_v61 = vsub.f32 %v8384_v10, %v10501_v47  ;;  %v8715_v40 = vsub.f32 %v8388_v39, %v10503_v49  ;;  %v8725_v34 = vsub.f32 %v8406_v19, %v10507_v43  ;;  %v3747_v10 = vand.u32 4294901760, %v3746_v11  ;;  %v10514_v19 = vld [vmem:[#allocation14_spill] sm:$0xff] }
 0x1d1   : > { %6539 = vmatpush3.bf16.msra.mxu1 %v10491_v38  ;;  %6831 = vmatpush3.bf16.msra.mxu0 %v8549_v7  ;;  %10500 = vst [vmem:[#allocation131_spill] sm:$0xff] %v8705_v35  ;;  %v10509_v47 = vand.u32 4294901760, %v8410_v52  ;;  %v10511_v39 = vand.u32 4294901760, %v8420_v32  ;;  %v10516_v11 = vand.u32 4294901760, %v8429_v53  ;;  %v8763_v5 = vsub.f32 %v8459_v59, %v10523_v29  ;;  %v10540_v29 = vld [vmem:[#allocation23_spill] sm:$0xff] }
 0x1d2   : > { %6541 = vmatprep.subr.bf16.mxu1 %v10496_v56  ;;  %6833 = vmatprep.subr.bf16.mxu0 %v8560_v13  ;;  %10502 = vst [vmem:[#allocation132_spill] sm:$0xff] %v8710_v61  ;;  %10504 = vst [vmem:[#allocation133_spill] sm:$0xff] %v8715_v40  ;;  %v10505_v13 = vand.u32 4294901760, %v8392_v46  ;;  %v6872_v59 = vpack.c.bf16 %v8658_v36, %v8653_v15 }
 0x1d3   : > { %10508 = vst [vmem:[#allocation135_spill] sm:$0xff] %v8725_v34  ;;  %v8732_v7 = vsub.f32 %v8410_v52, %v10509_v47  ;;  %v8737_v49 = vsub.f32 %v8420_v32, %v10511_v39  ;;  %v8748_v43 = vsub.f32 %v8429_v53, %v10516_v11  ;;  %v10518_v52 = vand.u32 4294901760, %v8433_v24  ;;  %v10520_v32 = vld [vmem:[#allocation108_spill] sm:$0xff]  ;;  %v10521_v39 = vld [vmem:[#allocation10_spill] sm:$0xff]  ;;  %10524 = vst [vmem:[#allocation140_spill] sm:$0xff] %v8763_v5 }
 0x1d4   : > { %v8720_v12 = vsub.f32 %v8392_v46, %v10505_v13  ;;  %v10513_v13 = vld [vmem:[#allocation104_spill] sm:$0xff]  ;;  %v8743_v46 = vmul.f32 %v10514_v19, %v10369_v57  ;;  %v10526_v53 = vand.u32 4294901760, %v10525_v22 }
 0x1d5   : > { %10510 = vst [vmem:[#allocation136_spill] sm:$0xff] %v8732_v7  ;;  %10512 = vst [vmem:[#allocation137_spill] sm:$0xff] %v8737_v49  ;;  %6543 = vmatpush3.bf16.msra.mxu1 %v10513_v13  ;;  %6835 = vmatpush3.bf16.msra.mxu0 %v8571_v58  ;;  %v8753_v47 = vsub.f32 %v8433_v24, %v10518_v52  ;;  %v8758_v58 = vmul.f32 %v10521_v39, %v10514_v19  ;;  %v10541_v52 = vand.u32 4294901760, %v10540_v29 }
 0x1d6   : > { %10506 = vst [vmem:[#allocation134_spill] sm:$0xff] %v8720_v12  ;;  %10515 = vst [vmem:[#allocation14_spill] sm:$0xff] %v8743_v46  ;;  %6545 = vmatprep.subr.bf16.mxu1 %v10520_v32  ;;  %6869 = vmatprep.subr.bf16.mxu0 %v6868_v62  ;;  %v8768_v11 = vsub.f32 %v10525_v22, %v10526_v53  ;;  %v6870_v24 = vpack.c.bf16 %v8648_v51, %v8643_v8  ;;  %v10528_v62 = vld [vmem:[#allocation29_spill] sm:$0xff]  ;;  %v10531_v32 = vand.u32 4294901760, %v10530_v14 }
 0x1d7   : > { %10517 = vst [vmem:[#allocation138_spill] sm:$0xff] %v8748_v43  ;;  %10519 = vst [vmem:[#allocation139_spill] sm:$0xff] %v8753_v47  ;;  %v10529_v26 = vand.u32 4294901760, %v10528_v62  ;;  %v8782_v22 = vmul.f32 %v10514_v19, %v10374_v42  ;;  %v10533_v53 = vand.u32 4294901760, %v8477_v48  ;;  %v10535_v62 = vand.u32 4294901760, %v8491_v28 }
 0x1d8   : > { %10522 = vst [vmem:[#allocation10_spill] sm:$0xff] %v8758_v58  ;;  %10527 = vst [vmem:[#allocation19_spill] sm:$0xff] %v8768_v11  ;;  %3748 = vmatmul.mubr.f32.vlgmr.msra.gmra.mrb[10].mxu0 %v3747_v10  ;;  %v8803_v38 = vsub.f32 %v10540_v29, %v10541_v52  ;;  %v10552_v29 = vld [vmem:[#allocation37_spill] sm:$0xff] }
 0x1d9   : > { %v6548_v13 = vpack.c.bf16 %v10531_v32, %v10529_v26  ;;  %10532 = vst [vmem:[#allocation29_spill] sm:$0xff] %v8782_v22  ;;  %v8787_v56 = vsub.f32 %v8477_v48, %v10533_v53  ;;  %v8792_v14 = vsub.f32 %v8491_v28, %v10535_v62  ;;  %v10537_v26 = vand.u32 4294901760, %v8496_v16  ;;  %v10539_v32 = vld [vmem:[#allocation112_spill] sm:$0xff]  ;;  %6871 = vmatpush3.bf16.msra.mxu0 %v6870_v24 }
 0x1da   : > { %6547 = vmatpush3.bf16.msra.mxu1 %v10539_v32  ;;  %10542 = vst [vmem:[#allocation23_spill] sm:$0xff] %v8803_v38  ;;  %6873 = vmatprep.subr.bf16.mxu0 %v6872_v59  ;;  %v10543_v48 = vand.u32 4294901760, %v8743_v46  ;;  %v10544_v28 = vand.u32 4294901760, %v8758_v58  ;;  %v10546_v62 = vld [vmem:[#allocation12_spill] sm:$0xff] }
 0x1db   : > { %10534 = vst [vmem:[#allocation31_spill] sm:$0xff] %v8787_v56  ;;  %10536 = vst [vmem:[#allocation141_spill] sm:$0xff] %v8792_v14  ;;  %v8797_v10 = vsub.f32 %v8496_v16, %v10537_v26  ;;  %6549 = vmatprep.subr.bf16.mxu1 %v6548_v13  ;;  %v8813_v16 = vmul.f32 %v10546_v62, %v10514_v19  ;;  %v10548_v26 = vand.u32 4294901760, %v8508_v3  ;;  %v10550_v32 = vld [vmem:[#allocation36_spill] sm:$0xff]  ;;  %v10553_v13 = vand.u32 4294901760, %v10552_v29 }
 0x1dc   : > { %v8809_v53 = vpack.c.bf16 %v10544_v28, %v10543_v48  ;;  %v10551_v52 = vand.u32 4294901760, %v10550_v32  ;;  %4115 = vmatprep.mubr.f32.mxu0 %v8565_v44  ;;  %v10554_v19 = vand.u32 4294901760, %v8525_v30  ;;  %v10561_v29 = vand.u32 4294901760, %v10560_v31 }
 0x1dd   : > { %10538 = vst [vmem:[#allocation142_spill] sm:$0xff] %v8797_v10  ;;  %10547 = vst [vmem:[#allocation12_spill] sm:$0xff] %v8813_v16  ;;  %v8818_v24 = vsub.f32 %v8508_v3, %v10548_v26  ;;  %v10558_v26 = vld [vmem:[#allocation42_spill] sm:$0xff]  ;;  %v10562_v48 = vand.u32 4294901760, %v8537_v1  ;;  %6875 = vmatpush3.bf16.msra.mxu0 %v6874_v63  ;;  %v10576_v31 = vand.u32 4294901760, %v8813_v16  ;;  %v10585_v63 = vld [vmem:[#allocation67_spill] sm:$0xff] }
 0x1de   : > { %10545 = vst [vmem:[#allocation143_spill] sm:$0xff] %v8809_v53  ;;  %v6550_v59 = vpack.c.bf16 %v10553_v13, %v10551_v52  ;;  %v8831_v28 = vsub.f32 %v8525_v30, %v10554_v19  ;;  %v10556_v53 = vld [vmem:[#allocation8_spill] sm:$0xff]  ;;  %v10559_v32 = vand.u32 4294901760, %v10558_v26  ;;  %v6876_v13 = vpack.c.bf16 %v8683_v2, %v8676_v33  ;;  %v10593_v16 = vld [vmem:[#allocation79_spill] sm:$0xff] }
 0x1df   : > { %10549 = vst [vmem:[#allocation144_spill] sm:$0xff] %v8818_v24  ;;  %v10557_v3 = vand.u32 4294901760, %v10556_v53  ;;  %v8845_v55 = vsub.f32 %v8537_v1, %v10562_v48  ;;  %v10564_v30 = vand.u32 4294901760, %v8541_v20  ;;  %v10566_v19 = vld [vmem:[#allocation16_spill] sm:$0xff]  ;;  %v10571_v48 = vld [vmem:[#allocation54_spill] sm:$0xff] }
 0x1e0   : > { %10555 = vst [vmem:[#allocation36_spill] sm:$0xff] %v8831_v28  ;;  %v6552_v52 = vpack.c.bf16 %v10561_v29, %v10559_v32  ;;  %v10567_v26 = vld [vmem:[#allocation48_spill] sm:$0xff]  ;;  %v10569_v29 = vld [vmem:[#allocation49_spill] sm:$0xff]  ;;  %6877 = vmatprep.subr.bf16.mxu0 %v6876_v13  ;;  %v10572_v17 = vand.u32 4294901760, %v10571_v48  ;;  %v10582_v48 = vld [vmem:[#allocation2_spill] sm:$0xff]  ;;  %v6896_v60 = vpack.c.bf16 %v8831_v28, %v8818_v24 }
 0x1e1   : > { %2502 = vmatmul.mubr.f32.vlgmr.msra.gmra.mrb[10].mxu1 %v10557_v3  ;;  %10563 = vst [vmem:[#allocation37_spill] sm:$0xff] %v8845_v55  ;;  %v8850_v53 = vsub.f32 %v8541_v20, %v10564_v30  ;;  %v8855_v3 = vmul.f32 %v10566_v19, %v10369_v57  ;;  %v10568_v32 = vand.u32 4294901760, %v10567_v26  ;;  %v10570_v44 = vand.u32 4294901760, %v10569_v29  ;;  %v10578_v26 = vld [vmem:[#allocation60_spill] sm:$0xff] }
 0x1e2   : > { %6551 = vmatpush3.bf16.msra.mxu1 %v6550_v59  ;;  %v10574_v20 = vand.u32 4294901760, %v10573_v0  ;;  %v10575_v59 = vand.u32 4294901760, %v8782_v22  ;;  %v10579_v29 = vand.u32 4294901760, %v10578_v26  ;;  %2668 = vmatprep.mubr.f32.mxu1 %v10582_v48  ;;  %v8881_v0 = vmul.f32 %v10521_v39, %v10566_v19 }
 0x1e3   : > { %10565 = vst [vmem:[#allocation8_spill] sm:$0xff] %v8850_v53  ;;  %6553 = vmatprep.subr.bf16.mxu1 %v6552_v52  ;;  %v6554_v1 = vpack.c.bf16 %v10570_v44, %v10568_v32  ;;  %v6878_v52 = vpack.c.bf16 %v8693_v18, %v8688_v45  ;;  %v10580_v44 = vld [vmem:[#allocation61_spill] sm:$0xff]  ;;  %v6882_v26 = vpack.c.bf16 %v8715_v40, %v8710_v61  ;;  %v10603_v58 = vand.u32 4294901760, %v8855_v3 }
 0x1e4   : > { %v6556_v30 = vpack.c.bf16 %v10574_v20, %v10572_v17  ;;  %v8870_v25 = vpack.c.bf16 %v10576_v31, %v10575_v59  ;;  %v10581_v13 = vand.u32 4294901760, %v10580_v44  ;;  %v6880_v31 = vpack.c.bf16 %v8705_v35, %v8700_v54  ;;  %v10583_v20 = vld [vmem:[#allocation66_spill] sm:$0xff] }
 0x1e5   : > { %v10584_v59 = vand.u32 4294901760, %v10583_v20  ;;  %6879 = vmatpush3.bf16.msra.mxu0 %v6878_v52  ;;  %v6884_v17 = vpack.c.bf16 %v8725_v34, %v8720_v12  ;;  %v10594_v20 = vand.u32 4294901760, %v10593_v16  ;;  %v10595_v52 = vld [vmem:[#allocation84_spill] sm:$0xff]  ;;  %v6888_v16 = vpack.c.bf16 %v8753_v47, %v8748_v43 }
 0x1e6   : > { %10577 = vst [vmem:[#allocation42_spill] sm:$0xff] %v8870_v25  ;;  %v6558_v32 = vpack.c.bf16 %v10581_v13, %v10579_v29  ;;  %v10586_v25 = vand.u32 4294901760, %v10585_v63  ;;  %v10587_v29 = vld [vmem:[#allocation72_spill] sm:$0xff]  ;;  %v10589_v13 = vld [vmem:[#allocation73_spill] sm:$0xff]  ;;  %6555 = vmatpush3.bf16.msra.mxu1 %v6554_v1  ;;  %v8905_v63 = vmul.f32 %v10566_v19, %v10374_v42  ;;  %6881 = vmatprep.subr.bf16.mxu0 %v6880_v31  ;;  %v10601_v31 = vld [vmem:[#allocation91_spill] sm:$0xff] }
 0x1e7   : > { %v10588_v44 = vand.u32 4294901760, %v10587_v29  ;;  %v10590_v48 = vand.u32 4294901760, %v10589_v13  ;;  %v6564_v22 = vpack.c.bf16 %v10594_v20, %v10592_v9  ;;  %6557 = vmatprep.subr.bf16.mxu1 %v6556_v30  ;;  %v6886_v1 = vpack.c.bf16 %v8737_v49, %v8732_v7  ;;  %v10599_v13 = vld [vmem:[#allocation90_spill] sm:$0xff] }
 0x1e8   : > { %v6560_v41 = vpack.c.bf16 %v10586_v25, %v10584_v59  ;;  %v10597_v59 = vld [vmem:[#allocation85_spill] sm:$0xff]  ;;  %v8916_v9 = vmul.f32 %v10546_v62, %v10566_v19  ;;  %v10600_v30 = vand.u32 4294901760, %v10599_v13  ;;  %v10602_v20 = vand.u32 4294901760, %v10601_v31 }
 0x1e9   : > { %v6562_v6 = vpack.c.bf16 %v10590_v48, %v10588_v44  ;;  %v10596_v48 = vand.u32 4294901760, %v10595_v52  ;;  %v10598_v29 = vand.u32 4294901760, %v10597_v59  ;;  %v10604_v52 = vand.u32 4294901760, %v8881_v0  ;;  %6883 = vmatpush3.bf16.msra.mxu0 %v6882_v26  ;;  %v10607_v26 = vld [vmem:[#allocation17_spill] sm:$0xff] }
 0x1ea   : > { %v6568_v25 = vpack.c.bf16 %v10602_v20, %v10600_v30  ;;  %v10123_v46 = vand.u32 4294901760, %v8916_v9  ;;  %6559 = vmatpush3.bf16.msra.mxu1 %v6558_v32  ;;  %v6890_v13 = vpack.c.bf16 %v8768_v11, %v8763_v5  ;;  %v6892_v30 = vpack.c.bf16 %v8792_v14, %v8787_v56  ;;  %6885 = vmatprep.subr.bf16.mxu0 %v6884_v17 }
 0x1eb   : > { %v6566_v44 = vpack.c.bf16 %v10598_v29, %v10596_v48  ;;  %v8928_v59 = vpack.c.bf16 %v10604_v52, %v10603_v58  ;;  %v10124_v48 = vand.u32 4294901760, %v8905_v63  ;;  %v10133_v29 = vand.u32 4294901760, %v8648_v51  ;;  %6561 = vmatprep.subr.bf16.mxu1 %v6560_v41 }
 0x1ec   : > { %v6894_v58 = vpack.c.bf16 %v8803_v38, %v8797_v10  ;;  %v8951_v52 = vmul.f32 %v10607_v26, %v10369_v57  ;;  %v10608_v17 = vand.u32 4294901760, %v8633_v37  ;;  %v10609_v20 = vand.u32 4294901760, %v8638_v27 }
 0x1ed   : > { %10605 = vst [vmem:[#allocation43_spill] sm:$0xff] %v8928_v59  ;;  %v8947_v32 = vpack.c.bf16 %v10123_v46, %v10124_v48  ;;  %v8965_v46 = vmul.f32 %v10521_v39, %v10607_v26  ;;  %v10610_v48 = vand.u32 4294901760, %v8643_v8  ;;  %v10612_v41 = vand.u32 4294901760, %v8658_v36  ;;  %6887 = vmatpush3.bf16.msra.mxu0 %v6886_v1 }
 0x1ee   : > { %v8961_v31 = vpack.c.bf16 %v10609_v20, %v10608_v17  ;;  %v10135_v20 = vand.u32 4294901760, %v8951_v52  ;;  %6563 = vmatpush3.bf16.msra.mxu1 %v6562_v6  ;;  %6889 = vmatprep.subr.bf16.mxu0 %v6888_v16  ;;  %v1904_v1 = vmul.f32 %v10607_v26, %v10374_v42  ;;  %v1905_v16 = vmul.f32 %v10546_v62, %v10607_v26 }
 0x1ef   : > { %10606 = vst [vmem:[#allocation16_spill] sm:$0xff] %v8947_v32  ;;  %v8971_v19 = vpack.c.bf16 %v10133_v29, %v10610_v48  ;;  %v10611_v32 = vand.u32 4294901760, %v8653_v15  ;;  %v10134_v48 = vand.u32 4294901760, %v8965_v46  ;;  %6565 = vmatprep.subr.bf16.mxu1 %v6564_v22  ;;  %v10613_v29 = vand.u32 4294901760, %v8666_v50 }
 0x1f0   : > { %v4534_v27 = vand.u32 4294901760, %v1904_v1  ;;  %v10616_v26 = vand.u32 4294901760, %v8676_v33  ;;  %v10619_v8 = vand.u32 4294901760, %v8688_v45  ;;  %v10620_v17 = vand.u32 4294901760, %v8693_v18 }
 0x1f1   : > { %v8977_v59 = vpack.c.bf16 %v10612_v41, %v10611_v32  ;;  %v10614_v32 = vand.u32 4294901760, %v8671_v21  ;;  %v9001_v22 = vpack.c.bf16 %v10134_v48, %v10135_v20  ;;  %6891 = vmatpush3.bf16.msra.mxu0 %v6890_v13  ;;  %v4537_v48 = vand.u32 4294901760, %v1905_v16  ;;  %v10618_v13 = vld [vmem:[#allocation20_spill] sm:$0xff] }
 0x1f2   : > { %6567 = vmatpush3.bf16.msra.mxu1 %v6566_v44  ;;  %6893 = vmatprep.subr.bf16.mxu0 %v6892_v30  ;;  %v10617_v20 = vand.u32 4294901760, %v8683_v2  ;;  %v1906_v51 = vmul.f32 %v10618_v13, %v10369_v57  ;;  %v10623_v57 = vand.u32 4294901760, %v8710_v61  ;;  %v10624_v6 = vand.u32 4294901760, %v8715_v40  ;;  %v10658_v61 = vld [vmem:[#allocation41_spill] sm:$0xff] }
 0x1f3   : > { %v8989_v41 = vpack.c.bf16 %v10614_v32, %v10613_v29  ;;  %10615 = vst [vmem:[#allocation48_spill] sm:$0xff] %v9001_v22  ;;  %6569 = vmatprep.subr.bf16.mxu1 %v6568_v25  ;;  %v9025_v32 = vpack.c.bf16 %v10620_v17, %v10619_v8  ;;  %v9029_v22 = vpack.c.bf16 %v4537_v48, %v4534_v27  ;;  %v10625_v30 = vand.u32 4294901760, %v8720_v12  ;;  %v10657_v12 = vld [vmem:[#allocation35_spill] sm:$0xff] }
 0x1f4   : > { %v9015_v29 = vpack.c.bf16 %v10617_v20, %v10616_v26  ;;  %v10621_v20 = vand.u32 4294901760, %v8700_v54  ;;  %v10622_v26 = vand.u32 4294901760, %v8705_v35  ;;  %v9041_v45 = vpack.c.bf16 %v10624_v6, %v10623_v57 }
 0x1f5   : > { %v1907_v8 = vmul.f32 %v10521_v39, %v10618_v13  ;;  %v4540_v17 = vand.u32 4294901760, %v1906_v51  ;;  %6895 = vmatpush3.bf16.msra.mxu0 %v6894_v58  ;;  %v10626_v25 = vand.u32 4294901760, %v8725_v34  ;;  %v10629_v6 = vand.u32 4294901760, %v8748_v43  ;;  %v10653_v34 = vld [vmem:[#allocation125_spill] sm:$0xff] }
 0x1f6   : > { %v9035_v44 = vpack.c.bf16 %v10622_v26, %v10621_v20  ;;  %6571 = vmatpush3.bf16.msra.mxu1 %v8592_v4  ;;  %v10627_v20 = vand.u32 4294901760, %v8732_v7  ;;  %v10628_v26 = vand.u32 4294901760, %v8737_v49  ;;  %v10630_v39 = vand.u32 4294901760, %v8753_v47  ;;  %6897 = vmatprep.subr.bf16.mxu0 %v6896_v60 }
 0x1f7   : > { %v9050_v35 = vpack.c.bf16 %v10626_v25, %v10625_v30  ;;  %6573 = vmatprep.subr.bf16.mxu1 %v8601_v23  ;;  %v10631_v4 = vand.u32 4294901760, %v8763_v5  ;;  %v10632_v58 = vand.u32 4294901760, %v8768_v11  ;;  %v10633_v43 = vand.u32 4294901760, %v8787_v56  ;;  %v10637_v30 = vld [vmem:[#allocation10_spill] sm:$0xff]  ;;  %v10639_v56 = vld [vmem:[#allocation29_spill] sm:$0xff] }
 0x1f8   : > { %v9056_v40 = vpack.c.bf16 %v10628_v26, %v10627_v20  ;;  %v9062_v57 = vpack.c.bf16 %v10630_v39, %v10629_v6  ;;  %v4543_v26 = vand.u32 4294901760, %v1907_v8  ;;  %v10634_v47 = vand.u32 4294901760, %v8792_v14  ;;  %v10635_v39 = vld [vmem:[#allocation14_spill] sm:$0xff] }
 0x1f9   : > { %v9069_v25 = vpack.c.bf16 %v10632_v58, %v10631_v4  ;;  %v10636_v23 = vand.u32 4294901760, %v10635_v39  ;;  %v1908_v4 = vmul.f32 %v10618_v13, %v10374_v42  ;;  %v1909_v58 = vmul.f32 %v10546_v62, %v10618_v13  ;;  %v10643_v42 = vld [vmem:[#allocation123_spill] sm:$0xff] }
 0x1fa   : > { %v9077_v6 = vpack.c.bf16 %v10634_v47, %v10633_v43  ;;  %v10638_v20 = vand.u32 4294901760, %v10637_v30  ;;  %v10640_v14 = vand.u32 4294901760, %v10639_v56  ;;  %v10641_v47 = vld [vmem:[#allocation12_spill] sm:$0xff]  ;;  %6575 = vmatpush3.bf16.msra.mxu1 %v10643_v42  ;;  %v10644_v62 = vpack.c.bf16 %v8850_v53, %v8845_v55 }
 0x1fb   : > { %v9082_v60 = vsub.f32 %v10635_v39, %v10636_v23  ;;  %v10642_v5 = vand.u32 4294901760, %v10641_v47  ;;  %v9103_v23 = vpack.c.bf16 %v4543_v26, %v4540_v17  ;;  %v10645_v13 = vand.u32 4294901760, %v8855_v3 }
 0x1fc   : > { %v9091_v11 = vsub.f32 %v10637_v30, %v10638_v20  ;;  %v9096_v43 = vsub.f32 %v10639_v56, %v10640_v14  ;;  %6899 = vmatpush3.bf16.msra.mxu0 %v10644_v62  ;;  %v10646_v56 = vand.u32 4294901760, %v8881_v0  ;;  %v4549_v20 = vand.u32 4294901760, %v1909_v58 }
 0x1fd   : > { %v9101_v39 = vsub.f32 %v10641_v47, %v10642_v5  ;;  %v9112_v30 = vsub.f32 %v8855_v3, %v10645_v13  ;;  %v4546_v5 = vand.u32 4294901760, %v1908_v4  ;;  %v10647_v47 = vld [vmem:[#allocation124_spill] sm:$0xff]  ;;  %6933 = vmatprep.subr.bf16.mxu0 %v8961_v31  ;;  %v10648_v62 = vand.u32 4294901760, %v8905_v63 }
 0x1fe   : > { %v9117_v14 = vsub.f32 %v8881_v0, %v10646_v56  ;;  %6577 = vmatprep.subr.bf16.mxu1 %v10647_v47  ;;  %v10649_v3 = vand.u32 4294901760, %v8916_v9  ;;  %v10650_v0 = vand.u32 4294901760, %v8951_v52  ;;  %v10651_v47 = vand.u32 4294901760, %v8965_v46 }
 0x1ff   : > { %v9125_v49 = vsub.f32 %v8905_v63, %v10648_v62  ;;  %v9142_v42 = vsub.f32 %v1904_v1, %v4534_v27  ;;  %v9144_v7 = vsub.f32 %v1905_v16, %v4537_v48  ;;  %v9146_v63 = vpack.c.bf16 %v4549_v20, %v4546_v5  ;;  %v10652_v62 = vld [vmem:[#allocation122_spill] sm:$0xff]  ;;  %6579 = vmatpush3.bf16.msra.mxu1 %v10653_v34 }
 0x200   : > { %v9130_v13 = vsub.f32 %v8916_v9, %v10649_v3  ;;  %v9135_v56 = vsub.f32 %v8951_v52, %v10650_v0  ;;  %v9140_v31 = vsub.f32 %v8965_v46, %v10651_v47  ;;  %4118 = vmatmul.mubr.f32.vlgmr.msra.gmra.mrb[12].mxu0 %v10652_v62  ;;  %v9149_v9 = vsub.f32 %v1906_v51, %v4540_v17  ;;  %v10654_v51 = vld [vmem:[#allocation30_spill] sm:$0xff]  ;;  %v10655_v17 = vld [vmem:[#allocation115_spill] sm:$0xff] }
 0x201   : > { %v10162_v3 = vand.u32 4294901760, %v9082_v60  ;;  %v10161_v52 = vand.u32 4294901760, %v9091_v11  ;;  %v10163_v0 = vand.u32 4294901760, %v9096_v43  ;;  %6935 = vmatpush3.bf16.msra.mxu0 %v8971_v19  ;;  %v9156_v27 = vsub.f32 %v1907_v8, %v4543_v26  ;;  %6581 = vmatprep.subr.bf16.mxu1 %v10654_v51 }
 0x202   : > { %v10166_v46 = vand.u32 4294901760, %v9101_v39  ;;  %v10167_v48 = vand.u32 4294901760, %v9112_v30  ;;  %v10168_v1 = vand.u32 4294901760, %v9117_v14  ;;  %6937 = vmatprep.subr.bf16.mxu0 %v8977_v59  ;;  %4392 = vmatprep.mubr.f32.mxu0 %v10655_v17  ;;  %v10178_v51 = vand.u32 4294901760, %v9125_v49 }
 0x203   : > { %v4598_v34 = vsub.f32 %v9082_v60, %v10162_v3  ;;  %v4605_v19 = vsub.f32 %v9091_v11, %v10161_v52  ;;  %v4612_v8 = vsub.f32 %v9096_v43, %v10163_v0  ;;  %v10656_v52 = vld [vmem:[#allocation6_spill] sm:$0xff]  ;;  %v9185_v3 = vsub.f32 %v1908_v4, %v4546_v5 }
 0x204   : > { %v4619_v59 = vsub.f32 %v9101_v39, %v10166_v46  ;;  %v4626_v26 = vsub.f32 %v9112_v30, %v10167_v48  ;;  %v4633_v47 = vsub.f32 %v9117_v14, %v10168_v1  ;;  %2670 = vmatmul.mubr.f32.vlgmr.msra.gmra.mrb[12].mxu1 %v10656_v52  ;;  %v4640_v1 = vsub.f32 %v9125_v49, %v10178_v51 }
 0x205   : > { %v4599_v0 = vand.u32 4294901760, %v4598_v34  ;;  %v4606_v16 = vand.u32 4294901760, %v4605_v19  ;;  %v4613_v62 = vand.u32 4294901760, %v4612_v8  ;;  %6583 = vmatpush3.bf16.msra.mxu1 %v10657_v12  ;;  %6939 = vmatpush3.bf16.msra.mxu0 %v8989_v41  ;;  %v9194_v4 = vsub.f32 %v1909_v58, %v4549_v20  ;;  %v10659_v41 = vld [vmem:[#allocation2_spill] sm:$0xff] }
 0x206   : > { %v4620_v46 = vand.u32 4294901760, %v4619_v59  ;;  %v4627_v17 = vand.u32 4294901760, %v4626_v26  ;;  %v4634_v48 = vand.u32 4294901760, %v4633_v47  ;;  %6585 = vmatprep.subr.bf16.mxu1 %v10658_v61  ;;  %6941 = vmatprep.subr.bf16.mxu0 %v9015_v29  ;;  %v10176_v34 = vand.u32 4294901760, %v9130_v13 }
 0x207   : > { %v9196_v5 = vpack.c.bf16 %v4606_v16, %v4599_v0  ;;  %v10173_v12 = vand.u32 4294901760, %v9135_v56  ;;  %2772 = vmatprep.mubr.f32.mxu1 %v10659_v41  ;;  %v4641_v59 = vand.u32 4294901760, %v4640_v1  ;;  %v10171_v26 = vand.u32 4294901760, %v9140_v31  ;;  %v10660_v0 = vld [vmem:[#allocation47_spill] sm:$0xff]  ;;  %v10661_v16 = vld [vmem:[#allocation53_spill] sm:$0xff] }
 0x208   : > { %v9201_v19 = vpack.c.bf16 %v4620_v46, %v4613_v62  ;;  %v9203_v8 = vpack.c.bf16 %v4634_v48, %v4627_v17  ;;  %v4647_v61 = vsub.f32 %v9130_v13, %v10176_v34  ;;  %v10172_v58 = vand.u32 4294901760, %v9142_v42 }
 0x209   : > { %v4654_v29 = vsub.f32 %v9135_v56, %v10173_v12  ;;  %v10174_v20 = vand.u32 4294901760, %v9144_v7  ;;  %6587 = vmatpush3.bf16.msra.mxu1 %v10660_v0  ;;  %6943 = vmatpush3.bf16.msra.mxu0 %v9025_v32  ;;  %v4661_v62 = vsub.f32 %v9140_v31, %v10171_v26  ;;  %v10175_v46 = vand.u32 4294901760, %v9149_v9 }
 0x20a   : > { %v10177_v48 = vand.u32 4294901760, %v9156_v27  ;;  %v10181_v1 = vand.u32 4294901760, %v9185_v3  ;;  %6589 = vmatprep.subr.bf16.mxu1 %v10661_v16  ;;  %6945 = vmatprep.subr.bf16.mxu0 %v9035_v44  ;;  %v4648_v17 = vand.u32 4294901760, %v4647_v61  ;;  %v4668_v32 = vsub.f32 %v9142_v42, %v10172_v58 }
 0x20b   : > { %v4655_v47 = vand.u32 4294901760, %v4654_v29  ;;  %v4675_v41 = vsub.f32 %v9144_v7, %v10174_v20  ;;  %v4662_v0 = vand.u32 4294901760, %v4661_v62  ;;  %v4682_v26 = vsub.f32 %v9149_v9, %v10175_v46  ;;  %v10662_v20 = vld [vmem:[#allocation59_spill] sm:$0xff]  ;;  %v10663_v62 = vld [vmem:[#allocation26_spill] sm:$0xff] }
 0x20c   : > { %v4689_v16 = vsub.f32 %v9156_v27, %v10177_v48  ;;  %v4696_v44 = vsub.f32 %v9185_v3, %v10181_v1  ;;  %v9239_v61 = vpack.c.bf16 %v4648_v17, %v4641_v59  ;;  %v4669_v29 = vand.u32 4294901760, %v4668_v32  ;;  %v10665_v1 = vld [vmem:[#allocation65_spill] sm:$0xff] }
 0x20d   : > { %v4676_v58 = vand.u32 4294901760, %v4675_v41  ;;  %v10184_v12 = vand.u32 4294901760, %v9194_v4  ;;  %6591 = vmatpush3.bf16.msra.mxu1 %v10662_v20  ;;  %6947 = vmatpush3.bf16.msra.mxu0 %v9041_v45  ;;  %v10664_v46 = vand.u32 4294901760, %v10663_v62  ;;  %v9249_v48 = vpack.c.bf16 %v4662_v0, %v4655_v47  ;;  %v10670_v32 = vld [vmem:[#allocation77_spill] sm:$0xff] }
 0x20e   : > { %v4683_v51 = vand.u32 4294901760, %v4682_v26  ;;  %v4690_v54 = vand.u32 4294901760, %v4689_v16  ;;  %6593 = vmatprep.subr.bf16.mxu1 %v10665_v1  ;;  %6949 = vmatprep.subr.bf16.mxu0 %v9050_v35  ;;  %v4697_v17 = vand.u32 4294901760, %v4696_v44  ;;  %v10183_v41 = vand.u32 4294901760, %v8845_v55  ;;  %v10673_v35 = vld [vmem:[#allocation128_spill] sm:$0xff] }
 0x20f   : > { %v9247_v34 = vsub.f32 %v10663_v62, %v10664_v46  ;;  %v9253_v59 = vpack.c.bf16 %v4676_v58, %v4669_v29  ;;  %v4703_v45 = vsub.f32 %v9194_v4, %v10184_v12  ;;  %v10667_v16 = vand.u32 4294901760, %v8633_v37  ;;  %v10668_v29 = vld [vmem:[#allocation126_spill] sm:$0xff] }
 0x210   : > { %v9260_v46 = vpack.c.bf16 %v4690_v54, %v4683_v51  ;;  %v10666_v51 = vld [vmem:[#allocation71_spill] sm:$0xff]  ;;  %v10669_v62 = vand.u32 4294901760, %v10668_v29  ;;  %v10674_v1 = vand.u32 4294901760, %v10673_v35  ;;  %v10677_v20 = vand.u32 4294901760, %v8666_v50 }
 0x211   : > { %v4704_v58 = vand.u32 4294901760, %v4703_v45  ;;  %6595 = vmatpush3.bf16.msra.mxu1 %v10666_v51  ;;  %6951 = vmatpush3.bf16.msra.mxu0 %v9056_v40  ;;  %v3869_v44 = vsub.f32 %v8633_v37, %v10667_v16  ;;  %v10182_v51 = vand.u32 4294901760, %v8850_v53  ;;  %v10671_v54 = vld [vmem:[#allocation127_spill] sm:$0xff]  ;;  %v10711_v53 = vld [vmem:[#allocation112_spill] sm:$0xff] }
 0x212   : > { %v3876_v45 = vsub.f32 %v10668_v29, %v10669_v62  ;;  %6597 = vmatprep.subr.bf16.mxu1 %v10670_v32  ;;  %6953 = vmatprep.subr.bf16.mxu0 %v9062_v57  ;;  %v10672_v47 = vand.u32 4294901760, %v10671_v54  ;;  %v3764_v37 = vsub.f32 %v10673_v35, %v10674_v1  ;;  %v10675_v29 = vand.u32 4294901760, %v8653_v15  ;;  %v10679_v35 = vld [vmem:[#allocation83_spill] sm:$0xff] }
 0x213   : > { %v9288_v40 = vpack.c.bf16 %v4704_v58, %v4697_v17  ;;  %v3870_v16 = vand.u32 4294901760, %v3869_v44  ;;  %v10676_v57 = vand.u32 4294901760, %v8658_v36 }
 0x214   : > { %v3757_v0 = vsub.f32 %v10671_v54, %v10672_v47  ;;  %v3877_v26 = vand.u32 4294901760, %v3876_v45  ;;  %v3883_v32 = vsub.f32 %v8653_v15, %v10675_v29  ;;  %v3765_v58 = vand.u32 4294901760, %v3764_v37  ;;  %v10681_v37 = vld [vmem:[#allocation89_spill] sm:$0xff] }
 0x215   : > { %v3890_v62 = vsub.f32 %v8658_v36, %v10676_v57  ;;  %v3771_v47 = vsub.f32 %v8666_v50, %v10677_v20  ;;  %v10678_v54 = vand.u32 4294901760, %v8671_v21  ;;  %6599 = vmatpush3.bf16.msra.mxu1 %v10679_v35  ;;  %6955 = vmatpush3.bf16.msra.mxu0 %v9069_v25  ;;  %v10680_v36 = vand.u32 4294901760, %v8676_v33  ;;  %v10685_v57 = vld [vmem:[#allocation28_spill] sm:$0xff]  ;;  %v10689_v35 = vld [vmem:[#allocation95_spill] sm:$0xff] }
 0x216   : > { %v3758_v17 = vand.u32 4294901760, %v3757_v0  ;;  %v9310_v44 = vpack.c.bf16 %v3877_v26, %v3870_v16  ;;  %v3884_v15 = vand.u32 4294901760, %v3883_v32  ;;  %6601 = vmatprep.subr.bf16.mxu1 %v10681_v37  ;;  %6957 = vmatprep.subr.bf16.mxu0 %v9077_v6  ;;  %v10682_v29 = vand.u32 4294901760, %v8683_v2 }
 0x217   : > { %v3778_v1 = vsub.f32 %v8671_v21, %v10678_v54  ;;  %v3891_v45 = vand.u32 4294901760, %v3890_v62  ;;  %v3897_v0 = vsub.f32 %v8676_v33, %v10680_v36  ;;  %v3772_v20 = vand.u32 4294901760, %v3771_v47  ;;  %v10690_v36 = vld [vmem:[#allocation99_spill] sm:$0xff] }
 0x218   : > { %v9317_v50 = vpack.c.bf16 %v3765_v58, %v3758_v17  ;;  %v3904_v25 = vsub.f32 %v8683_v2, %v10682_v29  ;;  %v10683_v26 = vand.u32 4294901760, %v8797_v10  ;;  %v10684_v16 = vand.u32 4294901760, %v8803_v38 }
 0x219   : > { %v3779_v21 = vand.u32 4294901760, %v3778_v1  ;;  %v10686_v62 = vand.u32 4294901760, %v10685_v57  ;;  %v9329_v54 = vpack.c.bf16 %v3891_v45, %v3884_v15  ;;  %v3898_v6 = vand.u32 4294901760, %v3897_v0  ;;  %6603 = vmatpush3.bf16.msra.mxu1 %v10689_v35  ;;  %v10691_v0 = vld [vmem:[#allocation32_spill] sm:$0xff] }
 0x21a   : > { %v6958_v32 = vpack.c.bf16 %v10684_v16, %v10683_v26  ;;  %v10687_v17 = vand.u32 4294901760, %v8818_v24  ;;  %v10688_v58 = vand.u32 4294901760, %v8831_v28  ;;  %v3905_v2 = vand.u32 4294901760, %v3904_v25  ;;  %6605 = vmatprep.subr.bf16.mxu1 %v10690_v36  ;;  %v10694_v25 = vld [vmem:[#allocation34_spill] sm:$0xff] }
 0x21b   : > { %v3014_v33 = vsub.f32 %v10685_v57, %v10686_v62  ;;  %v9335_v1 = vpack.c.bf16 %v3779_v21, %v3772_v20  ;;  %v6962_v15 = vpack.c.bf16 %v10182_v51, %v10183_v41  ;;  %v3008_v45 = vand.u32 4294901760, %v9247_v34  ;;  %v10700_v34 = vld [vmem:[#allocation44_spill] sm:$0xff] }
 0x21c   : > { %v6960_v47 = vpack.c.bf16 %v10688_v58, %v10687_v17  ;;  %6959 = vmatpush3.bf16.msra.mxu0 %v6958_v32  ;;  %v10692_v37 = vand.u32 4294901760, %v10691_v0  ;;  %v9347_v20 = vpack.c.bf16 %v3905_v2, %v3898_v6  ;;  %v10695_v26 = vand.u32 4294901760, %v10694_v25  ;;  %v10696_v32 = vld [vmem:[#allocation39_spill] sm:$0xff]  ;;  %v10698_v17 = vld [vmem:[#allocation40_spill] sm:$0xff] }
 0x21d   : > { %v3015_v21 = vand.u32 4294901760, %v3014_v33  ;;  %v10697_v57 = vand.u32 4294901760, %v10696_v32  ;;  %v10699_v58 = vand.u32 4294901760, %v10698_v17  ;;  %v10701_v35 = vand.u32 4294901760, %v10700_v34  ;;  %v10704_v2 = vld [vmem:[#allocation104_spill] sm:$0xff] }
 0x21e   : > { %6961 = vmatprep.subr.bf16.mxu0 %v6960_v47  ;;  %v2895_v29 = vsub.f32 %v10691_v0, %v10692_v37  ;;  %10693 = vst [vmem:[#allocation49_spill] sm:$0xff] %v9347_v20  ;;  %v2902_v16 = vsub.f32 %v10694_v25, %v10695_v26  ;;  %v10702_v0 = vld [vmem:[#allocation46_spill] sm:$0xff]  ;;  %6607 = vmatpush3.bf16.msra.mxu1 %v10704_v2  ;;  %v10705_v37 = vld [vmem:[#allocation51_spill] sm:$0xff]  ;;  %v10710_v2 = vld [vmem:[#allocation121_spill] sm:$0xff] }
 0x21f   : > { %v3021_v62 = vsub.f32 %v10696_v32, %v10697_v57  ;;  %v3028_v47 = vsub.f32 %v10698_v17, %v10699_v58  ;;  %v2909_v36 = vsub.f32 %v10700_v34, %v10701_v35  ;;  %v10703_v6 = vand.u32 4294901760, %v10702_v0  ;;  %v10707_v32 = vld [vmem:[#allocation52_spill] sm:$0xff] }
 0x220   : > { %6963 = vmatpush3.bf16.msra.mxu0 %v6962_v15  ;;  %v10706_v25 = vand.u32 4294901760, %v10705_v37  ;;  %v10708_v57 = vand.u32 4294901760, %v10707_v32  ;;  %v10709_v17 = vld [vmem:[#allocation108_spill] sm:$0xff]  ;;  %v10189_v58 = vmov 0.0|0.0   ;;  %v2896_v34 = vand.u32 4294901760, %v2895_v29 }
 0x221   : > { %v2916_v33 = vsub.f32 %v10702_v0, %v10703_v6  ;;  %6609 = vmatprep.subr.bf16.mxu1 %v10709_v17  ;;  %6996 = vmatprep.subr.bf16.mxu0 %v10189_v58  ;;  %v6644_v35 = vpack.c.bf16 %v3015_v21, %v3008_v45  ;;  %v2903_v41 = vand.u32 4294901760, %v2902_v16  ;;  %v3022_v0 = vand.u32 4294901760, %v3021_v62  ;;  %v10715_v58 = vld [vmem:[#allocation58_spill] sm:$0xff]  ;;  %v10718_v16 = vld [vmem:[#allocation63_spill] sm:$0xff] }
 0x222   : > { %v3035_v26 = vsub.f32 %v10705_v37, %v10706_v25  ;;  %v3042_v51 = vsub.f32 %v10707_v32, %v10708_v57  ;;  %v3029_v6 = vand.u32 4294901760, %v3028_v47  ;;  %v2910_v15 = vand.u32 4294901760, %v2909_v36  ;;  %6611 = vmatpush3.bf16.msra.mxu1 %v10711_v53  ;;  %v10712_v37 = vld [vmem:[#allocation143_spill] sm:$0xff]  ;;  %v10713_v57 = vld [vmem:[#allocation56_spill] sm:$0xff] }
 0x223   : > { %4394 = vmatmul.mubr.f32.vlgmr.msra.gmra.mrb[14].mxu0 %v10710_v2  ;;  %v2917_v12 = vand.u32 4294901760, %v2916_v33  ;;  %v10714_v17 = vand.u32 4294901760, %v10713_v57  ;;  %v10716_v29 = vand.u32 4294901760, %v10715_v58  ;;  %6645 = vmatprep.subr.bf16.mxu1 %v6644_v35  ;;  %v10717_v21 = vmov 0.0|0.0   ;;  %v10751_v2 = vld [vmem:[#allocation76_spill] sm:$0xff] }
 0x224   : > { %6998 = vmatpush3.bf16.msra.mxu0 %v10712_v37  ;;  %v3036_v25 = vand.u32 4294901760, %v3035_v26  ;;  %v3043_v32 = vand.u32 4294901760, %v3042_v51  ;;  %v10719_v62 = vand.u32 4294901760, %v10718_v16  ;;  %v6646_v53 = vpack.c.bf16 %v2903_v41, %v2896_v34  ;;  %v10720_v26 = vld [vmem:[#allocation64_spill] sm:$0xff]  ;;  %v10725_v41 = vld [vmem:[#allocation42_spill] sm:$0xff] }
 0x225   : > { %v2923_v55 = vsub.f32 %v10713_v57, %v10714_v17  ;;  %v2930_v45 = vsub.f32 %v10715_v58, %v10716_v29  ;;  %6999 = vmatprep.subr.bf16.mxu0 %v10717_v21  ;;  %v10191_v36 = vmov 0.0   ;;  %2774 = vmatmul.mubr.f32.vlgmr.msra.gmra.mrb[14].mxu1 %v10656_v52  ;;  %v6648_v51 = vpack.c.bf16 %v3029_v6, %v3022_v0 }
 0x226   : > { %v3049_v47 = vsub.f32 %v10718_v16, %v10719_v62  ;;  %6194 = vmatprep.mubr.msk.f32.mxu0 %vm7214_vm2, %v10191_v36  ;;  %v6650_v33 = vpack.c.bf16 %v2917_v12, %v2910_v15  ;;  %v10721_v57 = vand.u32 4294901760, %v10720_v26  ;;  %v10722_v35 = vand.u32 4294901760, %v9082_v60  ;;  %6647 = vmatpush3.bf16.msra.mxu1 %v6646_v53  ;;  %v10729_v15 = vld [vmem:[#allocation68_spill] sm:$0xff] }
 0x227   : > { %v10723_v17 = vand.u32 4294901760, %v9091_v11  ;;  %v6652_v34 = vpack.c.bf16 %v3043_v32, %v3036_v25  ;;  %v2924_v16 = vand.u32 4294901760, %v2923_v55  ;;  %v2931_v62 = vand.u32 4294901760, %v2930_v45  ;;  %6649 = vmatprep.subr.bf16.mxu1 %v6648_v51  ;;  %v10737_v51 = vld [vmem:[#allocation70_spill] sm:$0xff] }
 0x228   : > { %v3056_v58 = vsub.f32 %v10720_v26, %v10721_v57  ;;  %7001 = vmatpush3.bf16.msra.mxu0 %v10725_v41  ;;  %v10726_v52 = vand.u32 4294901760, %v9096_v43  ;;  %v10727_v12 = vand.u32 4294901760, %v9101_v39  ;;  %v3050_v6 = vand.u32 4294901760, %v3049_v47 }
 0x229   : > { %v9396_v29 = vpack.c.bf16 %v10723_v17, %v10722_v35  ;;  %7002 = vmatprep.subr.bf16.mxu0 %v10717_v21  ;;  %v10730_v26 = vand.u32 4294901760, %v10729_v15  ;;  %v10731_v57 = vand.u32 4294901760, %v9112_v30  ;;  %v10732_v55 = vand.u32 4294901760, %v9117_v14 }
 0x22a   : > { %v9403_v0 = vpack.c.bf16 %v10727_v12, %v10726_v52  ;;  %v10734_v32 = vand.u32 4294901760, %v9125_v49  ;;  %v10735_v45 = vand.u32 4294901760, %v9130_v13  ;;  %v10738_v17 = vand.u32 4294901760, %v10737_v51  ;;  %v10739_v52 = vld [vmem:[#allocation3_spill] sm:$0xff]  ;;  %6651 = vmatpush3.bf16.msra.mxu1 %v6650_v33 }
 0x22b   : > { %10724 = vst [vmem:[#allocation54_spill] sm:$0xff] %v9396_v29  ;;  %v2937_v53 = vsub.f32 %v10729_v15, %v10730_v26  ;;  %v9413_v25 = vpack.c.bf16 %v10732_v55, %v10731_v57  ;;  %3116 = vmatprep.mubr.f32.mxu1 %v10739_v52  ;;  %v10740_v12 = vand.u32 4294901760, %v9135_v56  ;;  %v10741_v15 = vand.u32 4294901760, %v9140_v31  ;;  %6653 = vmatprep.subr.bf16.mxu1 %v6652_v34 }
 0x22c   : > { %10728 = vst [vmem:[#allocation55_spill] sm:$0xff] %v9403_v0  ;;  %v9419_v35 = vpack.c.bf16 %v10735_v45, %v10734_v32  ;;  %v2944_v47 = vsub.f32 %v10737_v51, %v10738_v17  ;;  %v10743_v57 = vand.u32 4294901760, %v9142_v42  ;;  %v10744_v55 = vand.u32 4294901760, %v9144_v7  ;;  %v10749_v17 = vld [vmem:[#allocation75_spill] sm:$0xff] }
 0x22d   : > { %10733 = vst [vmem:[#allocation60_spill] sm:$0xff] %v9413_v25  ;;  %v9429_v26 = vpack.c.bf16 %v10741_v15, %v10740_v12  ;;  %v10746_v32 = vand.u32 4294901760, %v9149_v9  ;;  %v10747_v45 = vand.u32 4294901760, %v9156_v27  ;;  %v3057_v51 = vand.u32 4294901760, %v3056_v58 }
 0x22e   : > { %10736 = vst [vmem:[#allocation61_spill] sm:$0xff] %v9419_v35  ;;  %v9435_v36 = vpack.c.bf16 %v10744_v55, %v10743_v57  ;;  %v10750_v25 = vand.u32 4294901760, %v10749_v17  ;;  %v10752_v12 = vand.u32 4294901760, %v10751_v2  ;;  %v10754_v57 = vand.u32 4294901760, %v9194_v4 }
 0x22f   : > { %10742 = vst [vmem:[#allocation66_spill] sm:$0xff] %v9429_v26  ;;  %v9441_v35 = vpack.c.bf16 %v10747_v45, %v10746_v32  ;;  %v10753_v26 = vand.u32 4294901760, %v9185_v3  ;;  %v1916_v32 = vld [vmem:[%s7457_s13 + $0x30] sm:$0xff]  ;;  %v6654_v58 = vpack.c.bf16 %v2931_v62, %v2924_v16  ;;  %v2938_v29 = vand.u32 4294901760, %v2937_v53 }
 0x230   : > { %10745 = vst [vmem:[#allocation67_spill] sm:$0xff] %v9435_v36  ;;  %v3063_v0 = vsub.f32 %v10749_v17, %v10750_v25  ;;  %v3070_v15 = vsub.f32 %v10751_v2, %v10752_v12  ;;  %v10756_v36 = vld [vmem:[#allocation43_spill] sm:$0xff]  ;;  %v10757_v45 = vld [vmem:[#allocation80_spill] sm:$0xff]  ;;  %v2945_v28 = vand.u32 4294901760, %v2944_v47  ;;  %v6656_v16 = vpack.c.bf16 %v3057_v51, %v3050_v6 }
 0x231   : > { %10748 = vst [vmem:[#allocation72_spill] sm:$0xff] %v9441_v35  ;;  %v9453_v55 = vpack.c.bf16 %v10754_v57, %v10753_v26  ;;  %7004 = vmatpush3.bf16.msra.mxu0 %v10756_v36  ;;  %v10758_v25 = vand.u32 4294901760, %v10757_v45  ;;  %v10759_v35 = vld [vmem:[#allocation82_spill] sm:$0xff]  ;;  %v10761_v26 = vld [vmem:[#allocation87_spill] sm:$0xff]  ;;  %v9470_v10 = vand.u32 4294901760, %v1916_v32  ;;  %6655 = vmatpush3.bf16.msra.mxu1 %v6654_v58  ;;  %v10766_v47 = vld [vmem:[#allocation92_spill] sm:$0xff] }
 0x232   : > { %7005 = vmatprep.subr.bf16.mxu0 %v10717_v21  ;;  %v10760_v2 = vand.u32 4294901760, %v10759_v35  ;;  %v10762_v57 = vand.u32 4294901760, %v10761_v26  ;;  %v3064_v62 = vand.u32 4294901760, %v3063_v0  ;;  %v3071_v38 = vand.u32 4294901760, %v3070_v15  ;;  %6657 = vmatprep.subr.bf16.mxu1 %v6656_v16  ;;  %v10770_v15 = vld [vmem:[#allocation97_spill] sm:$0xff] }
 0x233   : > { %10755 = vst [vmem:[#allocation73_spill] sm:$0xff] %v9453_v55  ;;  %v2951_v17 = vsub.f32 %v10757_v45, %v10758_v25  ;;  %v10763_v55 = vld [vmem:[#allocation88_spill] sm:$0xff]  ;;  %v10767_v25 = vand.u32 4294901760, %v10766_v47  ;;  %v6658_v0 = vpack.c.bf16 %v2945_v28, %v2938_v29 }
 0x234   : > { %v2958_v12 = vsub.f32 %v10759_v35, %v10760_v2  ;;  %v3077_v33 = vsub.f32 %v10761_v26, %v10762_v57  ;;  %v10764_v24 = vand.u32 4294901760, %v10763_v55  ;;  %v10765_v45 = vld [vmem:[#allocation16_spill] sm:$0xff]  ;;  %v10768_v26 = vld [vmem:[#allocation94_spill] sm:$0xff]  ;;  %v6660_v16 = vpack.c.bf16 %v3071_v38, %v3064_v62 }
 0x235   : > { %7007 = vmatpush3.bf16.msra.mxu0 %v10765_v45  ;;  %v2952_v53 = vand.u32 4294901760, %v2951_v17  ;;  %v2965_v2 = vsub.f32 %v10766_v47, %v10767_v25  ;;  %v10769_v57 = vand.u32 4294901760, %v10768_v26  ;;  %v10772_v45 = vld [vmem:[#allocation98_spill] sm:$0xff]  ;;  %6659 = vmatpush3.bf16.msra.mxu1 %v6658_v0  ;;  %v10774_v47 = vld [vmem:[#allocation48_spill] sm:$0xff] }
 0x236   : > { %v3084_v34 = vsub.f32 %v10763_v55, %v10764_v24  ;;  %7008 = vmatprep.subr.bf16.mxu0 %v10717_v21  ;;  %v2959_v35 = vand.u32 4294901760, %v2958_v12  ;;  %v3078_v6 = vand.u32 4294901760, %v3077_v33  ;;  %v10771_v55 = vand.u32 4294901760, %v10770_v15  ;;  %6661 = vmatprep.subr.bf16.mxu1 %v6660_v16  ;;  %v10779_v0 = vld [vmem:[#allocation106_spill] sm:$0xff]  ;;  %v10783_v16 = vld [vmem:[#allocation109_spill] sm:$0xff] }
 0x237   : > { %v2972_v24 = vsub.f32 %v10768_v26, %v10769_v57  ;;  %v10773_v20 = vand.u32 4294901760, %v10772_v45  ;;  %v9487_v12 = vsub.f32 %v1916_v32, %v9470_v10  ;;  %v2966_v28 = vand.u32 4294901760, %v2965_v2  ;;  %v10775_v26 = vld [vmem:[#allocation101_spill] sm:$0xff]  ;;  %v10777_v57 = vld [vmem:[#allocation103_spill] sm:$0xff] }
 0x238   : > { %v3085_v51 = vand.u32 4294901760, %v3084_v34  ;;  %v3091_v58 = vsub.f32 %v10770_v15, %v10771_v55  ;;  %v6662_v25 = vpack.c.bf16 %v2959_v35, %v2952_v53  ;;  %v10776_v38 = vand.u32 4294901760, %v10775_v26  ;;  %v10781_v53 = vld [vmem:[#allocation107_spill] sm:$0xff] }
 0x239   : > { %v3098_v17 = vsub.f32 %v10772_v45, %v10773_v20  ;;  %7010 = vmatpush3.bf16.msra.mxu0 %v10774_v47  ;;  %v2973_v29 = vand.u32 4294901760, %v2972_v24  ;;  %v10778_v20 = vand.u32 4294901760, %v10777_v57  ;;  %v10780_v15 = vand.u32 4294901760, %v10779_v0 }
 0x23a   : > { %7011 = vmatprep.subr.bf16.mxu0 %v10717_v21  ;;  %v6664_v33 = vpack.c.bf16 %v3085_v51, %v3078_v6  ;;  %v3092_v34 = vand.u32 4294901760, %v3091_v58  ;;  %v2979_v62 = vsub.f32 %v10775_v26, %v10776_v38  ;;  %v10782_v35 = vand.u32 4294901760, %v10781_v53  ;;  %6663 = vmatpush3.bf16.msra.mxu1 %v6662_v25  ;;  %v10785_v38 = vld [vmem:[#allocation111_spill] sm:$0xff] }
 0x23b   : > { %v2986_v32 = vsub.f32 %v10777_v57, %v10778_v20  ;;  %v3099_v45 = vand.u32 4294901760, %v3098_v17  ;;  %v3105_v55 = vsub.f32 %v10779_v0, %v10780_v15  ;;  %v4586_v24 = vand.u32 4294901760, %v9487_v12 }
 0x23c   : > { %v3112_v2 = vsub.f32 %v10781_v53, %v10782_v35  ;;  %6665 = vmatprep.subr.bf16.mxu1 %v6664_v33  ;;  %v6666_v6 = vpack.c.bf16 %v2973_v29, %v2966_v28  ;;  %v2980_v51 = vand.u32 4294901760, %v2979_v62  ;;  %v10784_v17 = vand.u32 4294901760, %v10783_v16  ;;  %v10789_v35 = vld [vmem:[#allocation7_spill] sm:$0xff] }
 0x23d   : > { %7013 = vmatpush3.bf16.msra.mxu0 %v9029_v22  ;;  %v2987_v58 = vand.u32 4294901760, %v2986_v32  ;;  %v10786_v57 = vand.u32 4294901760, %v10785_v38  ;;  %v6668_v0 = vpack.c.bf16 %v3099_v45, %v3092_v34  ;;  %v3106_v15 = vand.u32 4294901760, %v3105_v55  ;;  %v10787_v45 = vld [vmem:[#allocation25_spill] sm:$0xff] }
 0x23e   : > { %7014 = vmatprep.subr.bf16.mxu0 %v10717_v21  ;;  %v2993_v26 = vsub.f32 %v10783_v16, %v10784_v17  ;;  %v3113_v53 = vand.u32 4294901760, %v3112_v2  ;;  %v4587_v25 = vsub.f32 %v9487_v12, %v4586_v24  ;;  %6667 = vmatpush3.bf16.msra.mxu1 %v6666_v6  ;;  %v10788_v55 = vmov 0.0   ;;  %v10790_v2 = vld [vmem:[#allocation33_spill] sm:$0xff]  ;;  %v10791_v6 = vld [vmem:[#allocation38_spill] sm:$0xff] }
 0x23f   : > { %v3000_v20 = vsub.f32 %v10785_v38, %v10786_v57  ;;  %6669 = vmatprep.subr.bf16.mxu1 %v6668_v0  ;;  %v6670_v28 = vpack.c.bf16 %v2987_v58, %v2980_v51  ;;  %v10792_v51 = vld [vmem:[#allocation5_spill] sm:$0xff]  ;;  %v10795_v16 = vld [vmem:[#allocation50_spill] sm:$0xff] }
 0x240   : > { %v2994_v29 = vand.u32 4294901760, %v2993_v26  ;;  %v6672_v62 = vpack.c.bf16 %v3113_v53, %v3106_v15  ;;  %v4588_v32 = vand.u32 4294901760, %v4587_v25  ;;  %v10793_v58 = vand.u32 4294901760, %v10792_v51  ;;  %v10796_v17 = vld [vmem:[#allocation57_spill] sm:$0xff]  ;;  %v10799_v38 = vld [vmem:[#allocation74_spill] sm:$0xff] }
 0x241   : > { %7016 = vmatpush3.bf16.msra.mxu0 %v9103_v23  ;;  %v3001_v33 = vand.u32 4294901760, %v3000_v20  ;;  %v10798_v26 = vld [vmem:[#allocation69_spill] sm:$0xff]  ;;  %v10801_v25 = vld [vmem:[#allocation86_spill] sm:$0xff] }
 0x242   : > { %7017 = vmatprep.subr.bf16.mxu0 %v10717_v21  ;;  %6671 = vmatpush3.bf16.msra.mxu1 %v6670_v28  ;;  %v10800_v15 = vld [vmem:[#allocation81_spill] sm:$0xff]  ;;  %v10803_v28 = vld [vmem:[#allocation96_spill] sm:$0xff] }
 0x243   : > { %6673 = vmatprep.subr.bf16.mxu1 %v6672_v62  ;;  %v6674_v34 = vpack.c.bf16 %v3001_v33, %v2994_v29  ;;  %v10804_v29 = vld [vmem:[#allocation102_spill] sm:$0xff]  ;;  %v10805_v33 = vld [vmem:[#allocation105_spill] sm:$0xff]  ;;  %v10807_v62 = vpack.c.bf16 %v9091_v11, %v9082_v60  ;;  %v10811_v11 = vpack.c.bf16 %v9117_v14, %v9112_v30  ;;  %v10812_v60 = vpack.c.bf16 %v9130_v13, %v9125_v49 }
 0x244   : > { %v10814_v49 = vpack.c.bf16 %v9144_v7, %v9142_v42  ;;  %v10816_v42 = vpack.c.bf16 %v9194_v4, %v9185_v3  ;;  %v10819_v3 = vand.u32 4294901760, %v8693_v18 }
 0x245   : > { %7019 = vmatpush3.bf16.msra.mxu0 %v9146_v63 }
 0x246   : > { %7020 = vmatprep.subr.bf16.mxu0 %v10717_v21  ;;  %6675 = vmatpush3.bf16.msra.mxu1 %v6674_v34  ;;  %v3792_v4 = vsub.f32 %v8693_v18, %v10819_v3  ;;  %v10845_v3 = vld [vmem:[#allocation19_spill] sm:$0xff] }
 0x247   : > { %6709 = vmatprep.subr.bf16.mxu1 %v10787_v45 }
 0x248   : > { %6195 = vmatmul.mubr.f32.vlgmr.msra.gmra.mrb[16].mxu0 %v4588_v32  ;;  %v10810_v32 = vpack.c.bf16 %v9101_v39, %v9096_v43  ;;  %v10813_v43 = vpack.c.bf16 %v9140_v31, %v9135_v56 }
 0x249   : > { %7022 = vmatpush3.bf16.msra.mxu0 %v9196_v5  ;;  %6229 = vmatprep.mubr.msk.f32.mxu0 %vm7214_vm2, %v10788_v55  ;;  %v10794_v5 = vld [vmem:[#allocation45_spill] sm:$0xff]  ;;  %v5552_v57 = vpop.f32.mrb[4].mxu0 }
 0x24a   : > { %7023 = vmatprep.subr.bf16.mxu0 %v10717_v21  ;;  %3118 = vmatmul.mubr.f32.vlgmr.msra.gmra.mrb[16].mxu1 %v10789_v35  ;;  %v5553_v0 = vpop.f32.mrb[5].mxu0 }
 0x24b   : > { %6711 = vmatpush3.bf16.msra.mxu1 %v10790_v2  ;;  %3360 = vmatprep.mubr.f32.mxu1 %v10793_v58 }
 0x24c   : > { %6713 = vmatprep.subr.bf16.mxu1 %v10791_v6 }
 0x24d   : > { %7025 = vmatpush3.bf16.msra.mxu0 %v9201_v19  ;;  %v10797_v19 = vld [vmem:[#allocation62_spill] sm:$0xff] }
 0x24e   : > { %7026 = vmatprep.subr.bf16.mxu0 %v10717_v21 }
 0x24f   : > { %6715 = vmatpush3.bf16.msra.mxu1 %v10794_v5 }
 0x250   : > { %6717 = vmatprep.subr.bf16.mxu1 %v10795_v16 }
 0x251   : > { %7028 = vmatpush3.bf16.msra.mxu0 %v9203_v8  ;;  %v5342_v8 = vpop.f32.mrb[4].mxu1 }
 0x252   : > { %7029 = vmatprep.subr.bf16.mxu0 %v10717_v21  ;;  %v5343_v20 = vpop.f32.mrb[5].mxu1 }
 0x253   : > { %6719 = vmatpush3.bf16.msra.mxu1 %v10796_v17  ;;  %v5344_v53 = vadd.f32 %v5343_v20, %v5342_v8  ;;  %v10828_v8 = vld [vmem:[#allocation115_spill] sm:$0xff]  ;;  %v10829_v20 = vld [vmem:[#allocation134_spill] sm:$0xff] }
 0x254   : > { %6721 = vmatprep.subr.bf16.mxu1 %v10797_v19 }
 0x255   : > { %7031 = vmatpush3.bf16.msra.mxu0 %v9239_v61  ;;  %v9545_v61 = vadd.f32 %v5553_v0, %v5552_v57  ;;  %v10830_v0 = vand.u32 4294901760, %v10829_v20 }
 0x256   : > { %7032 = vmatprep.subr.bf16.mxu0 %v10717_v21 }
 0x257   : > { %6723 = vmatpush3.bf16.msra.mxu1 %v10798_v26 }
 0x258   : > { %6725 = vmatprep.subr.bf16.mxu1 %v10799_v38 }
 0x259   : > { %7034 = vmatpush3.bf16.msra.mxu0 %v9249_v48  ;;  %v10802_v48 = vld [vmem:[#allocation93_spill] sm:$0xff] }
 0x25a   : > { %7035 = vmatprep.subr.bf16.mxu0 %v10717_v21 }
 0x25b   : > { %6727 = vmatpush3.bf16.msra.mxu1 %v10800_v15 }
 0x25c   : > { %6729 = vmatprep.subr.bf16.mxu1 %v10801_v25 }
 0x25d   : > { %7037 = vmatpush3.bf16.msra.mxu0 %v9253_v59  ;;  %v10806_v59 = vld [vmem:[#allocation110_spill] sm:$0xff] }
 0x25e   : > { %7038 = vmatprep.subr.bf16.mxu0 %v10717_v21 }
 0x25f   : > { %6731 = vmatpush3.bf16.msra.mxu1 %v10802_v48 }
 0x260   : > { %6733 = vmatprep.subr.bf16.mxu1 %v10803_v28 }
 0x261   : > { %7040 = vmatpush3.bf16.msra.mxu0 %v9260_v46  ;;  %v10808_v46 = vld [vmem:[#allocation9_spill] sm:$0xff] }
 0x262   : > { %7041 = vmatprep.subr.bf16.mxu0 %v10717_v21 }
 0x263   : > { %6735 = vmatpush3.bf16.msra.mxu1 %v10804_v29 }
 0x264   : > { %6737 = vmatprep.subr.bf16.mxu1 %v10805_v33 }
 0x265   : > { %7043 = vmatpush3.bf16.msra.mxu0 %v9288_v40  ;;  %v10809_v40 = vand.u32 4294901760, %v10808_v46 }
 0x266   : > { %7044 = vmatprep.subr.bf16.mxu0 %v10717_v21 }
 0x267   : > { %6739 = vmatpush3.bf16.msra.mxu1 %v10806_v59 }
 0x268   : > { %6230 = vmatmul.mubr.f32.vlgmr.msra.gmra.mrb[16].mxu0 %v9470_v10  ;;  %6773 = vmatprep.subr.bf16.mxu1 %v10787_v45  ;;  %v10820_v45 = vld [vmem:[#allocation130_spill] sm:$0xff] }
 0x269   : > { %7046 = vmatpush3.bf16.msra.mxu0 %v10807_v62  ;;  %6264 = vmatprep.mubr.msk.f32.mxu0 %vm7214_vm2, %v10788_v55  ;;  %v5622_v39 = vpop.f32.mrb[6].mxu0 }
 0x26a   : > { %7047 = vmatprep.subr.bf16.mxu0 %v10717_v21  ;;  %3364 = vmatmul.mubr.f32.vlgmr.msra.gmra.mrb[18].mxu1 %v10809_v40  ;;  %v5623_v30 = vpop.f32.mrb[7].mxu0  ;;  %v10836_v40 = vld [vmem:[#allocation137_spill] sm:$0xff] }
 0x26b   : > { %6775 = vmatpush3.bf16.msra.mxu1 %v10790_v2  ;;  %3634 = vmatprep.mubr.f32.mxu1 %v10739_v52  ;;  %v9597_v14 = vadd.f32 %v5623_v30, %v5622_v39  ;;  %v10815_v52 = vpack.c.bf16 %v9156_v27, %v9149_v9  ;;  %v10817_v9 = vld [vmem:[#allocation129_spill] sm:$0xff]  ;;  %v10821_v2 = vand.u32 4294901760, %v10820_v45  ;;  %v10840_v39 = vld [vmem:[#allocation139_spill] sm:$0xff] }
 0x26c   : > { %6777 = vmatprep.subr.bf16.mxu1 %v10791_v6  ;;  %v5377_v13 = vpop.f32.mrb[6].mxu1  ;;  %v10818_v27 = vand.u32 4294901760, %v10817_v9  ;;  %v10841_v30 = vand.u32 4294901760, %v10840_v39 }
 0x26d   : > { %7049 = vmatpush3.bf16.msra.mxu0 %v10810_v32  ;;  %v5378_v56 = vpop.f32.mrb[7].mxu1  ;;  %v3911_v6 = vsub.f32 %v10820_v45, %v10821_v2  ;;  %v10837_v32 = vand.u32 4294901760, %v10836_v40 }
 0x26e   : > { %7050 = vmatprep.subr.bf16.mxu0 %v10717_v21  ;;  %v5379_v31 = vadd.f32 %v5378_v56, %v5377_v13  ;;  %v3785_v34 = vsub.f32 %v10817_v9, %v10818_v27  ;;  %v10843_v9 = vld [vmem:[#allocation140_spill] sm:$0xff] }
 0x26f   : > { %6779 = vmatpush3.bf16.msra.mxu1 %v10794_v5  ;;  %v3793_v5 = vand.u32 4294901760, %v3792_v4  ;;  %v3912_v57 = vand.u32 4294901760, %v3911_v6  ;;  %v10844_v27 = vand.u32 4294901760, %v10843_v9  ;;  %v10846_v4 = vand.u32 4294901760, %v10845_v3 }
 0x270   : > { %6781 = vmatprep.subr.bf16.mxu1 %v10795_v16  ;;  %v9607_v7 = vadd.f32 %v5379_v31, %v5344_v53  ;;  %v3786_v18 = vand.u32 4294901760, %v3785_v34  ;;  %v10824_v16 = vld [vmem:[#allocation132_spill] sm:$0xff] }
 0x271   : > { %7052 = vmatpush3.bf16.msra.mxu0 %v10811_v11  ;;  %v3820_v11 = vsub.f32 %v10836_v40, %v10837_v32  ;;  %v3827_v34 = vsub.f32 %v10843_v9, %v10844_v27  ;;  %v3834_v45 = vsub.f32 %v10845_v3, %v10846_v4  ;;  %v10857_v40 = vld [vmem:[#allocation36_spill] sm:$0xff] }
 0x272   : > { %7053 = vmatprep.subr.bf16.mxu0 %v10717_v21  ;;  %v10858_v32 = vand.u32 4294901760, %v10857_v40 }
 0x273   : > { %6783 = vmatpush3.bf16.msra.mxu1 %v10796_v17  ;;  %v3821_v6 = vand.u32 4294901760, %v3820_v11 }
 0x274   : > { %6785 = vmatprep.subr.bf16.mxu1 %v10797_v19  ;;  %v10826_v19 = vld [vmem:[#allocation133_spill] sm:$0xff]  ;;  %v3974_v11 = vsub.f32 %v10857_v40, %v10858_v32  ;;  %v10883_v32 = vld [vmem:[#allocation114_spill] sm:$0xff] }
 0x275   : > { %7055 = vmatpush3.bf16.msra.mxu0 %v10812_v60  ;;  %v10838_v60 = vld [vmem:[#allocation138_spill] sm:$0xff] }
 0x276   : > { %7056 = vmatprep.subr.bf16.mxu0 %v10717_v21  ;;  %v3975_v4 = vand.u32 4294901760, %v3974_v11  ;;  %v10884_v11 = vld [vmem:[#allocation72_spill] sm:$0xff] }
 0x277   : > { %6787 = vmatpush3.bf16.msra.mxu1 %v10798_v26  ;;  %v10827_v26 = vand.u32 4294901760, %v10826_v19 }
 0x278   : > { %6789 = vmatprep.subr.bf16.mxu1 %v10799_v38 }
 0x279   : > { %7058 = vmatpush3.bf16.msra.mxu0 %v10813_v43  ;;  %v3806_v38 = vsub.f32 %v10826_v19, %v10827_v26  ;;  %v10839_v43 = vand.u32 4294901760, %v10838_v60  ;;  %v3828_v26 = vand.u32 4294901760, %v3827_v34 }
 0x27a   : > { %7059 = vmatprep.subr.bf16.mxu0 %v10717_v21 }
 0x27b   : > { %6791 = vmatpush3.bf16.msra.mxu1 %v10800_v15  ;;  %v10831_v15 = vld [vmem:[#allocation135_spill] sm:$0xff] }
 0x27c   : > { %6793 = vmatprep.subr.bf16.mxu1 %v10801_v25  ;;  %v10832_v53 = vand.u32 4294901760, %v10831_v15 }
 0x27d   : > { %7061 = vmatpush3.bf16.msra.mxu0 %v10814_v49  ;;  %v3946_v49 = vsub.f32 %v10840_v39, %v10841_v30 }
 0x27e   : > { %7062 = vmatprep.subr.bf16.mxu0 %v10717_v21  ;;  %v3932_v25 = vsub.f32 %v10831_v15, %v10832_v53  ;;  %v10853_v53 = vld [vmem:[#allocation23_spill] sm:$0xff] }
 0x27f   : > { %6795 = vmatpush3.bf16.msra.mxu1 %v10802_v48  ;;  %v10833_v48 = vld [vmem:[#allocation49_spill] sm:$0xff] }
 0x280   : > { %6797 = vmatprep.subr.bf16.mxu1 %v10803_v28  ;;  %v6846_v28 = vpack.c.bf16 %v3793_v5, %v3786_v18  ;;  %v3933_v31 = vand.u32 4294901760, %v3932_v25  ;;  %v10847_v18 = vld [vmem:[#allocation31_spill] sm:$0xff]  ;;  %v10854_v25 = vand.u32 4294901760, %v10853_v53 }
 0x281   : > { %7064 = vmatpush3.bf16.msra.mxu0 %v10815_v52  ;;  %v10842_v52 = vld [vmem:[#allocation16_spill] sm:$0xff]  ;;  %v10848_v5 = vand.u32 4294901760, %v10847_v18 }
 0x282   : > { %7065 = vmatprep.subr.bf16.mxu0 %v10717_v21 }
 0x283   : > { %6799 = vmatpush3.bf16.msra.mxu1 %v10804_v29 }
 0x284   : > { %6801 = vmatprep.subr.bf16.mxu1 %v10805_v33  ;;  %v3807_v33 = vand.u32 4294901760, %v3806_v38  ;;  %v3835_v38 = vand.u32 4294901760, %v3834_v45 }
 0x285   : > { %7067 = vmatpush3.bf16.msra.mxu0 %v10816_v42 }
 0x286   : > { %7068 = vmatprep.subr.bf16.mxu0 %v10717_v21 }
 0x287   : > { %6803 = vmatpush3.bf16.msra.mxu1 %v10806_v59  ;;  %v10834_v59 = vld [vmem:[#allocation136_spill] sm:$0xff] }
 0x288   : > { %6265 = vmatmul.mubr.f32.vlgmr.msra.gmra.mrb[16].mxu0 %v9487_v12  ;;  %6837 = vmatprep.subr.bf16.mxu1 %v9310_v44  ;;  %v10822_v44 = vld [vmem:[#allocation131_spill] sm:$0xff]  ;;  %v10835_v62 = vand.u32 4294901760, %v10834_v59 }
 0x289   : > { %7070 = vmatpush3.bf16.msra.mxu0 %v10712_v37  ;;  %6299 = vmatprep.mubr.msk.f32.mxu0 %vm7214_vm2, %v10788_v55  ;;  %v10823_v51 = vand.u32 4294901760, %v10822_v44  ;;  %v10869_v12 = vld [vmem:[#allocation119_spill] sm:$0xff] }
 0x28a   : > { %7071 = vmatprep.subr.bf16.mxu0 %v10717_v21  ;;  %3636 = vmatmul.mubr.f32.vlgmr.msra.gmra.mrb[20].mxu1 %v10789_v35  ;;  %v10825_v35 = vand.u32 4294901760, %v10824_v16  ;;  %v3813_v46 = vsub.f32 %v10834_v59, %v10835_v62  ;;  %v10855_v59 = vld [vmem:[#allocation144_spill] sm:$0xff] }
 0x28b   : > { %v3918_v58 = vsub.f32 %v10822_v44, %v10823_v51  ;;  %6839 = vmatpush3.bf16.msra.mxu1 %v9317_v50  ;;  %3978 = vmatprep.mubr.f32.mxu1 %v10828_v8  ;;  %v3947_v51 = vand.u32 4294901760, %v3946_v49  ;;  %v10856_v62 = vand.u32 4294901760, %v10855_v59  ;;  %v10859_v49 = vld [vmem:[#allocation37_spill] sm:$0xff] }
 0x28c   : > { %6841 = vmatprep.subr.bf16.mxu1 %v9329_v54  ;;  %v3799_v17 = vsub.f32 %v10824_v16, %v10825_v35  ;;  %v3925_v54 = vsub.f32 %v10829_v20, %v10830_v0  ;;  %v3814_v2 = vand.u32 4294901760, %v3813_v46  ;;  %v3953_v16 = vsub.f32 %v10847_v18, %v10848_v5  ;;  %v10849_v35 = vld [vmem:[#allocation141_spill] sm:$0xff]  ;;  %v5692_v20 = vpop.f32.mrb[8].mxu0  ;;  %v10851_v0 = vld [vmem:[#allocation142_spill] sm:$0xff] }
 0x28d   : > { %7073 = vmatpush3.bf16.msra.mxu0 %v10725_v41  ;;  %v3919_v50 = vand.u32 4294901760, %v3918_v58  ;;  %v3967_v46 = vsub.f32 %v10855_v59, %v10856_v62  ;;  %v10863_v5 = vld [vmem:[#allocation54_spill] sm:$0xff]  ;;  %v10882_v59 = vld [vmem:[#allocation27_spill] sm:$0xff] }
 0x28e   : > { %7074 = vmatprep.subr.bf16.mxu0 %v10717_v21  ;;  %v3800_v29 = vand.u32 4294901760, %v3799_v17  ;;  %v3926_v56 = vand.u32 4294901760, %v3925_v54  ;;  %v10850_v17 = vand.u32 4294901760, %v10849_v35  ;;  %v10852_v54 = vand.u32 4294901760, %v10851_v0 }
 0x28f   : > { %6843 = vmatpush3.bf16.msra.mxu1 %v9335_v1  ;;  %v3939_v1 = vsub.f32 %v10838_v60, %v10839_v43  ;;  %v6848_v13 = vpack.c.bf16 %v3919_v50, %v3912_v57  ;;  %v6854_v57 = vpack.c.bf16 %v3821_v6, %v3814_v2  ;;  %v6858_v43 = vpack.c.bf16 %v3835_v38, %v3828_v26  ;;  %v10871_v26 = vld [vmem:[#allocation21_spill] sm:$0xff]  ;;  %v10872_v38 = vld [vmem:[#allocation60_spill] sm:$0xff] }
 0x290   : > { %6845 = vmatprep.subr.bf16.mxu1 %v10833_v48  ;;  %v6850_v42 = vpack.c.bf16 %v3807_v33, %v3800_v29  ;;  %v6852_v58 = vpack.c.bf16 %v3933_v31, %v3926_v56  ;;  %v3960_v19 = vsub.f32 %v10849_v35, %v10850_v17  ;;  %v3841_v15 = vsub.f32 %v10851_v0, %v10852_v54  ;;  %v5693_v33 = vpop.f32.mrb[9].mxu0  ;;  %v10861_v31 = vld [vmem:[#allocation8_spill] sm:$0xff]  ;;  %v10867_v17 = vld [vmem:[#allocation55_spill] sm:$0xff]  ;;  %v10876_v0 = vld [vmem:[#allocation22_spill] sm:$0xff] }
 0x291   : > { %7076 = vmatpush3.bf16.msra.mxu0 %v10756_v36  ;;  %v3940_v44 = vand.u32 4294901760, %v3939_v1  ;;  %v3848_v48 = vsub.f32 %v10853_v53, %v10854_v25  ;;  %v9697_v60 = vadd.f32 %v5693_v33, %v5692_v20  ;;  %v5412_v1 = vpop.f32.mrb[8].mxu1  ;;  %v3968_v3 = vand.u32 4294901760, %v3967_v46  ;;  %v10866_v35 = vld [vmem:[#allocation4_spill] sm:$0xff]  ;;  %v10875_v20 = vld [vmem:[#allocation61_spill] sm:$0xff]  ;;  %v10877_v54 = vld [vmem:[#allocation18_spill] sm:$0xff] }
 0x292   : > { %7077 = vmatprep.subr.bf16.mxu0 %v10717_v21  ;;  %v3961_v29 = vand.u32 4294901760, %v3960_v19  ;;  %v3842_v39 = vand.u32 4294901760, %v3841_v15  ;;  %v5413_v27 = vpop.f32.mrb[9].mxu1  ;;  %v10868_v19 = vld [vmem:[#allocation11_spill] sm:$0xff]  ;;  %v10878_v15 = vld [vmem:[#allocation66_spill] sm:$0xff]  ;;  %v10879_v53 = vld [vmem:[#allocation24_spill] sm:$0xff] }
 0x293   : > { %6847 = vmatpush3.bf16.msra.mxu1 %v6846_v28  ;;  %v6856_v50 = vpack.c.bf16 %v3947_v51, %v3940_v44  ;;  %v3954_v28 = vand.u32 4294901760, %v3953_v16  ;;  %v3849_v30 = vand.u32 4294901760, %v3848_v48  ;;  %v5414_v45 = vadd.f32 %v5413_v27, %v5412_v1  ;;  %v10864_v16 = vld [vmem:[#allocation100_spill] sm:$0xff] }
 0x294   : > { %6849 = vmatprep.subr.bf16.mxu1 %v6848_v13  ;;  %v10860_v13 = vand.u32 4294901760, %v10859_v49 }
 0x295   : > { %7079 = vmatpush3.bf16.msra.mxu0 %v10842_v52  ;;  %v6860_v34 = vpack.c.bf16 %v3961_v29, %v3954_v28  ;;  %v2396_v2 = vadd.f32 %v5414_v45, %v9607_v7  ;;  %v6862_v6 = vpack.c.bf16 %v3849_v30, %v3842_v39  ;;  %v10865_v7 = vld [vmem:[#allocation121_spill] sm:$0xff]  ;;  %v10881_v29 = vld [vmem:[#allocation67_spill] sm:$0xff] }
 0x296   : > { %7080 = vmatprep.subr.bf16.mxu0 %v10717_v21  ;;  %v3855_v56 = vsub.f32 %v10859_v49, %v10860_v13  ;;  %v10880_v28 = vld [vmem:[#allocation113_spill] sm:$0xff]  ;;  %v10888_v49 = vld [vmem:[#allocation118_spill] sm:$0xff]  ;;  %v10889_v13 = vld [vmem:[#allocation120_spill] sm:$0xff] }
 0x297   : > { %6851 = vmatpush3.bf16.msra.mxu1 %v6850_v42  ;;  %v10862_v42 = vand.u32 4294901760, %v10861_v31  ;;  %v10886_v39 = vld [vmem:[#allocation117_spill] sm:$0xff] }
 0x298   : > { %6853 = vmatprep.subr.bf16.mxu1 %v6852_v58  ;;  %v3856_v44 = vand.u32 4294901760, %v3855_v56  ;;  %v6864_v58 = vpack.c.bf16 %v3975_v4, %v3968_v3  ;;  %v10887_v30 = vld [vmem:[#allocation73_spill] sm:$0xff]  ;;  %v10890_v56 = vld [vmem:[#allocation122_spill] sm:$0xff] }
 0x299   : > { %7082 = vmatpush3.bf16.msra.mxu0 %v10774_v47  ;;  %v3862_v9 = vsub.f32 %v10861_v31, %v10862_v42  ;;  %v10891_v31 = vand.u32 4294901760, %v10890_v56 }
 0x29a   : > { %7083 = vmatprep.subr.bf16.mxu0 %v10717_v21 }
 0x29b   : > { %6855 = vmatpush3.bf16.msra.mxu1 %v6854_v57  ;;  %v3863_v51 = vand.u32 4294901760, %v3862_v9  ;;  %v10873_v57 = vld [vmem:[#allocation15_spill] sm:$0xff] }
 0x29c   : > { %6857 = vmatprep.subr.bf16.mxu1 %v6856_v50  ;;  %v10874_v50 = vld [vmem:[#allocation13_spill] sm:$0xff] }
 0x29d   : > { %7085 = vmatpush3.bf16.msra.mxu0 %v9029_v22  ;;  %v6866_v18 = vpack.c.bf16 %v3863_v51, %v3856_v44 }
 0x29e   : > { %7086 = vmatprep.subr.bf16.mxu0 %v10717_v21 }
 0x29f   : > { %6859 = vmatpush3.bf16.msra.mxu1 %v6858_v43  ;;  %v10885_v43 = vld [vmem:[#allocation116_spill] sm:$0xff] }
 0x2a0   : > { %6861 = vmatprep.subr.bf16.mxu1 %v6860_v34 }
 0x2a1   : > { %7088 = vmatpush3.bf16.msra.mxu0 %v9103_v23 }
 0x2a2   : > { %7089 = vmatprep.subr.bf16.mxu0 %v10717_v21 }
 0x2a3   : > { %6863 = vmatpush3.bf16.msra.mxu1 %v6862_v6 }
 0x2a4   : > { %6865 = vmatprep.subr.bf16.mxu1 %v6864_v58 }
 0x2a5   : > { %7091 = vmatpush3.bf16.msra.mxu0 %v9146_v63 }
 0x2a6   : > { %7092 = vmatprep.subr.bf16.mxu0 %v10717_v21 }
 0x2a7   : > { %6867 = vmatpush3.bf16.msra.mxu1 %v6866_v18 }
 0x2a8   : > { %6300 = vmatmul.mubr.f32.vlgmr.msra.gmra.mrb[16].mxu0 %v4586_v24  ;;  %6901 = vmatprep.subr.bf16.mxu1 %v10864_v16  ;;  %v10870_v24 = vand.u32 4294901760, %v10869_v12 }
 0x2a9   : > { %7094 = vmatpush3.bf16.msra.mxu0 %v10863_v5  ;;  %6334 = vmatprep.mubr.msk.f32.mxu0 %vm7214_vm2, %v10788_v55 }
 0x2aa   : > { %7095 = vmatprep.subr.bf16.mxu0 %v10717_v21  ;;  %3980 = vmatmul.mubr.f32.vlgmr.msra.gmra.mrb[22].mxu1 %v10865_v7 }
 0x2ab   : > { %6903 = vmatpush3.bf16.msra.mxu1 %v10866_v35  ;;  %4222 = vmatprep.mubr.f32.mxu1 %v10870_v24  ;;  %v5762_v25 = vpop.f32.mrb[10].mxu0 }
 0x2ac   : > { %6905 = vmatprep.subr.bf16.mxu1 %v10868_v19  ;;  %v5763_v48 = vpop.f32.mrb[11].mxu0 }
 0x2ad   : > { %7097 = vmatpush3.bf16.msra.mxu0 %v10867_v17  ;;  %v9739_v33 = vadd.f32 %v5763_v48, %v5762_v25 }
 0x2ae   : > { %7098 = vmatprep.subr.bf16.mxu0 %v10717_v21 }
 0x2af   : > { %6907 = vmatpush3.bf16.msra.mxu1 %v10871_v26 }
 0x2b0   : > { %6909 = vmatprep.subr.bf16.mxu1 %v10873_v57 }
 0x2b1   : > { %7100 = vmatpush3.bf16.msra.mxu0 %v10872_v38 }
 0x2b2   : > { %7101 = vmatprep.subr.bf16.mxu0 %v10717_v21 }
 0x2b3   : > { %6911 = vmatpush3.bf16.msra.mxu1 %v10874_v50 }
 0x2b4   : > { %6913 = vmatprep.subr.bf16.mxu1 %v10876_v0  ;;  %v5447_v62 = vpop.f32.mrb[10].mxu1 }
 0x2b5   : > { %7103 = vmatpush3.bf16.msra.mxu0 %v10875_v20  ;;  %v5448_v46 = vpop.f32.mrb[11].mxu1 }
 0x2b6   : > { %7104 = vmatprep.subr.bf16.mxu0 %v10717_v21  ;;  %v5449_v40 = vadd.f32 %v5448_v46, %v5447_v62 }
 0x2b7   : > { %6915 = vmatpush3.bf16.msra.mxu1 %v10877_v54 }
 0x2b8   : > { %6917 = vmatprep.subr.bf16.mxu1 %v10879_v53  ;;  %v2504_v1 = vadd.f32 %v5449_v40, %v2396_v2 }
 0x2b9   : > { %7106 = vmatpush3.bf16.msra.mxu0 %v10878_v15 }
 0x2ba   : > { %7107 = vmatprep.subr.bf16.mxu0 %v10717_v21 }
 0x2bb   : > { %6919 = vmatpush3.bf16.msra.mxu1 %v10880_v28 }
 0x2bc   : > { %6921 = vmatprep.subr.bf16.mxu1 %v10882_v59 }
 0x2bd   : > { %7109 = vmatpush3.bf16.msra.mxu0 %v10881_v29 }
 0x2be   : > { %7110 = vmatprep.subr.bf16.mxu0 %v10717_v21 }
 0x2bf   : > { %6923 = vmatpush3.bf16.msra.mxu1 %v10883_v32 }
 0x2c0   : > { %6925 = vmatprep.subr.bf16.mxu1 %v10885_v43 }
 0x2c1   : > { %7112 = vmatpush3.bf16.msra.mxu0 %v10884_v11 }
 0x2c2   : > { %7113 = vmatprep.subr.bf16.mxu0 %v10717_v21 }
 0x2c3   : > { %6927 = vmatpush3.bf16.msra.mxu1 %v10886_v39 }
 0x2c4   : > { %6929 = vmatprep.subr.bf16.mxu1 %v10888_v49 }
 0x2c5   : > { %7115 = vmatpush3.bf16.msra.mxu0 %v10887_v30 }
 0x2c6   : > { %7116 = vmatprep.subr.bf16.mxu0 %v10717_v21 }
 0x2c7   : > { %6931 = vmatpush3.bf16.msra.mxu1 %v10889_v13 }
 0x2c8   : > { %6335 = vmatmul.mubr.f32.vlgmr.msra.gmra.mrb[16].mxu0 %v9470_v10  ;;  %6965 = vmatprep.subr.bf16.mxu1 %v10864_v16 }
 0x2c9   : > { %7118 = vmatpush3.bf16.msra.mxu0 %v10712_v37  ;;  %6369 = vmatprep.mubr.msk.f32.mxu0 %vm7214_vm2, %v10788_v55 }
 0x2ca   : > { %7119 = vmatprep.subr.bf16.mxu0 %v10717_v21  ;;  %4226 = vmatmul.mubr.f32.vlgmr.msra.gmra.mrb[24].mxu1 %v10891_v31 }
 0x2cb   : > { %6967 = vmatpush3.bf16.msra.mxu1 %v10866_v35  ;;  %4496 = vmatprep.mubr.f32.mxu1 %v10828_v8 }
 0x2cc   : > { %6969 = vmatprep.subr.bf16.mxu1 %v10868_v19 }
 0x2cd   : > { %7121 = vmatpush3.bf16.msra.mxu0 %v10725_v41 }
 0x2ce   : > { %7122 = vmatprep.subr.bf16.mxu0 %v10717_v21 }
 0x2cf   : > { %6971 = vmatpush3.bf16.msra.mxu1 %v10871_v26 }
 0x2d0   : > { %6973 = vmatprep.subr.bf16.mxu1 %v10873_v57 }
 0x2d1   : > { %7124 = vmatpush3.bf16.msra.mxu0 %v10756_v36 }
 0x2d2   : > { %7125 = vmatprep.subr.bf16.mxu0 %v10717_v21 }
 0x2d3   : > { %6975 = vmatpush3.bf16.msra.mxu1 %v10874_v50  ;;  %v5832_v37 = vpop.f32.mrb[12].mxu0 }
 0x2d4   : > { %6977 = vmatprep.subr.bf16.mxu1 %v10876_v0  ;;  %v5833_v36 = vpop.f32.mrb[13].mxu0 }
 0x2d5   : > { %7127 = vmatpush3.bf16.msra.mxu0 %v10842_v52  ;;  %v5834_v41 = vadd.f32 %v5833_v36, %v5832_v37 }
 0x2d6   : > { %7128 = vmatprep.subr.bf16.mxu0 %v10717_v21 }
 0x2d7   : > { %6979 = vmatpush3.bf16.msra.mxu1 %v10877_v54  ;;  %v5482_v55 = vpop.f32.mrb[12].mxu1 }
 0x2d8   : > { %6981 = vmatprep.subr.bf16.mxu1 %v10879_v53  ;;  %v5483_v8 = vpop.f32.mrb[13].mxu1 }
 0x2d9   : > { %7130 = vmatpush3.bf16.msra.mxu0 %v10774_v47  ;;  %v5484_v52 = vadd.f32 %v5483_v8, %v5482_v55 }
 0x2da   : > { %7131 = vmatprep.subr.bf16.mxu0 %v10717_v21 }
 0x2db   : > { %6983 = vmatpush3.bf16.msra.mxu1 %v10880_v28  ;;  %v2672_v47 = vadd.f32 %v5484_v52, %v2504_v1 }
 0x2dc   : > { %6985 = vmatprep.subr.bf16.mxu1 %v10882_v59 }
 0x2dd   : > { %7133 = vmatpush3.bf16.msra.mxu0 %v9029_v22 }
 0x2de   : > { %7134 = vmatprep.subr.bf16.mxu0 %v10717_v21 }
 0x2df   : > { %6987 = vmatpush3.bf16.msra.mxu1 %v10883_v32 }
 0x2e0   : > { %6989 = vmatprep.subr.bf16.mxu1 %v10885_v43 }
 0x2e1   : > { %7136 = vmatpush3.bf16.msra.mxu0 %v9103_v23 }
 0x2e2   : > { %7137 = vmatprep.subr.bf16.mxu0 %v10717_v21 }
 0x2e3   : > { %6991 = vmatpush3.bf16.msra.mxu1 %v10886_v39 }
 0x2e4   : > { %6993 = vmatprep.subr.bf16.mxu1 %v10888_v49 }
 0x2e5   : > { %7139 = vmatpush3.bf16.msra.mxu0 %v9146_v63 }
 0x2e7   : > { %6995 = vmatpush3.bf16.msra.mxu1 %v10889_v13 }
 0x2e8   : > { %6370 = vmatmul.mubr.f32.vlgmr.msra.gmra.mrb[16].mxu0 %v9470_v10 }
 0x2ea   : > { %4498 = vmatmul.mubr.f32.vlgmr.msra.gmra.mrb[26].mxu1 %v10865_v7 }
 0x2f6   : > { %v5902_v22 = vpop.f32.mrb[14].mxu0 }
 0x2f7   : > { %v5903_v42 = vpop.f32.mrb[15].mxu0 }
 0x2f8   : > { %v5904_v23 = vadd.f32 %v5903_v42, %v5902_v22  ;;  %v5517_v9 = vpop.f32.mrb[14].mxu1 }
 0x2f9   : > { %v5518_v27 = vpop.f32.mrb[15].mxu1 }
 0x2fa   : > { %v5519_v34 = vadd.f32 %v5518_v27, %v5517_v9 }
 0x2fc   : > { %v2776_v21 = vadd.f32 %v5519_v34, %v2672_v47 }
 0x2fe   : > { %v2888_v3 = vadd.f32 %v9545_v61, %v2776_v21 }
 0x31d   : > { %v5587_v4 = vpop.f32.mrb[16].mxu1 }
 0x31e   : > { %v5588_v45 = vpop.f32.mrb[17].mxu1 }
 0x31f   : > { %v5589_v63 = vadd.f32 %v5588_v45, %v5587_v4 }
 0x321   : > { %v3120_v2 = vadd.f32 %v5589_v63, %v2888_v3 }
 0x323   : > { %v3258_v6 = vadd.f32 %v9597_v14, %v3120_v2 }
 0x33d   : > { %v5657_v10 = vpop.f32.mrb[18].mxu1 }
 0x33e   : > { %v5658_v44 = vpop.f32.mrb[19].mxu1 }
 0x33f   : > { %v5659_v51 = vadd.f32 %v5658_v44, %v5657_v10 }
 0x341   : > { %v3366_v58 = vadd.f32 %v5659_v51, %v3258_v6 }
 0x343   : > { %v3534_v18 = vadd.f32 %v9697_v60, %v3366_v58 }
 0x35d   : > { %v5727_v5 = vpop.f32.mrb[20].mxu1 }
 0x35e   : > { %v5728_v16 = vpop.f32.mrb[21].mxu1 }
 0x35f   : > { %v5729_v7 = vadd.f32 %v5728_v16, %v5727_v5 }
 0x361   : > { %v3638_v35 = vadd.f32 %v5729_v7, %v3534_v18 }
 0x363   : > { %v3750_v17 = vadd.f32 %v9739_v33, %v3638_v35 }
 0x37d   : > { %v5797_v61 = vpop.f32.mrb[22].mxu1 }
 0x37e   : > { %v5798_v19 = vpop.f32.mrb[23].mxu1 }
 0x37f   : > { %v5799_v12 = vadd.f32 %v5798_v19, %v5797_v61 }
 0x381   : > { %v3982_v24 = vadd.f32 %v5799_v12, %v3750_v17 }
 0x383   : > { %v4120_v26 = vadd.f32 %v5834_v41, %v3982_v24 }
 0x39d   : > { %v5867_v38 = vpop.f32.mrb[24].mxu1 }
 0x39e   : > { %v5868_v14 = vpop.f32.mrb[25].mxu1 }
 0x39f   : > { %v5869_v57 = vadd.f32 %v5868_v14, %v5867_v38 }
 0x3a1   : > { %v4228_v50 = vadd.f32 %v5869_v57, %v4120_v26 }
 0x3a3   : > { %v4396_v20 = vadd.f32 %v5904_v23, %v4228_v50 }
 0x3bb   : > { %v5140_v0 = vpop.f32.mrb[16].mxu0 }
 0x3bc   : > { %v6371_v54 = vpop.f32.mrb[17].mxu0 }
 0x3bd   : > { %v5937_v60 = vpop.f32.mrb[26].mxu1 }
 0x3be   : > { %v5938_v15 = vpop.f32.mrb[27].mxu1 }
 0x3bf   : > { %v5939_v53 = vadd.f32 %v5938_v15, %v5937_v60 }
 0x3c1   : > { %v4500_v25 = vadd.f32 %v5939_v53, %v4396_v20 }
 0x3c3   : > { %v7140_v48 = vadd.f32 %v5140_v0, %v4500_v25 }
 0x3c5   : > { %5145 = vst.msk [vmem:[%s262_s17] sm:$0xff] %vm5144_vm3, %v7140_v48 }
 0x3c6 PF: > { %s15_s18 = sadd.s32 1, %s7210_s18  }
 0x3c7   : > { %p12_p4 = scmp.ge.s32.totalorder %s15_s18, 4  }
 0x3c9   :  { %14 = sbr.rel (!%p12_p4) target bundleno = 1 (0x1), region = 76 }

</bundles_post_ra>
